<compile_context>
chip_gen: v5e
topology: v5e:2x2
jax: 0.10.0
libtpu: 0.0.40
codegen_flags: <defaults>
</compile_context>

<pallas_src>
import functools

import jax
import jax.numpy as jnp
from jax.experimental import pallas as pl
from jax.experimental.pallas import tpu as pltpu


# ----------------------------------------------------------------------------
# small static helpers
# ----------------------------------------------------------------------------
def _round_up(n, m):
    return ((n + m - 1) // m) * m


def _pick_row_tile(m):
    # largest "nice" row tile that divides m (m is always a multiple of 8 here)
    for t in (512, 256, 128, 64, 32, 16, 8):
        if m % t == 0:
            return t
    return m


def _pick_time_chunk(t, cap=16):
    for ts in range(min(t, cap), 0, -1):
        if t % ts == 0:
            return ts
    return 1


# ----------------------------------------------------------------------------
# Row-tiled matmul + bias kernel (used for the hoisted LSTM input projection).
#   o = f32( bf16(x) @ bf16(w) ) + b
# ----------------------------------------------------------------------------
def _proj_kernel(x_ref, w_ref, b_ref, o_ref):
    o_ref[...] = (jnp.dot(x_ref[...].astype(jnp.bfloat16), w_ref[...],
                          preferred_element_type=jnp.float32)
                  + b_ref[...])


def _linear_bias(x, w_t_bf16, b_row):
    """x: (M, K) f32, w_t_bf16: (K, N) bf16, b_row: (1, N) f32 -> (M, N) f32."""
    m, k = x.shape
    _, n = w_t_bf16.shape
    tile_m = _pick_row_tile(m)
    return pl.pallas_call(
        _proj_kernel,
        out_shape=jax.ShapeDtypeStruct((m, n), jnp.float32),
        grid_spec=pltpu.PrefetchScalarGridSpec(
            num_scalar_prefetch=0,
            grid=(m // tile_m,),
            in_specs=[
                pl.BlockSpec((tile_m, k), lambda i: (i, 0)),
                pl.BlockSpec((k, n), lambda i: (0, 0)),
                pl.BlockSpec((1, n), lambda i: (0, 0)),
            ],
            out_specs=pl.BlockSpec((tile_m, n), lambda i: (i, 0)),
        ),
        compiler_params=pltpu.CompilerParams(
            dimension_semantics=("parallel",)),
    )(x, w_t_bf16, b_row)


# ----------------------------------------------------------------------------
# LSTM recurrent kernel: grid iterates over time *chunks* of TS steps; the
# chunk is statically unrolled inside the kernel.  h/c carried in VMEM scratch.
# gates were pre-projected from x, so only h @ W_hh^T remains in the loop.
# ----------------------------------------------------------------------------
def _lstm_recurrent_kernel(gx_ref, whh_t_ref, h0_ref, c0_ref,
                           y_ref, hT_ref, cT_ref, h_sc, c_sc):
    s = pl.program_id(0)
    ts = y_ref.shape[0]
    hid = h_sc.shape[-1]

    @pl.when(s == 0)
    def _():
        h_sc[...] = h0_ref[...]
        c_sc[...] = c0_ref[...]

    h = h_sc[...]
    c = c_sc[...]
    for t in range(ts):                       # static unroll over the chunk
        gates = (jnp.dot(h.astype(jnp.bfloat16), whh_t_ref[...],
                         preferred_element_type=jnp.float32)
                 + gx_ref[t])                 # (B, 4H), PyTorch order i,f,g,o
        i_g = jax.nn.sigmoid(gates[:, 0 * hid:1 * hid])
        f_g = jax.nn.sigmoid(gates[:, 1 * hid:2 * hid])
        g_g = jnp.tanh(gates[:, 2 * hid:3 * hid])
        o_g = jax.nn.sigmoid(gates[:, 3 * hid:4 * hid])
        c = f_g * c + i_g * g_g
        h = o_g * jnp.tanh(c)
        y_ref[t] = h

    h_sc[...] = h
    c_sc[...] = c

    @pl.when(s == pl.num_programs(0) - 1)
    def _():
        hT_ref[...] = h
        cT_ref[...] = c


def lstm_layer(x_tm, w_ih, w_hh, b_ih, b_hh, h0, c0):
    """One LSTM layer. x_tm: (T, B_pad, Din) time-major. Returns (y_tm, hT, cT)."""
    t_len, b_pad, d_in = x_tm.shape
    hid = h0.shape[-1]
    wih_t = w_ih.T.astype(jnp.bfloat16)                    # (Din, 4H)
    whh_t = w_hh.T.astype(jnp.bfloat16)                    # (H, 4H)
    b_row = (b_ih + b_hh).reshape(1, 4 * hid).astype(jnp.float32)

    # Hoisted input projection: one big matmul over all T*B rows.
    gx = _linear_bias(x_tm.reshape(t_len * b_pad, d_in), wih_t, b_row)
    gx = gx.reshape(t_len, b_pad, 4 * hid)

    ts = _pick_time_chunk(t_len)
    y, h_t, c_t = pl.pallas_call(
        _lstm_recurrent_kernel,
        out_shape=(
            jax.ShapeDtypeStruct((t_len, b_pad, hid), jnp.float32),
            jax.ShapeDtypeStruct((b_pad, hid), jnp.float32),
            jax.ShapeDtypeStruct((b_pad, hid), jnp.float32),
        ),
        grid_spec=pltpu.PrefetchScalarGridSpec(
            num_scalar_prefetch=0,
            grid=(t_len // ts,),
            in_specs=[
                pl.BlockSpec((ts, b_pad, 4 * hid), lambda s: (s, 0, 0)),  # gx
                pl.BlockSpec((hid, 4 * hid), lambda s: (0, 0)),           # W_hh^T
                pl.BlockSpec((b_pad, hid), lambda s: (0, 0)),             # h0
                pl.BlockSpec((b_pad, hid), lambda s: (0, 0)),             # c0
            ],
            out_specs=(
                pl.BlockSpec((ts, b_pad, hid), lambda s: (s, 0, 0)),      # y
                pl.BlockSpec((b_pad, hid), lambda s: (0, 0)),             # hT
                pl.BlockSpec((b_pad, hid), lambda s: (0, 0)),             # cT
            ),
            scratch_shapes=[
                pltpu.VMEM((b_pad, hid), jnp.float32),                    # h
                pltpu.VMEM((b_pad, hid), jnp.float32),                    # c
            ],
        ),
        compiler_params=pltpu.CompilerParams(
            dimension_semantics=("arbitrary",)),
    )(gx, whh_t, h0, c0)
    return y, h_t, c_t


# ----------------------------------------------------------------------------
# Head kernel: (BatchNorm folded into) Linear + LogSoftmax over a lane-dense,
# 128-padded output.  Row-tiled, "parallel" grid.
# ----------------------------------------------------------------------------
def _head_kernel(x_ref, w_ref, b_ref, o_ref):
    logits = (jnp.dot(x_ref[...].astype(jnp.bfloat16), w_ref[...],
                      preferred_element_type=jnp.float32)
              + b_ref[...])                                   # (tile_N, out_pad)
    m = jnp.max(logits, axis=-1, keepdims=True)
    z = logits - m
    o_ref[...] = z - jnp.log(jnp.sum(jnp.exp(z), axis=-1, keepdims=True))


def head(y_flat, bn_gamma, bn_beta, bn_mean, bn_var, lin_w, lin_b, eps=1e-5):
    n_rows, hid = y_flat.shape
    out = lin_w.shape[0]
    # Fold BatchNorm1d (eval: running stats) into the Linear.
    scale = bn_gamma / jnp.sqrt(bn_var + eps)                 # (H,)
    shift = bn_beta - bn_mean * scale                         # (H,)
    w_fold = lin_w * scale[None, :]                           # (out, H)
    b_fold = lin_b + lin_w @ shift                            # (out,)
    # Pad output columns to 128 lanes; padded columns get -1e30 bias so they
    # never affect the log-softmax and can be sliced off outside.
    out_pad = _round_up(out, 128)
    w_t = jnp.zeros((hid, out_pad), jnp.float32).at[:, :out].set(w_fold.T)
    b_row = jnp.full((1, out_pad), -1e30, jnp.float32).at[0, :out].set(b_fold)
    w_t_bf16 = w_t.astype(jnp.bfloat16)

    tile_n = _pick_row_tile(n_rows)
    logp_pad = pl.pallas_call(
        _head_kernel,
        out_shape=jax.ShapeDtypeStruct((n_rows, out_pad), jnp.float32),
        grid_spec=pltpu.PrefetchScalarGridSpec(
            num_scalar_prefetch=0,
            grid=(n_rows // tile_n,),
            in_specs=[
                pl.BlockSpec((tile_n, hid), lambda i: (i, 0)),
                pl.BlockSpec((hid, out_pad), lambda i: (0, 0)),
                pl.BlockSpec((1, out_pad), lambda i: (0, 0)),
            ],
            out_specs=pl.BlockSpec((tile_n, out_pad), lambda i: (i, 0)),
        ),
        compiler_params=pltpu.CompilerParams(
            dimension_semantics=("parallel",)),
    )(y_flat, w_t_bf16, b_row)
    return logp_pad[:, :out]


# ----------------------------------------------------------------------------
# Full Network forward (eval mode): LSTM stack -> BN -> Dropout(id) -> Linear
# -> LogSoftmax.  (lin1 / lin2 / batchNorm2 are unused in the PyTorch forward.)
# ----------------------------------------------------------------------------
def network_forward(params, x, state=None):
    batch, t_len, _ = x.shape
    layers = len(params["lstm"])
    hid = params["lstm"][0]["w_hh"].shape[1]
    out = params["lin_w"].shape[0]
    b_pad = _round_up(batch, 8)                      # fill the 8 sublanes

    x_tm = jnp.transpose(x, (1, 0, 2))               # (T, B, Din)
    if b_pad != batch:
        x_tm = jnp.pad(x_tm, ((0, 0), (0, b_pad - batch), (0, 0)))

    if state is None:
        h0 = jnp.zeros((layers, b_pad, hid), jnp.float32)
        c0 = jnp.zeros((layers, b_pad, hid), jnp.float32)
    else:
        h_in, c_in = state
        pad = ((0, 0), (0, b_pad - batch), (0, 0))
        h0 = jnp.pad(h_in, pad)
        c0 = jnp.pad(c_in, pad)

    h_out, c_out = [], []
    for l in range(layers):
        p = params["lstm"][l]
        x_tm, h_t, c_t = lstm_layer(x_tm, p["w_ih"], p["w_hh"],
                                    p["b_ih"], p["b_hh"], h0[l], c0[l])
        # inter-layer LSTM dropout: identity in eval mode
        h_out.append(h_t)
        c_out.append(c_t)
    h_n = jnp.stack(h_out, axis=0)[:, :batch, :]
    c_n = jnp.stack(c_out, axis=0)[:, :batch, :]

    y = jnp.transpose(x_tm, (1, 0, 2))               # (B_pad, T, H)
    y_flat = y.reshape(b_pad * t_len, hid)
    logp = head(y_flat, params["bn_gamma"], params["bn_beta"],
                params["bn_mean"], params["bn_var"],
                params["lin_w"], params["lin_b"])
    logp = logp.reshape(b_pad, t_len, out)[:batch]
    return logp, (h_n, c_n)


# ----------------------------------------------------------------------------
# Pure-JAX reference (PyTorch-structured; matmul operands cast to bf16 to
# mirror the kernel's MXU numerics, accumulation in f32).
# ----------------------------------------------------------------------------
def _bf16_dot(a, b):
    return jnp.dot(a.astype(jnp.bfloat16), b.astype(jnp.bfloat16),
                   preferred_element_type=jnp.float32)


def _lstm_layer_ref(x_tm, w_ih, w_hh, b_ih, b_hh, h0, c0):
    hid = h0.shape[-1]

    def step(carry, x_t):
        h, c = carry
        gates = _bf16_dot(x_t, w_ih.T) + _bf16_dot(h, w_hh.T) + b_ih + b_hh
        i = jax.nn.sigmoid(gates[:, 0 * hid:1 * hid])
        f = jax.nn.sigmoid(gates[:, 1 * hid:2 * hid])
        g = jnp.tanh(gates[:, 2 * hid:3 * hid])
        o = jax.nn.sigmoid(gates[:, 3 * hid:4 * hid])
        c = f * c + i * g
        h = o * jnp.tanh(c)
        return (h, c), h

    (h_t, c_t), ys = jax.lax.scan(step, (h0, c0), x_tm)
    return ys, h_t, c_t


def network_forward_ref(params, x):
    batch, t_len, _ = x.shape
    layers = len(params["lstm"])
    hid = params["lstm"][0]["w_hh"].shape[1]
    h0 = jnp.zeros((layers, batch, hid), jnp.float32)
    c0 = jnp.zeros((layers, batch, hid), jnp.float32)
    x_tm = jnp.transpose(x, (1, 0, 2))
    hs, cs = [], []
    for l in range(layers):
        p = params["lstm"][l]
        x_tm, h_t, c_t = _lstm_layer_ref(x_tm, p["w_ih"], p["w_hh"],
                                         p["b_ih"], p["b_hh"], h0[l], c0[l])
        hs.append(h_t)
        cs.append(c_t)
    y = jnp.transpose(x_tm, (1, 0, 2))               # (B, T, H)
    yn = (y - params["bn_mean"]) / jnp.sqrt(params["bn_var"] + 1e-5)
    yn = yn * params["bn_gamma"] + params["bn_beta"]
    logits = (_bf16_dot(yn.reshape(batch * t_len, hid), params["lin_w"].T)
              + params["lin_b"])
    logp = jax.nn.log_softmax(logits, axis=-1).reshape(batch, t_len, -1)
    return logp, (jnp.stack(hs), jnp.stack(cs))


# ----------------------------------------------------------------------------
# Deterministic parameter construction (shapes from Network.__init__)
# ----------------------------------------------------------------------------
def make_params(key, input_size, hidden, layers):
    k = 1.0 / jnp.sqrt(hidden)
    params = {"lstm": []}
    for l in range(layers):
        din = input_size if l == 0 else hidden
        key, k1, k2, k3, k4 = jax.random.split(key, 5)
        params["lstm"].append({
            "w_ih": jax.random.uniform(k1, (4 * hidden, din), jnp.float32, -k, k),
            "w_hh": jax.random.uniform(k2, (4 * hidden, hidden), jnp.float32, -k, k),
            "b_ih": jax.random.uniform(k3, (4 * hidden,), jnp.float32, -k, k),
            "b_hh": jax.random.uniform(k4, (4 * hidden,), jnp.float32, -k, k),
        })
    # BatchNorm1d(hidden): randomized running stats / affine so the BN folding
    # in the head is actually exercised by the correctness check.
    key, kg, kb, km, kv = jax.random.split(key, 5)
    params["bn_gamma"] = jax.random.uniform(kg, (hidden,), jnp.float32, 0.5, 1.5)
    params["bn_beta"] = 0.1 * jax.random.normal(kb, (hidden,), jnp.float32)
    params["bn_mean"] = 0.1 * jax.random.normal(km, (hidden,), jnp.float32)
    params["bn_var"] = jax.random.uniform(kv, (hidden,), jnp.float32, 0.5, 1.5)
    # Linear(hidden, input_size)   (self.lin — the one used in forward)
    kl = 1.0 / jnp.sqrt(hidden)
    key, k5, k6 = jax.random.split(key, 3)
    params["lin_w"] = jax.random.uniform(k5, (input_size, hidden), jnp.float32, -kl, kl)
    params["lin_b"] = jax.random.uniform(k6, (input_size,), jnp.float32, -kl, kl)
    # NOTE: lin1 / lin2 / batchNorm2 exist in __init__ but are unused in forward.
    return params


if __name__ == "__main__":
    # Module-consistent small shapes: input_size = HIGHEST-LOWEST+1 = 37,
    # 3 LSTM layers, reduced hidden size for a quick demo.
    INPUT_SIZE = 37
    HIDDEN = 128
    LAYERS = 3
    B, T = 2, 8

    key = jax.random.PRNGKey(0)
    key, kx = jax.random.split(key)
    params = make_params(key, INPUT_SIZE, HIDDEN, LAYERS)
    x = jax.random.normal(kx, (B, T, INPUT_SIZE), jnp.float32)

    fwd = jax.jit(functools.partial(network_forward, params))
    logp, (h_n, c_n) = fwd(x)
    jax.block_until_ready((logp, h_n, c_n))

    # Correctness check against the pure-JAX reference.  Tolerances account for
    # bf16 matmul operands (rounding applied at slightly different points in
    # the BN-folded head vs. the explicit-BN reference).
    logp_ref, (h_ref, c_ref) = network_forward_ref(params, x)
    assert logp.shape == (B, T, INPUT_SIZE)
    assert h_n.shape == (LAYERS, B, HIDDEN) and c_n.shape == (LAYERS, B, HIDDEN)
    assert jnp.allclose(h_n, h_ref, atol=5e-3, rtol=5e-3)
    assert jnp.allclose(c_n, c_ref, atol=5e-3, rtol=5e-3)
    assert jnp.allclose(logp, logp_ref, atol=2e-2, rtol=2e-2)

    print("KERNEL_OK")
</pallas_src>

<mosaic_0001>
module attributes {stable_mosaic.version = 11 : i64} {
  func.func @_proj_kernel(%arg0: i32, %arg1: memref<64x37xf32, #tpu.memory_space<vmem>>, %arg2: memref<37x512xbf16, #tpu.memory_space<vmem>>, %arg3: memref<1x512xf32, #tpu.memory_space<vmem>>, %arg4: memref<64x512xf32, #tpu.memory_space<vmem>>) attributes {dimension_semantics = [#tpu.dimension_semantics<parallel>], iteration_bounds = array<i64: 1>, scalar_prefetch = 0 : i64, scratch_operands = 0 : i64, tpu.core_type = #tpu.core_type<tc>, window_params = [{transform_indices = @transform_0, window_bounds = array<i64: 64, 37>}, {pipeline_mode = #tpu.pipeline_mode<synchronous>, transform_indices = @transform_1, window_bounds = array<i64: 37, 512>}, {pipeline_mode = #tpu.pipeline_mode<synchronous>, transform_indices = @transform_2, window_bounds = array<i64: 1, 512>}, {transform_indices = @transform_3, window_bounds = array<i64: 64, 512>}]} {
    %c0 = arith.constant 0 : index
    %c0_0 = arith.constant 0 : index
    %0 = vector.load %arg1[%c0, %c0_0] : memref<64x37xf32, #tpu.memory_space<vmem>>, vector<64x37xf32>
    %1 = arith.truncf %0 : vector<64x37xf32> to vector<64x37xbf16>
    %c0_1 = arith.constant 0 : index
    %c0_2 = arith.constant 0 : index
    %2 = vector.load %arg2[%c0_1, %c0_2] : memref<37x512xbf16, #tpu.memory_space<vmem>>, vector<37x512xbf16>
    %cst = arith.constant dense<0.000000e+00> : vector<64x512xf32>
    %3 = tpu.matmul %1, %2, %cst {dimension_numbers = #tpu.dot_dimension_numbers<[1], [0], [0], [1], [0, 0, 1, 1], [], []>} : vector<64x37xbf16>, vector<37x512xbf16>, vector<64x512xf32> -> vector<64x512xf32>
    %c0_3 = arith.constant 0 : index
    %c0_4 = arith.constant 0 : index
    %4 = vector.load %arg3[%c0_3, %c0_4] : memref<1x512xf32, #tpu.memory_space<vmem>>, vector<1x512xf32>
    %5 = vector.broadcast %4 : vector<1x512xf32> to vector<64x512xf32>
    %6 = arith.addf %3, %5 : vector<64x512xf32>
    %c0_5 = arith.constant 0 : index
    %c0_6 = arith.constant 0 : index
    %7 = vector.load %arg4[%c0_5, %c0_6] : memref<64x512xf32, #tpu.memory_space<vmem>>, vector<64x512xf32>
    tpu.vector_store %arg4[%c0_5, %c0_6], %6 {strides = array<i32>} : memref<64x512xf32, #tpu.memory_space<vmem>>, vector<64x512xf32>,
    return
  }
  func.func @transform_0(%arg0: i32) -> (i32, i32) {
    %c0_i32 = arith.constant 0 : i32
    %c0_i32_0 = arith.constant 0 : i32
    return %arg0, %c0_i32 : i32, i32
  }
  func.func @transform_1(%arg0: i32) -> (i32, i32) {
    %c0_i32 = arith.constant 0 : i32
    %c0_i32_0 = arith.constant 0 : i32
    %c0_i32_1 = arith.constant 0 : i32
    return %c0_i32, %c0_i32_0 : i32, i32
  }
  func.func @transform_2(%arg0: i32) -> (i32, i32) {
    %c0_i32 = arith.constant 0 : i32
    %c0_i32_0 = arith.constant 0 : i32
    %c0_i32_1 = arith.constant 0 : i32
    return %c0_i32, %c0_i32_0 : i32, i32
  }
  func.func @transform_3(%arg0: i32) -> (i32, i32) {
    %c0_i32 = arith.constant 0 : i32
    %c0_i32_0 = arith.constant 0 : i32
    return %arg0, %c0_i32 : i32, i32
  }
}

module attributes {stable_mosaic.version = 11 : i64} {
  func.func @_proj_kernel(%arg0: i32, %arg1: memref<64x128xf32, #tpu.memory_space<vmem>>, %arg2: memref<128x512xbf16, #tpu.memory_space<vmem>>, %arg3: memref<1x512xf32, #tpu.memory_space<vmem>>, %arg4: memref<64x512xf32, #tpu.memory_space<vmem>>) attributes {dimension_semantics = [#tpu.dimension_semantics<parallel>], iteration_bounds = array<i64: 1>, scalar_prefetch = 0 : i64, scratch_operands = 0 : i64, tpu.core_type = #tpu.core_type<tc>, window_params = [{transform_indices = @transform_0, window_bounds = array<i64: 64, 128>}, {pipeline_mode = #tpu.pipeline_mode<synchronous>, transform_indices = @transform_1, window_bounds = array<i64: 128, 512>}, {pipeline_mode = #tpu.pipeline_mode<synchronous>, transform_indices = @transform_2, window_bounds = array<i64: 1, 512>}, {transform_indices = @transform_3, window_bounds = array<i64: 64, 512>}]} {
    %c0 = arith.constant 0 : index
    %c0_0 = arith.constant 0 : index
    %0 = vector.load %arg1[%c0, %c0_0] : memref<64x128xf32, #tpu.memory_space<vmem>>, vector<64x128xf32>
    %1 = arith.truncf %0 : vector<64x128xf32> to vector<64x128xbf16>
    %c0_1 = arith.constant 0 : index
    %c0_2 = arith.constant 0 : index
    %2 = vector.load %arg2[%c0_1, %c0_2] : memref<128x512xbf16, #tpu.memory_space<vmem>>, vector<128x512xbf16>
    %cst = arith.constant dense<0.000000e+00> : vector<64x512xf32>
    %3 = tpu.matmul %1, %2, %cst {dimension_numbers = #tpu.dot_dimension_numbers<[1], [0], [0], [1], [0, 0, 1, 1], [], []>} : vector<64x128xbf16>, vector<128x512xbf16>, vector<64x512xf32> -> vector<64x512xf32>
    %c0_3 = arith.constant 0 : index
    %c0_4 = arith.constant 0 : index
    %4 = vector.load %arg3[%c0_3, %c0_4] : memref<1x512xf32, #tpu.memory_space<vmem>>, vector<1x512xf32>
    %5 = vector.broadcast %4 : vector<1x512xf32> to vector<64x512xf32>
    %6 = arith.addf %3, %5 : vector<64x512xf32>
    %c0_5 = arith.constant 0 : index
    %c0_6 = arith.constant 0 : index
    %7 = vector.load %arg4[%c0_5, %c0_6] : memref<64x512xf32, #tpu.memory_space<vmem>>, vector<64x512xf32>
    tpu.vector_store %arg4[%c0_5, %c0_6], %6 {strides = array<i32>} : memref<64x512xf32, #tpu.memory_space<vmem>>, vector<64x512xf32>,
    return
  }
  func.func @transform_0(%arg0: i32) -> (i32, i32) {
    %c0_i32 = arith.constant 0 : i32
    %c0_i32_0 = arith.constant 0 : i32
    return %arg0, %c0_i32 : i32, i32
  }
  func.func @transform_1(%arg0: i32) -> (i32, i32) {
    %c0_i32 = arith.constant 0 : i32
    %c0_i32_0 = arith.constant 0 : i32
    %c0_i32_1 = arith.constant 0 : i32
    return %c0_i32, %c0_i32_0 : i32, i32
  }
  func.func @transform_2(%arg0: i32) -> (i32, i32) {
    %c0_i32 = arith.constant 0 : i32
    %c0_i32_0 = arith.constant 0 : i32
    %c0_i32_1 = arith.constant 0 : i32
    return %c0_i32, %c0_i32_0 : i32, i32
  }
  func.func @transform_3(%arg0: i32) -> (i32, i32) {
    %c0_i32 = arith.constant 0 : i32
    %c0_i32_0 = arith.constant 0 : i32
    return %arg0, %c0_i32 : i32, i32
  }
}

module attributes {stable_mosaic.version = 11 : i64} {
  func.func @_lstm_recurrent_kernel(%arg0: i32, %arg1: memref<8x8x512xf32, #tpu.memory_space<vmem>>, %arg2: memref<128x512xbf16, #tpu.memory_space<vmem>>, %arg3: memref<8x128xf32, #tpu.memory_space<vmem>>, %arg4: memref<8x128xf32, #tpu.memory_space<vmem>>, %arg5: memref<8x8x128xf32, #tpu.memory_space<vmem>>, %arg6: memref<8x128xf32, #tpu.memory_space<vmem>>, %arg7: memref<8x128xf32, #tpu.memory_space<vmem>>, %arg8: memref<8x128xf32, #tpu.memory_space<vmem>>, %arg9: memref<8x128xf32, #tpu.memory_space<vmem>>) attributes {dimension_semantics = [#tpu.dimension_semantics<arbitrary>], iteration_bounds = array<i64: 1>, scalar_prefetch = 0 : i64, scratch_operands = 2 : i64, tpu.core_type = #tpu.core_type<tc>, window_params = [{transform_indices = @transform_0, window_bounds = array<i64: 8, 8, 512>}, {pipeline_mode = #tpu.pipeline_mode<synchronous>, transform_indices = @transform_1, window_bounds = array<i64: 128, 512>}, {pipeline_mode = #tpu.pipeline_mode<synchronous>, transform_indices = @transform_2, window_bounds = array<i64: 8, 128>}, {pipeline_mode = #tpu.pipeline_mode<synchronous>, transform_indices = @transform_3, window_bounds = array<i64: 8, 128>}, {transform_indices = @transform_4, window_bounds = array<i64: 8, 8, 128>}, {pipeline_mode = #tpu.pipeline_mode<synchronous>, transform_indices = @transform_5, window_bounds = array<i64: 8, 128>}, {pipeline_mode = #tpu.pipeline_mode<synchronous>, transform_indices = @transform_6, window_bounds = array<i64: 8, 128>}]} {
    %c0_i32 = arith.constant 0 : i32
    %0 = arith.cmpi eq, %arg0, %c0_i32 : i32
    %1 = arith.extui %0 : i1 to i32
    %c0_i32_0 = arith.constant 0 : i32
    %2 = arith.cmpi ne, %1, %c0_i32_0 : i32
    scf.if %2 {
      %c0_98 = arith.constant 0 : index
      %c0_99 = arith.constant 0 : index
      %282 = vector.load %arg3[%c0_98, %c0_99] : memref<8x128xf32, #tpu.memory_space<vmem>>, vector<8x128xf32>
      %c0_100 = arith.constant 0 : index
      %c0_101 = arith.constant 0 : index
      %283 = vector.load %arg8[%c0_100, %c0_101] : memref<8x128xf32, #tpu.memory_space<vmem>>, vector<8x128xf32>
      tpu.vector_store %arg8[%c0_100, %c0_101], %282 {strides = array<i32>} : memref<8x128xf32, #tpu.memory_space<vmem>>, vector<8x128xf32>,
      %c0_102 = arith.constant 0 : index
      %c0_103 = arith.constant 0 : index
      %284 = vector.load %arg4[%c0_102, %c0_103] : memref<8x128xf32, #tpu.memory_space<vmem>>, vector<8x128xf32>
      %c0_104 = arith.constant 0 : index
      %c0_105 = arith.constant 0 : index
      %285 = vector.load %arg9[%c0_104, %c0_105] : memref<8x128xf32, #tpu.memory_space<vmem>>, vector<8x128xf32>
      tpu.vector_store %arg9[%c0_104, %c0_105], %284 {strides = array<i32>} : memref<8x128xf32, #tpu.memory_space<vmem>>, vector<8x128xf32>,
    } else {
    }
    %c0 = arith.constant 0 : index
    %c0_1 = arith.constant 0 : index
    %3 = vector.load %arg8[%c0, %c0_1] : memref<8x128xf32, #tpu.memory_space<vmem>>, vector<8x128xf32>
    %c0_2 = arith.constant 0 : index
    %c0_3 = arith.constant 0 : index
    %4 = vector.load %arg9[%c0_2, %c0_3] : memref<8x128xf32, #tpu.memory_space<vmem>>, vector<8x128xf32>
    %5 = arith.truncf %3 : vector<8x128xf32> to vector<8x128xbf16>
    %c0_4 = arith.constant 0 : index
    %c0_5 = arith.constant 0 : index
    %6 = vector.load %arg2[%c0_4, %c0_5] : memref<128x512xbf16, #tpu.memory_space<vmem>>, vector<128x512xbf16>
    %cst = arith.constant dense<0.000000e+00> : vector<8x512xf32>
    %7 = tpu.matmul %5, %6, %cst {dimension_numbers = #tpu.dot_dimension_numbers<[1], [0], [0], [1], [0, 0, 1, 1], [], []>} : vector<8x128xbf16>, vector<128x512xbf16>, vector<8x512xf32> -> vector<8x512xf32>
    %c0_6 = arith.constant 0 : index
    %c0_7 = arith.constant 0 : index
    %c0_8 = arith.constant 0 : index
    %8 = vector.load %arg1[%c0_6, %c0_7, %c0_8] : memref<8x8x512xf32, #tpu.memory_space<vmem>>, vector<1x8x512xf32>
    %9 = vector.shape_cast %8 : vector<1x8x512xf32> to vector<8x512xf32>
    %10 = arith.addf %7, %9 : vector<8x512xf32>
    %11 = vector.extract_strided_slice %10 {offsets = [0, 0], sizes = [8, 128], strides = [1, 1]} : vector<8x512xf32> to vector<8x128xf32>
    %12 = arith.negf %11 : vector<8x128xf32>
    %13 = math.exp %12 : vector<8x128xf32>
    %cst_9 = arith.constant 1.000000e+00 : f32
    %14 = vector.broadcast %cst_9 : f32 to vector<8x128xf32>
    %15 = arith.addf %14, %13 : vector<8x128xf32>
    %16 = arith.divf %14, %15 : vector<8x128xf32>
    %17 = vector.extract_strided_slice %10 {offsets = [0, 128], sizes = [8, 128], strides = [1, 1]} : vector<8x512xf32> to vector<8x128xf32>
    %18 = arith.negf %17 : vector<8x128xf32>
    %19 = math.exp %18 : vector<8x128xf32>
    %cst_10 = arith.constant 1.000000e+00 : f32
    %20 = vector.broadcast %cst_10 : f32 to vector<8x128xf32>
    %21 = arith.addf %20, %19 : vector<8x128xf32>
    %22 = arith.divf %20, %21 : vector<8x128xf32>
    %23 = vector.extract_strided_slice %10 {offsets = [0, 256], sizes = [8, 128], strides = [1, 1]} : vector<8x512xf32> to vector<8x128xf32>
    %24 = math.tanh %23 : vector<8x128xf32>
    %25 = vector.extract_strided_slice %10 {offsets = [0, 384], sizes = [8, 128], strides = [1, 1]} : vector<8x512xf32> to vector<8x128xf32>
    %26 = arith.negf %25 : vector<8x128xf32>
    %27 = math.exp %26 : vector<8x128xf32>
    %cst_11 = arith.constant 1.000000e+00 : f32
    %28 = vector.broadcast %cst_11 : f32 to vector<8x128xf32>
    %29 = arith.addf %28, %27 : vector<8x128xf32>
    %30 = arith.divf %28, %29 : vector<8x128xf32>
    %31 = arith.mulf %22, %4 : vector<8x128xf32>
    %32 = arith.mulf %16, %24 : vector<8x128xf32>
    %33 = arith.addf %31, %32 : vector<8x128xf32>
    %34 = math.tanh %33 : vector<8x128xf32>
    %35 = arith.mulf %30, %34 : vector<8x128xf32>
    %c0_12 = arith.constant 0 : index
    %c0_13 = arith.constant 0 : index
    %c0_14 = arith.constant 0 : index
    %36 = vector.load %arg5[%c0_12, %c0_13, %c0_14] : memref<8x8x128xf32, #tpu.memory_space<vmem>>, vector<1x8x128xf32>
    %37 = vector.shape_cast %36 : vector<1x8x128xf32> to vector<8x128xf32>
    %38 = vector.shape_cast %35 : vector<8x128xf32> to vector<1x8x128xf32>
    tpu.vector_store %arg5[%c0_12, %c0_13, %c0_14], %38 {strides = array<i32>} : memref<8x8x128xf32, #tpu.memory_space<vmem>>, vector<1x8x128xf32>,
    %39 = arith.truncf %35 : vector<8x128xf32> to vector<8x128xbf16>
    %c0_15 = arith.constant 0 : index
    %c0_16 = arith.constant 0 : index
    %40 = vector.load %arg2[%c0_15, %c0_16] : memref<128x512xbf16, #tpu.memory_space<vmem>>, vector<128x512xbf16>
    %cst_17 = arith.constant dense<0.000000e+00> : vector<8x512xf32>
    %41 = tpu.matmul %39, %40, %cst_17 {dimension_numbers = #tpu.dot_dimension_numbers<[1], [0], [0], [1], [0, 0, 1, 1], [], []>} : vector<8x128xbf16>, vector<128x512xbf16>, vector<8x512xf32> -> vector<8x512xf32>
    %c1 = arith.constant 1 : index
    %c0_18 = arith.constant 0 : index
    %c0_19 = arith.constant 0 : index
    %42 = vector.load %arg1[%c1, %c0_18, %c0_19] : memref<8x8x512xf32, #tpu.memory_space<vmem>>, vector<1x8x512xf32>
    %43 = vector.shape_cast %42 : vector<1x8x512xf32> to vector<8x512xf32>
    %44 = arith.addf %41, %43 : vector<8x512xf32>
    %45 = vector.extract_strided_slice %44 {offsets = [0, 0], sizes = [8, 128], strides = [1, 1]} : vector<8x512xf32> to vector<8x128xf32>
    %46 = arith.negf %45 : vector<8x128xf32>
    %47 = math.exp %46 : vector<8x128xf32>
    %cst_20 = arith.constant 1.000000e+00 : f32
    %48 = vector.broadcast %cst_20 : f32 to vector<8x128xf32>
    %49 = arith.addf %48, %47 : vector<8x128xf32>
    %50 = arith.divf %48, %49 : vector<8x128xf32>
    %51 = vector.extract_strided_slice %44 {offsets = [0, 128], sizes = [8, 128], strides = [1, 1]} : vector<8x512xf32> to vector<8x128xf32>
    %52 = arith.negf %51 : vector<8x128xf32>
    %53 = math.exp %52 : vector<8x128xf32>
    %cst_21 = arith.constant 1.000000e+00 : f32
    %54 = vector.broadcast %cst_21 : f32 to vector<8x128xf32>
    %55 = arith.addf %54, %53 : vector<8x128xf32>
    %56 = arith.divf %54, %55 : vector<8x128xf32>
    %57 = vector.extract_strided_slice %44 {offsets = [0, 256], sizes = [8, 128], strides = [1, 1]} : vector<8x512xf32> to vector<8x128xf32>
    %58 = math.tanh %57 : vector<8x128xf32>
    %59 = vector.extract_strided_slice %44 {offsets = [0, 384], sizes = [8, 128], strides = [1, 1]} : vector<8x512xf32> to vector<8x128xf32>
    %60 = arith.negf %59 : vector<8x128xf32>
    %61 = math.exp %60 : vector<8x128xf32>
    %cst_22 = arith.constant 1.000000e+00 : f32
    %62 = vector.broadcast %cst_22 : f32 to vector<8x128xf32>
    %63 = arith.addf %62, %61 : vector<8x128xf32>
    %64 = arith.divf %62, %63 : vector<8x128xf32>
    %65 = arith.mulf %56, %33 : vector<8x128xf32>
    %66 = arith.mulf %50, %58 : vector<8x128xf32>
    %67 = arith.addf %65, %66 : vector<8x128xf32>
    %68 = math.tanh %67 : vector<8x128xf32>
    %69 = arith.mulf %64, %68 : vector<8x128xf32>
    %c1_23 = arith.constant 1 : index
    %c0_24 = arith.constant 0 : index
    %c0_25 = arith.constant 0 : index
    %70 = vector.load %arg5[%c1_23, %c0_24, %c0_25] : memref<8x8x128xf32, #tpu.memory_space<vmem>>, vector<1x8x128xf32>
    %71 = vector.shape_cast %70 : vector<1x8x128xf32> to vector<8x128xf32>
    %72 = vector.shape_cast %69 : vector<8x128xf32> to vector<1x8x128xf32>
    tpu.vector_store %arg5[%c1_23, %c0_24, %c0_25], %72 {strides = array<i32>} : memref<8x8x128xf32, #tpu.memory_space<vmem>>, vector<1x8x128xf32>,
    %73 = arith.truncf %69 : vector<8x128xf32> to vector<8x128xbf16>
    %c0_26 = arith.constant 0 : index
    %c0_27 = arith.constant 0 : index
    %74 = vector.load %arg2[%c0_26, %c0_27] : memref<128x512xbf16, #tpu.memory_space<vmem>>, vector<128x512xbf16>
    %cst_28 = arith.constant dense<0.000000e+00> : vector<8x512xf32>
    %75 = tpu.matmul %73, %74, %cst_28 {dimension_numbers = #tpu.dot_dimension_numbers<[1], [0], [0], [1], [0, 0, 1, 1], [], []>} : vector<8x128xbf16>, vector<128x512xbf16>, vector<8x512xf32> -> vector<8x512xf32>
    %c2 = arith.constant 2 : index
    %c0_29 = arith.constant 0 : index
    %c0_30 = arith.constant 0 : index
    %76 = vector.load %arg1[%c2, %c0_29, %c0_30] : memref<8x8x512xf32, #tpu.memory_space<vmem>>, vector<1x8x512xf32>
    %77 = vector.shape_cast %76 : vector<1x8x512xf32> to vector<8x512xf32>
    %78 = arith.addf %75, %77 : vector<8x512xf32>
    %79 = vector.extract_strided_slice %78 {offsets = [0, 0], sizes = [8, 128], strides = [1, 1]} : vector<8x512xf32> to vector<8x128xf32>
    %80 = arith.negf %79 : vector<8x128xf32>
    %81 = math.exp %80 : vector<8x128xf32>
    %cst_31 = arith.constant 1.000000e+00 : f32
    %82 = vector.broadcast %cst_31 : f32 to vector<8x128xf32>
    %83 = arith.addf %82, %81 : vector<8x128xf32>
    %84 = arith.divf %82, %83 : vector<8x128xf32>
    %85 = vector.extract_strided_slice %78 {offsets = [0, 128], sizes = [8, 128], strides = [1, 1]} : vector<8x512xf32> to vector<8x128xf32>
    %86 = arith.negf %85 : vector<8x128xf32>
    %87 = math.exp %86 : vector<8x128xf32>
    %cst_32 = arith.constant 1.000000e+00 : f32
    %88 = vector.broadcast %cst_32 : f32 to vector<8x128xf32>
    %89 = arith.addf %88, %87 : vector<8x128xf32>
    %90 = arith.divf %88, %89 : vector<8x128xf32>
    %91 = vector.extract_strided_slice %78 {offsets = [0, 256], sizes = [8, 128], strides = [1, 1]} : vector<8x512xf32> to vector<8x128xf32>
    %92 = math.tanh %91 : vector<8x128xf32>
    %93 = vector.extract_strided_slice %78 {offsets = [0, 384], sizes = [8, 128], strides = [1, 1]} : vector<8x512xf32> to vector<8x128xf32>
    %94 = arith.negf %93 : vector<8x128xf32>
    %95 = math.exp %94 : vector<8x128xf32>
    %cst_33 = arith.constant 1.000000e+00 : f32
    %96 = vector.broadcast %cst_33 : f32 to vector<8x128xf32>
    %97 = arith.addf %96, %95 : vector<8x128xf32>
    %98 = arith.divf %96, %97 : vector<8x128xf32>
    %99 = arith.mulf %90, %67 : vector<8x128xf32>
    %100 = arith.mulf %84, %92 : vector<8x128xf32>
    %101 = arith.addf %99, %100 : vector<8x128xf32>
    %102 = math.tanh %101 : vector<8x128xf32>
    %103 = arith.mulf %98, %102 : vector<8x128xf32>
    %c2_34 = arith.constant 2 : index
    %c0_35 = arith.constant 0 : index
    %c0_36 = arith.constant 0 : index
    %104 = vector.load %arg5[%c2_34, %c0_35, %c0_36] : memref<8x8x128xf32, #tpu.memory_space<vmem>>, vector<1x8x128xf32>
    %105 = vector.shape_cast %104 : vector<1x8x128xf32> to vector<8x128xf32>
    %106 = vector.shape_cast %103 : vector<8x128xf32> to vector<1x8x128xf32>
    tpu.vector_store %arg5[%c2_34, %c0_35, %c0_36], %106 {strides = array<i32>} : memref<8x8x128xf32, #tpu.memory_space<vmem>>, vector<1x8x128xf32>,
    %107 = arith.truncf %103 : vector<8x128xf32> to vector<8x128xbf16>
    %c0_37 = arith.constant 0 : index
    %c0_38 = arith.constant 0 : index
    %108 = vector.load %arg2[%c0_37, %c0_38] : memref<128x512xbf16, #tpu.memory_space<vmem>>, vector<128x512xbf16>
    %cst_39 = arith.constant dense<0.000000e+00> : vector<8x512xf32>
    %109 = tpu.matmul %107, %108, %cst_39 {dimension_numbers = #tpu.dot_dimension_numbers<[1], [0], [0], [1], [0, 0, 1, 1], [], []>} : vector<8x128xbf16>, vector<128x512xbf16>, vector<8x512xf32> -> vector<8x512xf32>
    %c3 = arith.constant 3 : index
    %c0_40 = arith.constant 0 : index
    %c0_41 = arith.constant 0 : index
    %110 = vector.load %arg1[%c3, %c0_40, %c0_41] : memref<8x8x512xf32, #tpu.memory_space<vmem>>, vector<1x8x512xf32>
    %111 = vector.shape_cast %110 : vector<1x8x512xf32> to vector<8x512xf32>
    %112 = arith.addf %109, %111 : vector<8x512xf32>
    %113 = vector.extract_strided_slice %112 {offsets = [0, 0], sizes = [8, 128], strides = [1, 1]} : vector<8x512xf32> to vector<8x128xf32>
    %114 = arith.negf %113 : vector<8x128xf32>
    %115 = math.exp %114 : vector<8x128xf32>
    %cst_42 = arith.constant 1.000000e+00 : f32
    %116 = vector.broadcast %cst_42 : f32 to vector<8x128xf32>
    %117 = arith.addf %116, %115 : vector<8x128xf32>
    %118 = arith.divf %116, %117 : vector<8x128xf32>
    %119 = vector.extract_strided_slice %112 {offsets = [0, 128], sizes = [8, 128], strides = [1, 1]} : vector<8x512xf32> to vector<8x128xf32>
    %120 = arith.negf %119 : vector<8x128xf32>
    %121 = math.exp %120 : vector<8x128xf32>
    %cst_43 = arith.constant 1.000000e+00 : f32
    %122 = vector.broadcast %cst_43 : f32 to vector<8x128xf32>
    %123 = arith.addf %122, %121 : vector<8x128xf32>
    %124 = arith.divf %122, %123 : vector<8x128xf32>
    %125 = vector.extract_strided_slice %112 {offsets = [0, 256], sizes = [8, 128], strides = [1, 1]} : vector<8x512xf32> to vector<8x128xf32>
    %126 = math.tanh %125 : vector<8x128xf32>
    %127 = vector.extract_strided_slice %112 {offsets = [0, 384], sizes = [8, 128], strides = [1, 1]} : vector<8x512xf32> to vector<8x128xf32>
    %128 = arith.negf %127 : vector<8x128xf32>
    %129 = math.exp %128 : vector<8x128xf32>
    %cst_44 = arith.constant 1.000000e+00 : f32
    %130 = vector.broadcast %cst_44 : f32 to vector<8x128xf32>
    %131 = arith.addf %130, %129 : vector<8x128xf32>
    %132 = arith.divf %130, %131 : vector<8x128xf32>
    %133 = arith.mulf %124, %101 : vector<8x128xf32>
    %134 = arith.mulf %118, %126 : vector<8x128xf32>
    %135 = arith.addf %133, %134 : vector<8x128xf32>
    %136 = math.tanh %135 : vector<8x128xf32>
    %137 = arith.mulf %132, %136 : vector<8x128xf32>
    %c3_45 = arith.constant 3 : index
    %c0_46 = arith.constant 0 : index
    %c0_47 = arith.constant 0 : index
    %138 = vector.load %arg5[%c3_45, %c0_46, %c0_47] : memref<8x8x128xf32, #tpu.memory_space<vmem>>, vector<1x8x128xf32>
    %139 = vector.shape_cast %138 : vector<1x8x128xf32> to vector<8x128xf32>
    %140 = vector.shape_cast %137 : vector<8x128xf32> to vector<1x8x128xf32>
    tpu.vector_store %arg5[%c3_45, %c0_46, %c0_47], %140 {strides = array<i32>} : memref<8x8x128xf32, #tpu.memory_space<vmem>>, vector<1x8x128xf32>,
    %141 = arith.truncf %137 : vector<8x128xf32> to vector<8x128xbf16>
    %c0_48 = arith.constant 0 : index
    %c0_49 = arith.constant 0 : index
    %142 = vector.load %arg2[%c0_48, %c0_49] : memref<128x512xbf16, #tpu.memory_space<vmem>>, vector<128x512xbf16>
    %cst_50 = arith.constant dense<0.000000e+00> : vector<8x512xf32>
    %143 = tpu.matmul %141, %142, %cst_50 {dimension_numbers = #tpu.dot_dimension_numbers<[1], [0], [0], [1], [0, 0, 1, 1], [], []>} : vector<8x128xbf16>, vector<128x512xbf16>, vector<8x512xf32> -> vector<8x512xf32>
    %c4 = arith.constant 4 : index
    %c0_51 = arith.constant 0 : index
    %c0_52 = arith.constant 0 : index
    %144 = vector.load %arg1[%c4, %c0_51, %c0_52] : memref<8x8x512xf32, #tpu.memory_space<vmem>>, vector<1x8x512xf32>
    %145 = vector.shape_cast %144 : vector<1x8x512xf32> to vector<8x512xf32>
    %146 = arith.addf %143, %145 : vector<8x512xf32>
    %147 = vector.extract_strided_slice %146 {offsets = [0, 0], sizes = [8, 128], strides = [1, 1]} : vector<8x512xf32> to vector<8x128xf32>
    %148 = arith.negf %147 : vector<8x128xf32>
    %149 = math.exp %148 : vector<8x128xf32>
    %cst_53 = arith.constant 1.000000e+00 : f32
    %150 = vector.broadcast %cst_53 : f32 to vector<8x128xf32>
    %151 = arith.addf %150, %149 : vector<8x128xf32>
    %152 = arith.divf %150, %151 : vector<8x128xf32>
    %153 = vector.extract_strided_slice %146 {offsets = [0, 128], sizes = [8, 128], strides = [1, 1]} : vector<8x512xf32> to vector<8x128xf32>
    %154 = arith.negf %153 : vector<8x128xf32>
    %155 = math.exp %154 : vector<8x128xf32>
    %cst_54 = arith.constant 1.000000e+00 : f32
    %156 = vector.broadcast %cst_54 : f32 to vector<8x128xf32>
    %157 = arith.addf %156, %155 : vector<8x128xf32>
    %158 = arith.divf %156, %157 : vector<8x128xf32>
    %159 = vector.extract_strided_slice %146 {offsets = [0, 256], sizes = [8, 128], strides = [1, 1]} : vector<8x512xf32> to vector<8x128xf32>
    %160 = math.tanh %159 : vector<8x128xf32>
    %161 = vector.extract_strided_slice %146 {offsets = [0, 384], sizes = [8, 128], strides = [1, 1]} : vector<8x512xf32> to vector<8x128xf32>
    %162 = arith.negf %161 : vector<8x128xf32>
    %163 = math.exp %162 : vector<8x128xf32>
    %cst_55 = arith.constant 1.000000e+00 : f32
    %164 = vector.broadcast %cst_55 : f32 to vector<8x128xf32>
    %165 = arith.addf %164, %163 : vector<8x128xf32>
    %166 = arith.divf %164, %165 : vector<8x128xf32>
    %167 = arith.mulf %158, %135 : vector<8x128xf32>
    %168 = arith.mulf %152, %160 : vector<8x128xf32>
    %169 = arith.addf %167, %168 : vector<8x128xf32>
    %170 = math.tanh %169 : vector<8x128xf32>
    %171 = arith.mulf %166, %170 : vector<8x128xf32>
    %c4_56 = arith.constant 4 : index
    %c0_57 = arith.constant 0 : index
    %c0_58 = arith.constant 0 : index
    %172 = vector.load %arg5[%c4_56, %c0_57, %c0_58] : memref<8x8x128xf32, #tpu.memory_space<vmem>>, vector<1x8x128xf32>
    %173 = vector.shape_cast %172 : vector<1x8x128xf32> to vector<8x128xf32>
    %174 = vector.shape_cast %171 : vector<8x128xf32> to vector<1x8x128xf32>
    tpu.vector_store %arg5[%c4_56, %c0_57, %c0_58], %174 {strides = array<i32>} : memref<8x8x128xf32, #tpu.memory_space<vmem>>, vector<1x8x128xf32>,
    %175 = arith.truncf %171 : vector<8x128xf32> to vector<8x128xbf16>
    %c0_59 = arith.constant 0 : index
    %c0_60 = arith.constant 0 : index
    %176 = vector.load %arg2[%c0_59, %c0_60] : memref<128x512xbf16, #tpu.memory_space<vmem>>, vector<128x512xbf16>
    %cst_61 = arith.constant dense<0.000000e+00> : vector<8x512xf32>
    %177 = tpu.matmul %175, %176, %cst_61 {dimension_numbers = #tpu.dot_dimension_numbers<[1], [0], [0], [1], [0, 0, 1, 1], [], []>} : vector<8x128xbf16>, vector<128x512xbf16>, vector<8x512xf32> -> vector<8x512xf32>
    %c5 = arith.constant 5 : index
    %c0_62 = arith.constant 0 : index
    %c0_63 = arith.constant 0 : index
    %178 = vector.load %arg1[%c5, %c0_62, %c0_63] : memref<8x8x512xf32, #tpu.memory_space<vmem>>, vector<1x8x512xf32>
    %179 = vector.shape_cast %178 : vector<1x8x512xf32> to vector<8x512xf32>
    %180 = arith.addf %177, %179 : vector<8x512xf32>
    %181 = vector.extract_strided_slice %180 {offsets = [0, 0], sizes = [8, 128], strides = [1, 1]} : vector<8x512xf32> to vector<8x128xf32>
    %182 = arith.negf %181 : vector<8x128xf32>
    %183 = math.exp %182 : vector<8x128xf32>
    %cst_64 = arith.constant 1.000000e+00 : f32
    %184 = vector.broadcast %cst_64 : f32 to vector<8x128xf32>
    %185 = arith.addf %184, %183 : vector<8x128xf32>
    %186 = arith.divf %184, %185 : vector<8x128xf32>
    %187 = vector.extract_strided_slice %180 {offsets = [0, 128], sizes = [8, 128], strides = [1, 1]} : vector<8x512xf32> to vector<8x128xf32>
    %188 = arith.negf %187 : vector<8x128xf32>
    %189 = math.exp %188 : vector<8x128xf32>
    %cst_65 = arith.constant 1.000000e+00 : f32
    %190 = vector.broadcast %cst_65 : f32 to vector<8x128xf32>
    %191 = arith.addf %190, %189 : vector<8x128xf32>
    %192 = arith.divf %190, %191 : vector<8x128xf32>
    %193 = vector.extract_strided_slice %180 {offsets = [0, 256], sizes = [8, 128], strides = [1, 1]} : vector<8x512xf32> to vector<8x128xf32>
    %194 = math.tanh %193 : vector<8x128xf32>
    %195 = vector.extract_strided_slice %180 {offsets = [0, 384], sizes = [8, 128], strides = [1, 1]} : vector<8x512xf32> to vector<8x128xf32>
    %196 = arith.negf %195 : vector<8x128xf32>
    %197 = math.exp %196 : vector<8x128xf32>
    %cst_66 = arith.constant 1.000000e+00 : f32
    %198 = vector.broadcast %cst_66 : f32 to vector<8x128xf32>
    %199 = arith.addf %198, %197 : vector<8x128xf32>
    %200 = arith.divf %198, %199 : vector<8x128xf32>
    %201 = arith.mulf %192, %169 : vector<8x128xf32>
    %202 = arith.mulf %186, %194 : vector<8x128xf32>
    %203 = arith.addf %201, %202 : vector<8x128xf32>
    %204 = math.tanh %203 : vector<8x128xf32>
    %205 = arith.mulf %200, %204 : vector<8x128xf32>
    %c5_67 = arith.constant 5 : index
    %c0_68 = arith.constant 0 : index
    %c0_69 = arith.constant 0 : index
    %206 = vector.load %arg5[%c5_67, %c0_68, %c0_69] : memref<8x8x128xf32, #tpu.memory_space<vmem>>, vector<1x8x128xf32>
    %207 = vector.shape_cast %206 : vector<1x8x128xf32> to vector<8x128xf32>
    %208 = vector.shape_cast %205 : vector<8x128xf32> to vector<1x8x128xf32>
    tpu.vector_store %arg5[%c5_67, %c0_68, %c0_69], %208 {strides = array<i32>} : memref<8x8x128xf32, #tpu.memory_space<vmem>>, vector<1x8x128xf32>,
    %209 = arith.truncf %205 : vector<8x128xf32> to vector<8x128xbf16>
    %c0_70 = arith.constant 0 : index
    %c0_71 = arith.constant 0 : index
    %210 = vector.load %arg2[%c0_70, %c0_71] : memref<128x512xbf16, #tpu.memory_space<vmem>>, vector<128x512xbf16>
    %cst_72 = arith.constant dense<0.000000e+00> : vector<8x512xf32>
    %211 = tpu.matmul %209, %210, %cst_72 {dimension_numbers = #tpu.dot_dimension_numbers<[1], [0], [0], [1], [0, 0, 1, 1], [], []>} : vector<8x128xbf16>, vector<128x512xbf16>, vector<8x512xf32> -> vector<8x512xf32>
    %c6 = arith.constant 6 : index
    %c0_73 = arith.constant 0 : index
    %c0_74 = arith.constant 0 : index
    %212 = vector.load %arg1[%c6, %c0_73, %c0_74] : memref<8x8x512xf32, #tpu.memory_space<vmem>>, vector<1x8x512xf32>
    %213 = vector.shape_cast %212 : vector<1x8x512xf32> to vector<8x512xf32>
    %214 = arith.addf %211, %213 : vector<8x512xf32>
    %215 = vector.extract_strided_slice %214 {offsets = [0, 0], sizes = [8, 128], strides = [1, 1]} : vector<8x512xf32> to vector<8x128xf32>
    %216 = arith.negf %215 : vector<8x128xf32>
    %217 = math.exp %216 : vector<8x128xf32>
    %cst_75 = arith.constant 1.000000e+00 : f32
    %218 = vector.broadcast %cst_75 : f32 to vector<8x128xf32>
    %219 = arith.addf %218, %217 : vector<8x128xf32>
    %220 = arith.divf %218, %219 : vector<8x128xf32>
    %221 = vector.extract_strided_slice %214 {offsets = [0, 128], sizes = [8, 128], strides = [1, 1]} : vector<8x512xf32> to vector<8x128xf32>
    %222 = arith.negf %221 : vector<8x128xf32>
    %223 = math.exp %222 : vector<8x128xf32>
    %cst_76 = arith.constant 1.000000e+00 : f32
    %224 = vector.broadcast %cst_76 : f32 to vector<8x128xf32>
    %225 = arith.addf %224, %223 : vector<8x128xf32>
    %226 = arith.divf %224, %225 : vector<8x128xf32>
    %227 = vector.extract_strided_slice %214 {offsets = [0, 256], sizes = [8, 128], strides = [1, 1]} : vector<8x512xf32> to vector<8x128xf32>
    %228 = math.tanh %227 : vector<8x128xf32>
    %229 = vector.extract_strided_slice %214 {offsets = [0, 384], sizes = [8, 128], strides = [1, 1]} : vector<8x512xf32> to vector<8x128xf32>
    %230 = arith.negf %229 : vector<8x128xf32>
    %231 = math.exp %230 : vector<8x128xf32>
    %cst_77 = arith.constant 1.000000e+00 : f32
    %232 = vector.broadcast %cst_77 : f32 to vector<8x128xf32>
    %233 = arith.addf %232, %231 : vector<8x128xf32>
    %234 = arith.divf %232, %233 : vector<8x128xf32>
    %235 = arith.mulf %226, %203 : vector<8x128xf32>
    %236 = arith.mulf %220, %228 : vector<8x128xf32>
    %237 = arith.addf %235, %236 : vector<8x128xf32>
    %238 = math.tanh %237 : vector<8x128xf32>
    %239 = arith.mulf %234, %238 : vector<8x128xf32>
    %c6_78 = arith.constant 6 : index
    %c0_79 = arith.constant 0 : index
    %c0_80 = arith.constant 0 : index
    %240 = vector.load %arg5[%c6_78, %c0_79, %c0_80] : memref<8x8x128xf32, #tpu.memory_space<vmem>>, vector<1x8x128xf32>
    %241 = vector.shape_cast %240 : vector<1x8x128xf32> to vector<8x128xf32>
    %242 = vector.shape_cast %239 : vector<8x128xf32> to vector<1x8x128xf32>
    tpu.vector_store %arg5[%c6_78, %c0_79, %c0_80], %242 {strides = array<i32>} : memref<8x8x128xf32, #tpu.memory_space<vmem>>, vector<1x8x128xf32>,
    %243 = arith.truncf %239 : vector<8x128xf32> to vector<8x128xbf16>
    %c0_81 = arith.constant 0 : index
    %c0_82 = arith.constant 0 : index
    %244 = vector.load %arg2[%c0_81, %c0_82] : memref<128x512xbf16, #tpu.memory_space<vmem>>, vector<128x512xbf16>
    %cst_83 = arith.constant dense<0.000000e+00> : vector<8x512xf32>
    %245 = tpu.matmul %243, %244, %cst_83 {dimension_numbers = #tpu.dot_dimension_numbers<[1], [0], [0], [1], [0, 0, 1, 1], [], []>} : vector<8x128xbf16>, vector<128x512xbf16>, vector<8x512xf32> -> vector<8x512xf32>
    %c7 = arith.constant 7 : index
    %c0_84 = arith.constant 0 : index
    %c0_85 = arith.constant 0 : index
    %246 = vector.load %arg1[%c7, %c0_84, %c0_85] : memref<8x8x512xf32, #tpu.memory_space<vmem>>, vector<1x8x512xf32>
    %247 = vector.shape_cast %246 : vector<1x8x512xf32> to vector<8x512xf32>
    %248 = arith.addf %245, %247 : vector<8x512xf32>
    %249 = vector.extract_strided_slice %248 {offsets = [0, 0], sizes = [8, 128], strides = [1, 1]} : vector<8x512xf32> to vector<8x128xf32>
    %250 = arith.negf %249 : vector<8x128xf32>
    %251 = math.exp %250 : vector<8x128xf32>
    %cst_86 = arith.constant 1.000000e+00 : f32
    %252 = vector.broadcast %cst_86 : f32 to vector<8x128xf32>
    %253 = arith.addf %252, %251 : vector<8x128xf32>
    %254 = arith.divf %252, %253 : vector<8x128xf32>
    %255 = vector.extract_strided_slice %248 {offsets = [0, 128], sizes = [8, 128], strides = [1, 1]} : vector<8x512xf32> to vector<8x128xf32>
    %256 = arith.negf %255 : vector<8x128xf32>
    %257 = math.exp %256 : vector<8x128xf32>
    %cst_87 = arith.constant 1.000000e+00 : f32
    %258 = vector.broadcast %cst_87 : f32 to vector<8x128xf32>
    %259 = arith.addf %258, %257 : vector<8x128xf32>
    %260 = arith.divf %258, %259 : vector<8x128xf32>
    %261 = vector.extract_strided_slice %248 {offsets = [0, 256], sizes = [8, 128], strides = [1, 1]} : vector<8x512xf32> to vector<8x128xf32>
    %262 = math.tanh %261 : vector<8x128xf32>
    %263 = vector.extract_strided_slice %248 {offsets = [0, 384], sizes = [8, 128], strides = [1, 1]} : vector<8x512xf32> to vector<8x128xf32>
    %264 = arith.negf %263 : vector<8x128xf32>
    %265 = math.exp %264 : vector<8x128xf32>
    %cst_88 = arith.constant 1.000000e+00 : f32
    %266 = vector.broadcast %cst_88 : f32 to vector<8x128xf32>
    %267 = arith.addf %266, %265 : vector<8x128xf32>
    %268 = arith.divf %266, %267 : vector<8x128xf32>
    %269 = arith.mulf %260, %237 : vector<8x128xf32>
    %270 = arith.mulf %254, %262 : vector<8x128xf32>
    %271 = arith.addf %269, %270 : vector<8x128xf32>
    %272 = math.tanh %271 : vector<8x128xf32>
    %273 = arith.mulf %268, %272 : vector<8x128xf32>
    %c7_89 = arith.constant 7 : index
    %c0_90 = arith.constant 0 : index
    %c0_91 = arith.constant 0 : index
    %274 = vector.load %arg5[%c7_89, %c0_90, %c0_91] : memref<8x8x128xf32, #tpu.memory_space<vmem>>, vector<1x8x128xf32>
    %275 = vector.shape_cast %274 : vector<1x8x128xf32> to vector<8x128xf32>
    %276 = vector.shape_cast %273 : vector<8x128xf32> to vector<1x8x128xf32>
    tpu.vector_store %arg5[%c7_89, %c0_90, %c0_91], %276 {strides = array<i32>} : memref<8x8x128xf32, #tpu.memory_space<vmem>>, vector<1x8x128xf32>,
    %c0_92 = arith.constant 0 : index
    %c0_93 = arith.constant 0 : index
    %277 = vector.load %arg8[%c0_92, %c0_93] : memref<8x128xf32, #tpu.memory_space<vmem>>, vector<8x128xf32>
    tpu.vector_store %arg8[%c0_92, %c0_93], %273 {strides = array<i32>} : memref<8x128xf32, #tpu.memory_space<vmem>>, vector<8x128xf32>,
    %c0_94 = arith.constant 0 : index
    %c0_95 = arith.constant 0 : index
    %278 = vector.load %arg9[%c0_94, %c0_95] : memref<8x128xf32, #tpu.memory_space<vmem>>, vector<8x128xf32>
    tpu.vector_store %arg9[%c0_94, %c0_95], %271 {strides = array<i32>} : memref<8x128xf32, #tpu.memory_space<vmem>>, vector<8x128xf32>,
    %c0_i32_96 = arith.constant 0 : i32
    %279 = arith.cmpi eq, %arg0, %c0_i32_96 : i32
    %280 = arith.extui %279 : i1 to i32
    %c0_i32_97 = arith.constant 0 : i32
    %281 = arith.cmpi ne, %280, %c0_i32_97 : i32
    scf.if %281 {
      %c0_98 = arith.constant 0 : index
      %c0_99 = arith.constant 0 : index
      %282 = vector.load %arg6[%c0_98, %c0_99] : memref<8x128xf32, #tpu.memory_space<vmem>>, vector<8x128xf32>
      tpu.vector_store %arg6[%c0_98, %c0_99], %273 {strides = array<i32>} : memref<8x128xf32, #tpu.memory_space<vmem>>, vector<8x128xf32>,
      %c0_100 = arith.constant 0 : index
      %c0_101 = arith.constant 0 : index
      %283 = vector.load %arg7[%c0_100, %c0_101] : memref<8x128xf32, #tpu.memory_space<vmem>>, vector<8x128xf32>
      tpu.vector_store %arg7[%c0_100, %c0_101], %271 {strides = array<i32>} : memref<8x128xf32, #tpu.memory_space<vmem>>, vector<8x128xf32>,
    } else {
    }
    return
  }
  func.func @transform_0(%arg0: i32) -> (i32, i32, i32) {
    %c0_i32 = arith.constant 0 : i32
    %c0_i32_0 = arith.constant 0 : i32
    %c0_i32_1 = arith.constant 0 : i32
    return %arg0, %c0_i32, %c0_i32_0 : i32, i32, i32
  }
  func.func @transform_1(%arg0: i32) -> (i32, i32) {
    %c0_i32 = arith.constant 0 : i32
    %c0_i32_0 = arith.constant 0 : i32
    %c0_i32_1 = arith.constant 0 : i32
    return %c0_i32, %c0_i32_0 : i32, i32
  }
  func.func @transform_2(%arg0: i32) -> (i32, i32) {
    %c0_i32 = arith.constant 0 : i32
    %c0_i32_0 = arith.constant 0 : i32
    %c0_i32_1 = arith.constant 0 : i32
    return %c0_i32, %c0_i32_0 : i32, i32
  }
  func.func @transform_3(%arg0: i32) -> (i32, i32) {
    %c0_i32 = arith.constant 0 : i32
    %c0_i32_0 = arith.constant 0 : i32
    %c0_i32_1 = arith.constant 0 : i32
    return %c0_i32, %c0_i32_0 : i32, i32
  }
  func.func @transform_4(%arg0: i32) -> (i32, i32, i32) {
    %c0_i32 = arith.constant 0 : i32
    %c0_i32_0 = arith.constant 0 : i32
    %c0_i32_1 = arith.constant 0 : i32
    return %arg0, %c0_i32, %c0_i32_0 : i32, i32, i32
  }
  func.func @transform_5(%arg0: i32) -> (i32, i32) {
    %c0_i32 = arith.constant 0 : i32
    %c0_i32_0 = arith.constant 0 : i32
    %c0_i32_1 = arith.constant 0 : i32
    return %c0_i32, %c0_i32_0 : i32, i32
  }
  func.func @transform_6(%arg0: i32) -> (i32, i32) {
    %c0_i32 = arith.constant 0 : i32
    %c0_i32_0 = arith.constant 0 : i32
    %c0_i32_1 = arith.constant 0 : i32
    return %c0_i32, %c0_i32_0 : i32, i32
  }
}

module attributes {stable_mosaic.version = 11 : i64} {
  func.func @_head_kernel(%arg0: i32, %arg1: memref<64x128xf32, #tpu.memory_space<vmem>>, %arg2: memref<128x128xbf16, #tpu.memory_space<vmem>>, %arg3: memref<1x128xf32, #tpu.memory_space<vmem>>, %arg4: memref<64x128xf32, #tpu.memory_space<vmem>>) attributes {dimension_semantics = [#tpu.dimension_semantics<parallel>], iteration_bounds = array<i64: 1>, scalar_prefetch = 0 : i64, scratch_operands = 0 : i64, tpu.core_type = #tpu.core_type<tc>, window_params = [{transform_indices = @transform_0, window_bounds = array<i64: 64, 128>}, {pipeline_mode = #tpu.pipeline_mode<synchronous>, transform_indices = @transform_1, window_bounds = array<i64: 128, 128>}, {pipeline_mode = #tpu.pipeline_mode<synchronous>, transform_indices = @transform_2, window_bounds = array<i64: 1, 128>}, {transform_indices = @transform_3, window_bounds = array<i64: 64, 128>}]} {
    %c0 = arith.constant 0 : index
    %c0_0 = arith.constant 0 : index
    %0 = vector.load %arg1[%c0, %c0_0] : memref<64x128xf32, #tpu.memory_space<vmem>>, vector<64x128xf32>
    %1 = arith.truncf %0 : vector<64x128xf32> to vector<64x128xbf16>
    %c0_1 = arith.constant 0 : index
    %c0_2 = arith.constant 0 : index
    %2 = vector.load %arg2[%c0_1, %c0_2] : memref<128x128xbf16, #tpu.memory_space<vmem>>, vector<128x128xbf16>
    %cst = arith.constant dense<0.000000e+00> : vector<64x128xf32>
    %3 = tpu.matmul %1, %2, %cst {dimension_numbers = #tpu.dot_dimension_numbers<[1], [0], [0], [1], [0, 0, 1, 1], [], []>} : vector<64x128xbf16>, vector<128x128xbf16>, vector<64x128xf32> -> vector<64x128xf32>
    %c0_3 = arith.constant 0 : index
    %c0_4 = arith.constant 0 : index
    %4 = vector.load %arg3[%c0_3, %c0_4] : memref<1x128xf32, #tpu.memory_space<vmem>>, vector<1x128xf32>
    %5 = vector.broadcast %4 : vector<1x128xf32> to vector<64x128xf32>
    %6 = arith.addf %3, %5 : vector<64x128xf32>
    %cst_5 = arith.constant dense<0xFF800000> : vector<64xf32>
    %7 = vector.multi_reduction <maximumf>, %6, %cst_5 [1] : vector<64x128xf32> to vector<64xf32>
    %8 = vector.shape_cast %7 : vector<64xf32> to vector<64x1xf32>
    %9 = vector.broadcast %8 : vector<64x1xf32> to vector<64x128xf32>
    %10 = arith.subf %6, %9 : vector<64x128xf32>
    %11 = math.exp %10 : vector<64x128xf32>
    %cst_6 = arith.constant dense<0.000000e+00> : vector<64xf32>
    %12 = vector.multi_reduction <add>, %11, %cst_6 [1] : vector<64x128xf32> to vector<64xf32>
    %13 = vector.shape_cast %12 : vector<64xf32> to vector<64x1xf32>
    %14 = math.log %13 : vector<64x1xf32>
    %15 = vector.broadcast %14 : vector<64x1xf32> to vector<64x128xf32>
    %16 = arith.subf %10, %15 : vector<64x128xf32>
    %c0_7 = arith.constant 0 : index
    %c0_8 = arith.constant 0 : index
    %17 = vector.load %arg4[%c0_7, %c0_8] : memref<64x128xf32, #tpu.memory_space<vmem>>, vector<64x128xf32>
    tpu.vector_store %arg4[%c0_7, %c0_8], %16 {strides = array<i32>} : memref<64x128xf32, #tpu.memory_space<vmem>>, vector<64x128xf32>,
    return
  }
  func.func @transform_0(%arg0: i32) -> (i32, i32) {
    %c0_i32 = arith.constant 0 : i32
    %c0_i32_0 = arith.constant 0 : i32
    return %arg0, %c0_i32 : i32, i32
  }
  func.func @transform_1(%arg0: i32) -> (i32, i32) {
    %c0_i32 = arith.constant 0 : i32
    %c0_i32_0 = arith.constant 0 : i32
    %c0_i32_1 = arith.constant 0 : i32
    return %c0_i32, %c0_i32_0 : i32, i32
  }
  func.func @transform_2(%arg0: i32) -> (i32, i32) {
    %c0_i32 = arith.constant 0 : i32
    %c0_i32_0 = arith.constant 0 : i32
    %c0_i32_1 = arith.constant 0 : i32
    return %c0_i32, %c0_i32_0 : i32, i32
  }
  func.func @transform_3(%arg0: i32) -> (i32, i32) {
    %c0_i32 = arith.constant 0 : i32
    %c0_i32_0 = arith.constant 0 : i32
    return %arg0, %c0_i32 : i32, i32
  }
}

</mosaic_0001>

<bundles_post_ra>
// kernel: network_forward.7
= control target key start
LH: loop header
LB: loop body
LE: loop exit
PB: predicated region body
PF: predicated region fallthrough
CT: control target
= control target key end

     0   :  { %vm110_vm0 = vcmask 1041408   ;;  %vm111_vm1 = vcmask 1042432   ;;  %v335_v1 = vmov 65535   ;;  %vm97_vm2 = vcmask 302080   ;;  %s589_s1 = inlined_call_operand.vmem [shape: bf16[37,512], index: 1, kind: input, shape index: {}]   ;;  %s590_s0 = inlined_call_operand.vmem [shape: f32[64,37], index: 0, kind: input, shape index: {}]   ;;  %s591_s2 = inlined_call_operand.vmem [shape: f32[1,512], index: 2, kind: input, shape index: {}]   ;;  %s592_s3 = inlined_call_operand.vmem [shape: f32[64,512], index: 3, kind: output, shape index: {}]  }
   0x1   :  { %v35_v0 = vld [vmem:[%s589_s1 + $0x40] sm:$0x77]  ;;  %v112_v2 = vsel %vm110_vm0, 4294967295, %v335_v1  ;;  %v36_v3 = vld [vmem:[%s589_s1 + $0x48] sm:$0x77]  ;;  %v17_v44 = vld [vmem:[%s590_s0 + $0x10] sm:$0xff] }
   0x2   :  { %v73_v4 = vunpack.c.l.b16 %v35_v0  ;;  %v74_v5 = vunpack.c.h.b16 %v35_v0  ;;  %v75_v6 = vunpack.c.l.b16 %v36_v3  ;;  %v113_v7 = vsel %vm111_vm1, %v112_v2, 0  ;;  %v296_v12 = vld [vmem:[%s589_s1 + $0x20] sm:$0xf]  ;;  %v332_v13 = vld [vmem:[%s589_s1 + $0x2c] sm:$0xf0]  ;;  %v16_v40 = vld [vmem:[%s590_s0 + $0x8] sm:$0xff] }
   0x3   :  { %v76_v8 = vunpack.c.h.b16 %v36_v3  ;;  %v330_v15 = vld [vmem:[%s589_s1 + $0x24] sm:$0xf]  ;;  %v298_v16 = vld [vmem:[%s589_s1 + $0x30] sm:$0xf0]  ;;  %v304_v17 = vld [vmem:[%s589_s1 + $0x28] sm:$0xf]  ;;  %v297_v25 = vor.u32 %v332_v13, %v296_v12 }
   0x4   :  { %v85_v9 = vpack.c.b16 %v73_v4, %v73_v4  ;;  %v86_v10 = vpack.c.b16 %v74_v5, %v74_v5  ;;  %v87_v11 = vpack.c.b16 %v75_v6, %v75_v6  ;;  %v333_v21 = vld [vmem:[%s589_s1 + $0x34] sm:$0xf0]  ;;  %v331_v22 = vld [vmem:[%s589_s1 + $0x2c] sm:$0xf]  ;;  %v306_v23 = vld [vmem:[%s589_s1 + $0x38] sm:$0xf0]  ;;  %v301_v26 = vor.u32 %v330_v15, %v298_v16 }
   0x5   :  { %v88_v14 = vpack.c.b16 %v76_v8, %v76_v8  ;;  %v280_v27 = vld [vmem:[%s589_s1] sm:$0xf]  ;;  %v328_v28 = vld [vmem:[%s589_s1 + $0xc] sm:$0xf0]  ;;  %v305_v29 = vor.u32 %v333_v21, %v304_v17  ;;  %v309_v30 = vor.u32 %v331_v22, %v306_v23  ;;  %v326_v31 = vld [vmem:[%s589_s1 + $0x4] sm:$0xf] }
   0x6   :  { %v115_v18 = vand.u32 %v113_v7, %v85_v9  ;;  %v118_v19 = vand.u32 %v113_v7, %v86_v10  ;;  %v121_v20 = vand.u32 %v113_v7, %v87_v11  ;;  %v282_v32 = vld [vmem:[%s589_s1 + $0x10] sm:$0xf0]  ;;  %v288_v33 = vld [vmem:[%s589_s1 + $0x8] sm:$0xf]  ;;  %v329_v34 = vld [vmem:[%s589_s1 + $0x14] sm:$0xf0]  ;;  %v281_v37 = vor.u32 %v328_v28, %v280_v27 }
   0x7   :  { %v124_v24 = vand.u32 %v113_v7, %v88_v14  ;;  %v327_v35 = vld [vmem:[%s589_s1 + $0xc] sm:$0xf]  ;;  %v290_v36 = vld [vmem:[%s589_s1 + $0x18] sm:$0xf0]  ;;  %v285_v38 = vor.u32 %v326_v31, %v282_v32  ;;  %v15_v39 = vld [vmem:[%s590_s0] sm:$0xff]  ;;  %v289_v41 = vor.u32 %v329_v34, %v288_v33 }
   0x8   :  { %131 = vmatpush.bf16.msra.mxu0 %v115_v18  ;;  %160 = vmatpush.bf16.msra.mxu1 %v118_v19  ;;  %v293_v42 = vor.u32 %v327_v35, %v290_v36  ;;  %v23_v43 = vpack.c.bf16 %v16_v40, %v15_v39  ;;  %v18_v45 = vld [vmem:[%s590_s0 + $0x18] sm:$0xff]  ;;  %v19_v47 = vld [vmem:[%s590_s0 + $0x20] sm:$0xff]  ;;  %v20_v48 = vld [vmem:[%s590_s0 + $0x28] sm:$0xff] }
   0x9   :  { %189 = vmatpush.bf16.msra.mxu2 %v121_v20  ;;  %218 = vmatpush.bf16.msra.mxu3 %v124_v24  ;;  %v24_v46 = vpack.c.bf16 %v18_v45, %v17_v44  ;;  %v25_v49 = vpack.c.bf16 %v20_v48, %v19_v47  ;;  %v21_v50 = vld [vmem:[%s590_s0 + $0x30] sm:$0xff]  ;;  %v22_v51 = vld [vmem:[%s590_s0 + $0x38] sm:$0xff]  ;;  %v37_v53 = vld [vmem:[%s591_s2] sm:$0xf] }
   0xa   :  { %v26_v52 = vpack.c.bf16 %v22_v51, %v21_v50  ;;  %v453_v54 = vperm.slane %v37_v53, 0  ;;  %v455_v55 = vperm.slane %v37_v53, 1  ;;  %v465_v60 = vperm.slane %v37_v53, 2 }
   0xb   :  { %v467_v61 = vperm.slane %v37_v53, 3 }
   0xc   :  { %132 = vmatpush.bf16.msra.mxu0 %v297_v25  ;;  %161 = vmatpush.bf16.msra.mxu1 %v301_v26 }
   0xd   :  { %190 = vmatpush.bf16.msra.mxu2 %v305_v29  ;;  %219 = vmatpush.bf16.msra.mxu3 %v309_v30 }
  0x10   :  { %133 = vmatpush.bf16.msra.mxu0 %v281_v37  ;;  %162 = vmatpush.bf16.msra.mxu1 %v285_v38 }
  0x11   :  { %191 = vmatpush.bf16.msra.mxu2 %v289_v41  ;;  %220 = vmatpush.bf16.msra.mxu3 %v293_v42 }
  0x13   :  { %310 = vmatmul.msk.bf16.vlgmr.msra.gmra.mxu0 %vm97_vm2, %v23_v43  ;;  %314 = vmatmul.msk.bf16.vlgmr.msra.gmra.mxu1 %vm97_vm2, %v23_v43 }
  0x14   :  { %318 = vmatmul.msk.bf16.vlgmr.msra.gmra.mxu2 %vm97_vm2, %v23_v43  ;;  %322 = vmatmul.msk.bf16.vlgmr.msra.gmra.mxu3 %vm97_vm2, %v23_v43 }
  0x23   :  { %311 = vmatmul.msk.bf16.gmra.mxu0 %vm97_vm2, %v24_v46  ;;  %315 = vmatmul.msk.bf16.gmra.mxu1 %vm97_vm2, %v24_v46 }
  0x24   :  { %319 = vmatmul.msk.bf16.gmra.mxu2 %vm97_vm2, %v24_v46  ;;  %323 = vmatmul.msk.bf16.gmra.mxu3 %vm97_vm2, %v24_v46 }
  0x33   :  { %312 = vmatmul.msk.bf16.gmra.mxu0 %vm97_vm2, %v25_v49  ;;  %316 = vmatmul.msk.bf16.gmra.mxu1 %vm97_vm2, %v25_v49 }
  0x34   :  { %320 = vmatmul.msk.bf16.gmra.mxu2 %vm97_vm2, %v25_v49  ;;  %324 = vmatmul.msk.bf16.gmra.mxu3 %vm97_vm2, %v25_v49 }
  0x43   :  { %313 = vmatmul.msk.bf16.gmra.mxu0 %vm97_vm2, %v26_v52  ;;  %317 = vmatmul.msk.bf16.gmra.mxu1 %vm97_vm2, %v26_v52 }
  0x44   :  { %321 = vmatmul.msk.bf16.gmra.mxu2 %vm97_vm2, %v26_v52  ;;  %325 = vmatmul.msk.bf16.gmra.mxu3 %vm97_vm2, %v26_v52 }
  0x90   :  { %v135_v56 = vpop.f32.mrf.mxu0  ;;  %v164_v57 = vpop.f32.mrf.mxu1 }
  0x91   :  { %v136_v58 = vadd.f32 %v135_v56, %v453_v54  ;;  %v165_v59 = vadd.f32 %v164_v57, %v455_v55 }
  0x93   :  { %242 = vst [vmem:[%s592_s3] sm:$0xff] %v136_v58 }
  0x94   :  { %243 = vst [vmem:[%s592_s3 + $0x8] sm:$0xff] %v165_v59 }
  0x97   :  { %v193_v62 = vpop.f32.mrf.mxu2  ;;  %v222_v63 = vpop.f32.mrf.mxu3 }
  0x98   :  { %v194_v0 = vadd.f32 %v193_v62, %v465_v60  ;;  %v223_v1 = vadd.f32 %v222_v63, %v467_v61  ;;  %v137_v2 = vpop.f32.mrf.mxu0  ;;  %v166_v3 = vpop.f32.mrf.mxu1 }
  0x99   :  { %v138_v4 = vadd.f32 %v137_v2, %v453_v54  ;;  %v167_v5 = vadd.f32 %v166_v3, %v455_v55 }
  0x9a   :  { %244 = vst [vmem:[%s592_s3 + $0x10] sm:$0xff] %v194_v0 }
  0x9b   :  { %245 = vst [vmem:[%s592_s3 + $0x18] sm:$0xff] %v223_v1 }
  0x9c   :  { %246 = vst [vmem:[%s592_s3 + $0x20] sm:$0xff] %v138_v4 }
  0x9d   :  { %247 = vst [vmem:[%s592_s3 + $0x28] sm:$0xff] %v167_v5 }
  0x9f   :  { %v195_v6 = vpop.f32.mrf.mxu2  ;;  %v224_v7 = vpop.f32.mrf.mxu3 }
  0xa0   :  { %v196_v8 = vadd.f32 %v195_v6, %v465_v60  ;;  %v225_v9 = vadd.f32 %v224_v7, %v467_v61  ;;  %v140_v10 = vpop.f32.mrf.mxu0  ;;  %v169_v11 = vpop.f32.mrf.mxu1 }
  0xa1   :  { %v141_v12 = vadd.f32 %v140_v10, %v453_v54  ;;  %v170_v13 = vadd.f32 %v169_v11, %v455_v55 }
  0xa2   :  { %248 = vst [vmem:[%s592_s3 + $0x30] sm:$0xff] %v196_v8 }
  0xa3   :  { %249 = vst [vmem:[%s592_s3 + $0x38] sm:$0xff] %v225_v9 }
  0xa4   :  { %250 = vst [vmem:[%s592_s3 + $0x40] sm:$0xff] %v141_v12 }
  0xa5   :  { %251 = vst [vmem:[%s592_s3 + $0x48] sm:$0xff] %v170_v13 }
  0xa7   :  { %v198_v14 = vpop.f32.mrf.mxu2  ;;  %v227_v15 = vpop.f32.mrf.mxu3 }
  0xa8   :  { %v199_v16 = vadd.f32 %v198_v14, %v465_v60  ;;  %v228_v17 = vadd.f32 %v227_v15, %v467_v61  ;;  %v142_v18 = vpop.f32.mrf.mxu0  ;;  %v171_v19 = vpop.f32.mrf.mxu1 }
  0xa9   :  { %v143_v20 = vadd.f32 %v142_v18, %v453_v54  ;;  %v172_v21 = vadd.f32 %v171_v19, %v455_v55 }
  0xaa   :  { %252 = vst [vmem:[%s592_s3 + $0x50] sm:$0xff] %v199_v16 }
  0xab   :  { %253 = vst [vmem:[%s592_s3 + $0x58] sm:$0xff] %v228_v17 }
  0xac   :  { %254 = vst [vmem:[%s592_s3 + $0x60] sm:$0xff] %v143_v20 }
  0xad   :  { %255 = vst [vmem:[%s592_s3 + $0x68] sm:$0xff] %v172_v21 }
  0xaf   :  { %v200_v22 = vpop.f32.mrf.mxu2  ;;  %v229_v23 = vpop.f32.mrf.mxu3 }
  0xb0   :  { %v201_v24 = vadd.f32 %v200_v22, %v465_v60  ;;  %v230_v25 = vadd.f32 %v229_v23, %v467_v61  ;;  %v145_v26 = vpop.f32.mrf.mxu0  ;;  %v174_v27 = vpop.f32.mrf.mxu1 }
  0xb1   :  { %v146_v28 = vadd.f32 %v145_v26, %v453_v54  ;;  %v175_v29 = vadd.f32 %v174_v27, %v455_v55 }
  0xb2   :  { %256 = vst [vmem:[%s592_s3 + $0x70] sm:$0xff] %v201_v24 }
  0xb3   :  { %257 = vst [vmem:[%s592_s3 + $0x78] sm:$0xff] %v230_v25 }
  0xb4   :  { %258 = vst [vmem:[%s592_s3 + $0x80] sm:$0xff] %v146_v28 }
  0xb5   :  { %259 = vst [vmem:[%s592_s3 + $0x88] sm:$0xff] %v175_v29 }
  0xb7   :  { %v203_v30 = vpop.f32.mrf.mxu2  ;;  %v232_v31 = vpop.f32.mrf.mxu3 }
  0xb8   :  { %v204_v32 = vadd.f32 %v203_v30, %v465_v60  ;;  %v233_v33 = vadd.f32 %v232_v31, %v467_v61  ;;  %v147_v34 = vpop.f32.mrf.mxu0  ;;  %v176_v35 = vpop.f32.mrf.mxu1 }
  0xb9   :  { %v148_v36 = vadd.f32 %v147_v34, %v453_v54  ;;  %v177_v37 = vadd.f32 %v176_v35, %v455_v55 }
  0xba   :  { %260 = vst [vmem:[%s592_s3 + $0x90] sm:$0xff] %v204_v32 }
  0xbb   :  { %261 = vst [vmem:[%s592_s3 + $0x98] sm:$0xff] %v233_v33 }
  0xbc   :  { %262 = vst [vmem:[%s592_s3 + $0xa0] sm:$0xff] %v148_v36 }
  0xbd   :  { %263 = vst [vmem:[%s592_s3 + $0xa8] sm:$0xff] %v177_v37 }
  0xbf   :  { %v205_v38 = vpop.f32.mrf.mxu2  ;;  %v234_v39 = vpop.f32.mrf.mxu3 }
  0xc0   :  { %v206_v40 = vadd.f32 %v205_v38, %v465_v60  ;;  %v235_v41 = vadd.f32 %v234_v39, %v467_v61  ;;  %v150_v42 = vpop.f32.mrf.mxu0  ;;  %v179_v43 = vpop.f32.mrf.mxu1 }
  0xc1   :  { %v151_v44 = vadd.f32 %v150_v42, %v453_v54  ;;  %v180_v45 = vadd.f32 %v179_v43, %v455_v55 }
  0xc2   :  { %264 = vst [vmem:[%s592_s3 + $0xb0] sm:$0xff] %v206_v40 }
  0xc3   :  { %265 = vst [vmem:[%s592_s3 + $0xb8] sm:$0xff] %v235_v41 }
  0xc4   :  { %266 = vst [vmem:[%s592_s3 + $0xc0] sm:$0xff] %v151_v44 }
  0xc5   :  { %267 = vst [vmem:[%s592_s3 + $0xc8] sm:$0xff] %v180_v45 }
  0xc7   :  { %v208_v46 = vpop.f32.mrf.mxu2  ;;  %v237_v47 = vpop.f32.mrf.mxu3 }
  0xc8   :  { %v209_v48 = vadd.f32 %v208_v46, %v465_v60  ;;  %v238_v49 = vadd.f32 %v237_v47, %v467_v61  ;;  %v152_v50 = vpop.f32.mrf.mxu0  ;;  %v181_v51 = vpop.f32.mrf.mxu1 }
  0xc9   :  { %v153_v52 = vadd.f32 %v152_v50, %v453_v54  ;;  %v182_v53 = vadd.f32 %v181_v51, %v455_v55 }
  0xca   :  { %268 = vst [vmem:[%s592_s3 + $0xd0] sm:$0xff] %v209_v48 }
  0xcb   :  { %269 = vst [vmem:[%s592_s3 + $0xd8] sm:$0xff] %v238_v49 }
  0xcc   :  { %270 = vst [vmem:[%s592_s3 + $0xe0] sm:$0xff] %v153_v52 }
  0xcd   :  { %271 = vst [vmem:[%s592_s3 + $0xe8] sm:$0xff] %v182_v53 }
  0xcf   :  { %v210_v56 = vpop.f32.mrf.mxu2  ;;  %v239_v54 = vpop.f32.mrf.mxu3 }
  0xd0   :  { %v211_v55 = vadd.f32 %v210_v56, %v465_v60  ;;  %v240_v57 = vadd.f32 %v239_v54, %v467_v61 }
  0xd2   :  { %272 = vst [vmem:[%s592_s3 + $0xf0] sm:$0xff] %v211_v55 }
  0xd3   :  { %273 = vst [vmem:[%s592_s3 + $0xf8] sm:$0xff] %v240_v57 }

// kernel: network_forward.9
= control target key start
LH: loop header
LB: loop body
LE: loop exit
PB: predicated region body
PF: predicated region fallthrough
CT: control target
= control target key end

     0   :  { %8 = vsyncpa [#allocation3], 0  ;;  %s586_s15 = smov [#allocation2]   ;;  %s587_s17 = smov 256   ;;  %s775_s0 = inlined_call_operand.vmem [shape: f32[64,128], index: 0, kind: input, shape index: {}]   ;;  %s776_s1 = inlined_call_operand.hbm [shape: bf16[128,512], index: 1, kind: input, shape index: {}]   ;;  %s777_s2 = inlined_call_operand.vmem [shape: f32[1,512], index: 2, kind: input, shape index: {}]   ;;  %s778_s3 = inlined_call_operand.vmem [shape: f32[64,512], index: 3, kind: output, shape index: {}]  }
   0x1   :  { %s15_s14 = sshll.u32 %s776_s1, 4  ;;  %s17_s16 = sshll.u32 %s586_s15, 4  ;;  %s16_s14 = int_to_ptr.hbm [resolvable:$true] %s15_s14  ;;  %s18_s16 = int_to_ptr.vmem [resolvable:$true] %s17_s16 }
   0x2   :  { %s588_s18 = smov 16  }
   0x3   :  { %23 = dma.hbm_to_vmem [thread:$0]  %s16_s14, 4096, %s18_s16, [#allocation3], %s587_s17, %s587_s17, %s588_s18  }
   0x4   :  { %584 = dma.done.wait [#allocation3], 4096  }
   0x5   :  { %585 = vsyncadd [#allocation3], 4294963200  ;;  %v511_v0 = vld [vmem:[#allocation2 + $0xe0] sm:$0xf]  ;;  %v555_v1 = vld [vmem:[#allocation2 + $0xec] sm:$0xf0] }
   0x6   :  { %v553_v2 = vld [vmem:[#allocation2 + $0xe4] sm:$0xf]  ;;  %v512_v3 = vor.u32 %v555_v1, %v511_v0  ;;  %v513_v4 = vld [vmem:[#allocation2 + $0xf0] sm:$0xf0]  ;;  %v519_v5 = vld [vmem:[#allocation2 + $0xe8] sm:$0xf] }
   0x7   :  { %v556_v6 = vld [vmem:[#allocation2 + $0xf4] sm:$0xf0]  ;;  %v516_v7 = vor.u32 %v553_v2, %v513_v4  ;;  %v554_v9 = vld [vmem:[#allocation2 + $0xec] sm:$0xf]  ;;  %v521_v10 = vld [vmem:[#allocation2 + $0xf8] sm:$0xf0] }
   0x8   :  { %v520_v8 = vor.u32 %v556_v6, %v519_v5  ;;  %v495_v11 = vld [vmem:[#allocation2 + $0xc0] sm:$0xf]  ;;  %244 = vmatpush.bf16.msra.mxu0 %v512_v3  ;;  %v524_v12 = vor.u32 %v554_v9, %v521_v10  ;;  %v551_v13 = vld [vmem:[#allocation2 + $0xcc] sm:$0xf0]  ;;  %v549_v14 = vld [vmem:[#allocation2 + $0xc4] sm:$0xf] }
   0x9   :  { %v497_v15 = vld [vmem:[#allocation2 + $0xd0] sm:$0xf0]  ;;  %273 = vmatpush.bf16.msra.mxu1 %v516_v7  ;;  %v496_v16 = vor.u32 %v551_v13, %v495_v11  ;;  %v503_v18 = vld [vmem:[#allocation2 + $0xc8] sm:$0xf]  ;;  %v552_v19 = vld [vmem:[#allocation2 + $0xd4] sm:$0xf0] }
   0xa   :  { %302 = vmatpush.bf16.msra.mxu2 %v520_v8  ;;  %v500_v17 = vor.u32 %v549_v14, %v497_v15  ;;  %v550_v20 = vld [vmem:[#allocation2 + $0xcc] sm:$0xf]  ;;  %331 = vmatpush.bf16.msra.mxu3 %v524_v12  ;;  %v504_v21 = vor.u32 %v552_v19, %v503_v18  ;;  %v505_v22 = vld [vmem:[#allocation2 + $0xd8] sm:$0xf0]  ;;  %v479_v23 = vld [vmem:[#allocation2 + $0xa0] sm:$0xf] }
   0xb   :  { %v547_v24 = vld [vmem:[#allocation2 + $0xac] sm:$0xf0]  ;;  %v508_v25 = vor.u32 %v550_v20, %v505_v22  ;;  %v545_v26 = vld [vmem:[#allocation2 + $0xa4] sm:$0xf]  ;;  %v481_v27 = vld [vmem:[#allocation2 + $0xb0] sm:$0xf0] }
   0xc   :  { %v487_v28 = vld [vmem:[#allocation2 + $0xa8] sm:$0xf]  ;;  %245 = vmatpush.bf16.msra.mxu0 %v496_v16  ;;  %v480_v29 = vor.u32 %v547_v24, %v479_v23  ;;  %v548_v30 = vld [vmem:[#allocation2 + $0xb4] sm:$0xf0]  ;;  %v546_v31 = vld [vmem:[#allocation2 + $0xac] sm:$0xf]  ;;  %v484_v33 = vor.u32 %v545_v26, %v481_v27 }
   0xd   :  { %v489_v32 = vld [vmem:[#allocation2 + $0xb8] sm:$0xf0]  ;;  %274 = vmatpush.bf16.msra.mxu1 %v500_v17  ;;  %v488_v34 = vor.u32 %v548_v30, %v487_v28  ;;  %v463_v35 = vld [vmem:[#allocation2 + $0x80] sm:$0xf]  ;;  %v543_v36 = vld [vmem:[#allocation2 + $0x8c] sm:$0xf0] }
   0xe   :  { %303 = vmatpush.bf16.msra.mxu2 %v504_v21  ;;  %v541_v37 = vld [vmem:[#allocation2 + $0x84] sm:$0xf]  ;;  %332 = vmatpush.bf16.msra.mxu3 %v508_v25  ;;  %v492_v38 = vor.u32 %v546_v31, %v489_v32  ;;  %v465_v39 = vld [vmem:[#allocation2 + $0x90] sm:$0xf0]  ;;  %v471_v40 = vld [vmem:[#allocation2 + $0x88] sm:$0xf]  ;;  %v464_v44 = vor.u32 %v543_v36, %v463_v35 }
   0xf   :  { %v544_v41 = vld [vmem:[#allocation2 + $0x94] sm:$0xf0]  ;;  %v542_v42 = vld [vmem:[#allocation2 + $0x8c] sm:$0xf]  ;;  %v473_v43 = vld [vmem:[#allocation2 + $0x98] sm:$0xf0]  ;;  %v468_v45 = vor.u32 %v541_v37, %v465_v39 }
  0x10   :  { %246 = vmatpush.bf16.msra.mxu0 %v480_v29  ;;  %v472_v46 = vor.u32 %v544_v41, %v471_v40  ;;  %v447_v47 = vld [vmem:[#allocation2 + $0x60] sm:$0xf]  ;;  %v539_v48 = vld [vmem:[#allocation2 + $0x6c] sm:$0xf0]  ;;  %v537_v49 = vld [vmem:[#allocation2 + $0x64] sm:$0xf]  ;;  %v476_v50 = vor.u32 %v542_v42, %v473_v43 }
  0x11   :  { %275 = vmatpush.bf16.msra.mxu1 %v484_v33  ;;  %v449_v51 = vld [vmem:[#allocation2 + $0x70] sm:$0xf0]  ;;  %v455_v52 = vld [vmem:[#allocation2 + $0x68] sm:$0xf]  ;;  %v540_v53 = vld [vmem:[#allocation2 + $0x74] sm:$0xf0]  ;;  %v448_v56 = vor.u32 %v539_v48, %v447_v47 }
  0x12   :  { %304 = vmatpush.bf16.msra.mxu2 %v488_v34  ;;  %333 = vmatpush.bf16.msra.mxu3 %v492_v38  ;;  %v538_v54 = vld [vmem:[#allocation2 + $0x6c] sm:$0xf]  ;;  %v457_v55 = vld [vmem:[#allocation2 + $0x78] sm:$0xf0]  ;;  %v452_v57 = vor.u32 %v537_v49, %v449_v51  ;;  %v456_v58 = vor.u32 %v540_v53, %v455_v52  ;;  %v431_v59 = vld [vmem:[#allocation2 + $0x40] sm:$0xf] }
  0x13   :  { %v535_v60 = vld [vmem:[#allocation2 + $0x4c] sm:$0xf0]  ;;  %v533_v61 = vld [vmem:[#allocation2 + $0x44] sm:$0xf]  ;;  %v460_v62 = vor.u32 %v538_v54, %v457_v55  ;;  %v433_v63 = vld [vmem:[#allocation2 + $0x50] sm:$0xf0] }
  0x14   :  { %247 = vmatpush.bf16.msra.mxu0 %v464_v44  ;;  %v439_v0 = vld [vmem:[#allocation2 + $0x48] sm:$0xf]  ;;  %v536_v1 = vld [vmem:[#allocation2 + $0x54] sm:$0xf0]  ;;  %v534_v2 = vld [vmem:[#allocation2 + $0x4c] sm:$0xf]  ;;  %v432_v4 = vor.u32 %v535_v60, %v431_v59  ;;  %v436_v5 = vor.u32 %v533_v61, %v433_v63 }
  0x15   :  { %276 = vmatpush.bf16.msra.mxu1 %v468_v45  ;;  %v441_v3 = vld [vmem:[#allocation2 + $0x58] sm:$0xf0]  ;;  %v440_v6 = vor.u32 %v536_v1, %v439_v0  ;;  %v415_v7 = vld [vmem:[#allocation2 + $0x20] sm:$0xf]  ;;  %v531_v8 = vld [vmem:[#allocation2 + $0x2c] sm:$0xf0] }
  0x16   :  { %305 = vmatpush.bf16.msra.mxu2 %v472_v46  ;;  %334 = vmatpush.bf16.msra.mxu3 %v476_v50  ;;  %v529_v9 = vld [vmem:[#allocation2 + $0x24] sm:$0xf]  ;;  %v444_v10 = vor.u32 %v534_v2, %v441_v3  ;;  %v417_v11 = vld [vmem:[#allocation2 + $0x30] sm:$0xf0]  ;;  %v423_v12 = vld [vmem:[#allocation2 + $0x28] sm:$0xf]  ;;  %v416_v16 = vor.u32 %v531_v8, %v415_v7 }
  0x17   :  { %v532_v13 = vld [vmem:[#allocation2 + $0x34] sm:$0xf0]  ;;  %v530_v14 = vld [vmem:[#allocation2 + $0x2c] sm:$0xf]  ;;  %v425_v15 = vld [vmem:[#allocation2 + $0x38] sm:$0xf0]  ;;  %v420_v17 = vor.u32 %v529_v9, %v417_v11 }
  0x18   :  { %248 = vmatpush.bf16.msra.mxu0 %v448_v56  ;;  %v424_v18 = vor.u32 %v532_v13, %v423_v12  ;;  %v399_v19 = vld [vmem:[#allocation2] sm:$0xf]  ;;  %v527_v20 = vld [vmem:[#allocation2 + $0xc] sm:$0xf0]  ;;  %v525_v21 = vld [vmem:[#allocation2 + $0x4] sm:$0xf]  ;;  %v428_v22 = vor.u32 %v530_v14, %v425_v15 }
  0x19   :  { %277 = vmatpush.bf16.msra.mxu1 %v452_v57  ;;  %v401_v23 = vld [vmem:[#allocation2 + $0x10] sm:$0xf0]  ;;  %v407_v24 = vld [vmem:[#allocation2 + $0x8] sm:$0xf]  ;;  %v528_v25 = vld [vmem:[#allocation2 + $0x14] sm:$0xf0]  ;;  %v400_v28 = vor.u32 %v527_v20, %v399_v19 }
  0x1a   :  { %306 = vmatpush.bf16.msra.mxu2 %v456_v58  ;;  %335 = vmatpush.bf16.msra.mxu3 %v460_v62  ;;  %v526_v26 = vld [vmem:[#allocation2 + $0xc] sm:$0xf]  ;;  %v409_v27 = vld [vmem:[#allocation2 + $0x18] sm:$0xf0]  ;;  %v30_v29 = vld [vmem:[%s775_s0] sm:$0xff]  ;;  %v404_v31 = vor.u32 %v525_v21, %v401_v23  ;;  %v408_v32 = vor.u32 %v528_v25, %v407_v24 }
  0x1b   :  { %v31_v30 = vld [vmem:[%s775_s0 + $0x8] sm:$0xff]  ;;  %v412_v33 = vor.u32 %v526_v26, %v409_v27  ;;  %v32_v35 = vld [vmem:[%s775_s0 + $0x10] sm:$0xff]  ;;  %v33_v36 = vld [vmem:[%s775_s0 + $0x18] sm:$0xff] }
  0x1c   :  { %249 = vmatpush.bf16.msra.mxu0 %v432_v4  ;;  %v38_v34 = vpack.c.bf16 %v31_v30, %v30_v29  ;;  %v39_v37 = vpack.c.bf16 %v33_v36, %v32_v35  ;;  %v34_v38 = vld [vmem:[%s775_s0 + $0x20] sm:$0xff]  ;;  %v35_v39 = vld [vmem:[%s775_s0 + $0x28] sm:$0xff]  ;;  %v36_v41 = vld [vmem:[%s775_s0 + $0x30] sm:$0xff] }
  0x1d   :  { %278 = vmatpush.bf16.msra.mxu1 %v436_v5  ;;  %v40_v40 = vpack.c.bf16 %v35_v39, %v34_v38  ;;  %v37_v42 = vld [vmem:[%s775_s0 + $0x38] sm:$0xff]  ;;  %v74_v44 = vld [vmem:[%s777_s2] sm:$0xf] }
  0x1e   :  { %307 = vmatpush.bf16.msra.mxu2 %v440_v6  ;;  %336 = vmatpush.bf16.msra.mxu3 %v444_v10  ;;  %v41_v43 = vpack.c.bf16 %v37_v42, %v36_v41  ;;  %v639_v45 = vperm.slane %v74_v44, 0  ;;  %v641_v46 = vperm.slane %v74_v44, 1  ;;  %v651_v51 = vperm.slane %v74_v44, 2 }
  0x1f   :  { %v653_v52 = vperm.slane %v74_v44, 3 }
  0x20   :  { %250 = vmatpush.bf16.msra.mxu0 %v416_v16 }
  0x21   :  { %279 = vmatpush.bf16.msra.mxu1 %v420_v17 }
  0x22   :  { %308 = vmatpush.bf16.msra.mxu2 %v424_v18  ;;  %337 = vmatpush.bf16.msra.mxu3 %v428_v22 }
  0x24   :  { %251 = vmatpush.bf16.msra.mxu0 %v400_v28 }
  0x25   :  { %280 = vmatpush.bf16.msra.mxu1 %v404_v31 }
  0x26   :  { %309 = vmatpush.bf16.msra.mxu2 %v408_v32  ;;  %338 = vmatpush.bf16.msra.mxu3 %v412_v33 }
  0x27   :  { %252 = vmatmul.bf16.vlgmr.msra.gmra.mxu0 %v38_v34 }
  0x28   :  { %281 = vmatmul.bf16.vlgmr.msra.gmra.mxu1 %v38_v34 }
  0x29   :  { %310 = vmatmul.bf16.vlgmr.msra.gmra.mxu2 %v38_v34  ;;  %339 = vmatmul.bf16.vlgmr.msra.gmra.mxu3 %v38_v34 }
  0x37   :  { %257 = vmatmul.bf16.gmra.mxu0 %v39_v37 }
  0x38   :  { %286 = vmatmul.bf16.gmra.mxu1 %v39_v37 }
  0x39   :  { %315 = vmatmul.bf16.gmra.mxu2 %v39_v37  ;;  %344 = vmatmul.bf16.gmra.mxu3 %v39_v37 }
  0x47   :  { %262 = vmatmul.bf16.gmra.mxu0 %v40_v40 }
  0x48   :  { %291 = vmatmul.bf16.gmra.mxu1 %v40_v40 }
  0x49   :  { %320 = vmatmul.bf16.gmra.mxu2 %v40_v40  ;;  %349 = vmatmul.bf16.gmra.mxu3 %v40_v40 }
  0x57   :  { %267 = vmatmul.bf16.gmra.mxu0 %v41_v43 }
  0x58   :  { %296 = vmatmul.bf16.gmra.mxu1 %v41_v43 }
  0x59   :  { %325 = vmatmul.bf16.gmra.mxu2 %v41_v43  ;;  %354 = vmatmul.bf16.gmra.mxu3 %v41_v43 }
  0xa4   :  { %v253_v47 = vpop.f32.mrf.mxu0 }
  0xa5   :  { %v254_v48 = vadd.f32 %v253_v47, %v639_v45  ;;  %v282_v49 = vpop.f32.mrf.mxu1 }
  0xa6   :  { %v283_v50 = vadd.f32 %v282_v49, %v641_v46 }
  0xa7   :  { %360 = vst [vmem:[%s778_s3] sm:$0xff] %v254_v48 }
  0xa8   :  { %361 = vst [vmem:[%s778_s3 + $0x8] sm:$0xff] %v283_v50 }
  0xac   :  { %v311_v53 = vpop.f32.mrf.mxu2  ;;  %v340_v55 = vpop.f32.mrf.mxu3 }
  0xad   :  { %v312_v54 = vadd.f32 %v311_v53, %v651_v51  ;;  %v255_v56 = vpop.f32.mrf.mxu0  ;;  %v341_v57 = vadd.f32 %v340_v55, %v653_v52  ;;  %v284_v59 = vpop.f32.mrf.mxu1 }
  0xae   :  { %v256_v58 = vadd.f32 %v255_v56, %v639_v45  ;;  %v285_v60 = vadd.f32 %v284_v59, %v641_v46 }
  0xaf   :  { %362 = vst [vmem:[%s778_s3 + $0x10] sm:$0xff] %v312_v54 }
  0xb0   :  { %363 = vst [vmem:[%s778_s3 + $0x18] sm:$0xff] %v341_v57 }
  0xb1   :  { %364 = vst [vmem:[%s778_s3 + $0x20] sm:$0xff] %v256_v58 }
  0xb2   :  { %365 = vst [vmem:[%s778_s3 + $0x28] sm:$0xff] %v285_v60 }
  0xb4   :  { %v313_v61 = vpop.f32.mrf.mxu2  ;;  %v342_v63 = vpop.f32.mrf.mxu3 }
  0xb5   :  { %v314_v62 = vadd.f32 %v313_v61, %v651_v51  ;;  %v258_v0 = vpop.f32.mrf.mxu0  ;;  %v343_v1 = vadd.f32 %v342_v63, %v653_v52  ;;  %v287_v3 = vpop.f32.mrf.mxu1 }
  0xb6   :  { %v259_v2 = vadd.f32 %v258_v0, %v639_v45  ;;  %v288_v4 = vadd.f32 %v287_v3, %v641_v46 }
  0xb7   :  { %366 = vst [vmem:[%s778_s3 + $0x30] sm:$0xff] %v314_v62 }
  0xb8   :  { %367 = vst [vmem:[%s778_s3 + $0x38] sm:$0xff] %v343_v1 }
  0xb9   :  { %368 = vst [vmem:[%s778_s3 + $0x40] sm:$0xff] %v259_v2 }
  0xba   :  { %369 = vst [vmem:[%s778_s3 + $0x48] sm:$0xff] %v288_v4 }
  0xbc   :  { %v316_v5 = vpop.f32.mrf.mxu2  ;;  %v345_v7 = vpop.f32.mrf.mxu3 }
  0xbd   :  { %v317_v6 = vadd.f32 %v316_v5, %v651_v51  ;;  %v260_v8 = vpop.f32.mrf.mxu0  ;;  %v346_v9 = vadd.f32 %v345_v7, %v653_v52  ;;  %v289_v11 = vpop.f32.mrf.mxu1 }
  0xbe   :  { %v261_v10 = vadd.f32 %v260_v8, %v639_v45  ;;  %v290_v12 = vadd.f32 %v289_v11, %v641_v46 }
  0xbf   :  { %370 = vst [vmem:[%s778_s3 + $0x50] sm:$0xff] %v317_v6 }
  0xc0   :  { %371 = vst [vmem:[%s778_s3 + $0x58] sm:$0xff] %v346_v9 }
  0xc1   :  { %372 = vst [vmem:[%s778_s3 + $0x60] sm:$0xff] %v261_v10 }
  0xc2   :  { %373 = vst [vmem:[%s778_s3 + $0x68] sm:$0xff] %v290_v12 }
  0xc4   :  { %v318_v13 = vpop.f32.mrf.mxu2  ;;  %v347_v15 = vpop.f32.mrf.mxu3 }
  0xc5   :  { %v319_v14 = vadd.f32 %v318_v13, %v651_v51  ;;  %v263_v16 = vpop.f32.mrf.mxu0  ;;  %v348_v17 = vadd.f32 %v347_v15, %v653_v52  ;;  %v292_v19 = vpop.f32.mrf.mxu1 }
  0xc6   :  { %v264_v18 = vadd.f32 %v263_v16, %v639_v45  ;;  %v293_v20 = vadd.f32 %v292_v19, %v641_v46 }
  0xc7   :  { %374 = vst [vmem:[%s778_s3 + $0x70] sm:$0xff] %v319_v14 }
  0xc8   :  { %375 = vst [vmem:[%s778_s3 + $0x78] sm:$0xff] %v348_v17 }
  0xc9   :  { %376 = vst [vmem:[%s778_s3 + $0x80] sm:$0xff] %v264_v18 }
  0xca   :  { %377 = vst [vmem:[%s778_s3 + $0x88] sm:$0xff] %v293_v20 }
  0xcc   :  { %v321_v21 = vpop.f32.mrf.mxu2  ;;  %v350_v23 = vpop.f32.mrf.mxu3 }
  0xcd   :  { %v322_v22 = vadd.f32 %v321_v21, %v651_v51  ;;  %v265_v24 = vpop.f32.mrf.mxu0  ;;  %v351_v25 = vadd.f32 %v350_v23, %v653_v52  ;;  %v294_v27 = vpop.f32.mrf.mxu1 }
  0xce   :  { %v266_v26 = vadd.f32 %v265_v24, %v639_v45  ;;  %v295_v28 = vadd.f32 %v294_v27, %v641_v46 }
  0xcf   :  { %378 = vst [vmem:[%s778_s3 + $0x90] sm:$0xff] %v322_v22 }
  0xd0   :  { %379 = vst [vmem:[%s778_s3 + $0x98] sm:$0xff] %v351_v25 }
  0xd1   :  { %380 = vst [vmem:[%s778_s3 + $0xa0] sm:$0xff] %v266_v26 }
  0xd2   :  { %381 = vst [vmem:[%s778_s3 + $0xa8] sm:$0xff] %v295_v28 }
  0xd4   :  { %v323_v29 = vpop.f32.mrf.mxu2  ;;  %v352_v31 = vpop.f32.mrf.mxu3 }
  0xd5   :  { %v324_v30 = vadd.f32 %v323_v29, %v651_v51  ;;  %v268_v32 = vpop.f32.mrf.mxu0  ;;  %v353_v33 = vadd.f32 %v352_v31, %v653_v52  ;;  %v297_v35 = vpop.f32.mrf.mxu1 }
  0xd6   :  { %v269_v34 = vadd.f32 %v268_v32, %v639_v45  ;;  %v298_v36 = vadd.f32 %v297_v35, %v641_v46 }
  0xd7   :  { %382 = vst [vmem:[%s778_s3 + $0xb0] sm:$0xff] %v324_v30 }
  0xd8   :  { %383 = vst [vmem:[%s778_s3 + $0xb8] sm:$0xff] %v353_v33 }
  0xd9   :  { %384 = vst [vmem:[%s778_s3 + $0xc0] sm:$0xff] %v269_v34 }
  0xda   :  { %385 = vst [vmem:[%s778_s3 + $0xc8] sm:$0xff] %v298_v36 }
  0xdc   :  { %v326_v37 = vpop.f32.mrf.mxu2  ;;  %v355_v39 = vpop.f32.mrf.mxu3 }
  0xdd   :  { %v327_v38 = vadd.f32 %v326_v37, %v651_v51  ;;  %v270_v40 = vpop.f32.mrf.mxu0  ;;  %v356_v41 = vadd.f32 %v355_v39, %v653_v52  ;;  %v299_v43 = vpop.f32.mrf.mxu1 }
  0xde   :  { %v271_v42 = vadd.f32 %v270_v40, %v639_v45  ;;  %v300_v44 = vadd.f32 %v299_v43, %v641_v46 }
  0xdf   :  { %386 = vst [vmem:[%s778_s3 + $0xd0] sm:$0xff] %v327_v38 }
  0xe0   :  { %387 = vst [vmem:[%s778_s3 + $0xd8] sm:$0xff] %v356_v41 }
  0xe1   :  { %388 = vst [vmem:[%s778_s3 + $0xe0] sm:$0xff] %v271_v42 }
  0xe2   :  { %389 = vst [vmem:[%s778_s3 + $0xe8] sm:$0xff] %v300_v44 }
  0xe4   :  { %v328_v45 = vpop.f32.mrf.mxu2  ;;  %v357_v48 = vpop.f32.mrf.mxu3 }
  0xe5   :  { %v329_v47 = vadd.f32 %v328_v45, %v651_v51  ;;  %v358_v49 = vadd.f32 %v357_v48, %v653_v52 }
  0xe7   :  { %390 = vst [vmem:[%s778_s3 + $0xf0] sm:$0xff] %v329_v47 }
  0xe8   :  { %391 = vst [vmem:[%s778_s3 + $0xf8] sm:$0xff] %v358_v49 }
  0xe9   :  { %396 = vsyncpa [#allocation3], 1 }

// kernel: network_forward.13
= control target key start
LH: loop header
LB: loop body
LE: loop exit
PB: predicated region body
PF: predicated region fallthrough
CT: control target
= control target key end

     0   :  { %s427_s1 = inlined_call_operand.vmem [shape: bf16[128,128], index: 1, kind: input, shape index: {}]   ;;  %s428_s2 = inlined_call_operand.vmem [shape: f32[1,128], index: 2, kind: input, shape index: {}]   ;;  %s429_s0 = inlined_call_operand.vmem [shape: f32[64,128], index: 0, kind: input, shape index: {}]   ;;  %s430_s3 = inlined_call_operand.vmem [shape: f32[64,128], index: 3, kind: output, shape index: {}]  }
   0x1   :  { %v254_v0 = vld [vmem:[%s427_s1 + $0x38] sm:$0xff]  ;;  %v253_v1 = vld [vmem:[%s427_s1 + $0x30] sm:$0xff]  ;;  %v252_v2 = vld [vmem:[%s427_s1 + $0x28] sm:$0xff] }
   0x2   :  { %94 = vmatpush.bf16.msra.mxu0 %v254_v0  ;;  %255 = vmatpush.bf16.msra.mxu1 %v254_v0  ;;  %v251_v3 = vld [vmem:[%s427_s1 + $0x20] sm:$0xff]  ;;  %v250_v4 = vld [vmem:[%s427_s1 + $0x18] sm:$0xff]  ;;  %v249_v5 = vld [vmem:[%s427_s1 + $0x10] sm:$0xff] }
   0x3   :  { %256 = vmatpush.bf16.msra.mxu2 %v254_v0  ;;  %257 = vmatpush.bf16.msra.mxu3 %v254_v0  ;;  %v248_v6 = vld [vmem:[%s427_s1 + $0x8] sm:$0xff]  ;;  %v247_v7 = vld [vmem:[%s427_s1] sm:$0xff]  ;;  %v16_v10 = vld [vmem:[%s429_s0 + $0x10] sm:$0xff] }
   0x4   :  { %v14_v8 = vld [vmem:[%s429_s0] sm:$0xff]  ;;  %v15_v9 = vld [vmem:[%s429_s0 + $0x8] sm:$0xff]  ;;  %v17_v11 = vld [vmem:[%s429_s0 + $0x18] sm:$0xff] }
   0x5   :  { %v18_v12 = vld [vmem:[%s429_s0 + $0x20] sm:$0xff]  ;;  %v19_v13 = vld [vmem:[%s429_s0 + $0x28] sm:$0xff]  ;;  %v20_v14 = vld [vmem:[%s429_s0 + $0x30] sm:$0xff]  ;;  %v22_v16 = vpack.c.bf16 %v15_v9, %v14_v8  ;;  %v23_v17 = vpack.c.bf16 %v17_v11, %v16_v10 }
   0x6   :  { %95 = vmatpush.bf16.msra.mxu0 %v253_v1  ;;  %258 = vmatpush.bf16.msra.mxu1 %v253_v1  ;;  %v21_v15 = vld [vmem:[%s429_s0 + $0x38] sm:$0xff]  ;;  %v24_v18 = vpack.c.bf16 %v19_v13, %v18_v12  ;;  %v279_v20 = vld [vmem:[%s428_s2] ss:$0 sm:$0xff] }
   0x7   :  { %259 = vmatpush.bf16.msra.mxu2 %v253_v1  ;;  %260 = vmatpush.bf16.msra.mxu3 %v253_v1  ;;  %v25_v19 = vpack.c.bf16 %v21_v15, %v20_v14 }
   0xa   :  { %96 = vmatpush.bf16.msra.mxu0 %v252_v2  ;;  %261 = vmatpush.bf16.msra.mxu1 %v252_v2 }
   0xb   :  { %262 = vmatpush.bf16.msra.mxu2 %v252_v2  ;;  %263 = vmatpush.bf16.msra.mxu3 %v252_v2 }
   0xe   :  { %97 = vmatpush.bf16.msra.mxu0 %v251_v3  ;;  %264 = vmatpush.bf16.msra.mxu1 %v251_v3 }
   0xf   :  { %265 = vmatpush.bf16.msra.mxu2 %v251_v3  ;;  %266 = vmatpush.bf16.msra.mxu3 %v251_v3 }
  0x12   :  { %98 = vmatpush.bf16.msra.mxu0 %v250_v4  ;;  %267 = vmatpush.bf16.msra.mxu1 %v250_v4 }
  0x13   :  { %268 = vmatpush.bf16.msra.mxu2 %v250_v4  ;;  %269 = vmatpush.bf16.msra.mxu3 %v250_v4 }
  0x16   :  { %99 = vmatpush.bf16.msra.mxu0 %v249_v5  ;;  %270 = vmatpush.bf16.msra.mxu1 %v249_v5 }
  0x17   :  { %271 = vmatpush.bf16.msra.mxu2 %v249_v5  ;;  %272 = vmatpush.bf16.msra.mxu3 %v249_v5 }
  0x1a   :  { %100 = vmatpush.bf16.msra.mxu0 %v248_v6  ;;  %273 = vmatpush.bf16.msra.mxu1 %v248_v6 }
  0x1b   :  { %274 = vmatpush.bf16.msra.mxu2 %v248_v6  ;;  %275 = vmatpush.bf16.msra.mxu3 %v248_v6 }
  0x1e   :  { %101 = vmatpush.bf16.msra.mxu0 %v247_v7  ;;  %276 = vmatpush.bf16.msra.mxu1 %v247_v7 }
  0x1f   :  { %277 = vmatpush.bf16.msra.mxu2 %v247_v7  ;;  %278 = vmatpush.bf16.msra.mxu3 %v247_v7 }
  0x21   :  { %102 = vmatmul.bf16.vlgmr.msra.gmra.mxu0 %v22_v16  ;;  %107 = vmatmul.bf16.vlgmr.msra.gmra.mxu1 %v23_v17 }
  0x22   :  { %112 = vmatmul.bf16.vlgmr.msra.gmra.mxu2 %v24_v18  ;;  %117 = vmatmul.bf16.vlgmr.msra.gmra.mxu3 %v25_v19 }
  0x9e   :  { %v103_v21 = vpop.f32.mrf.mxu0  ;;  %v108_v22 = vpop.f32.mrf.mxu1 }
  0x9f   :  { %v104_v23 = vadd.f32 %v279_v20, %v103_v21  ;;  %v109_v24 = vadd.f32 %v279_v20, %v108_v22 }
  0xa1   :  { %127 = vmax.xlane.f32.xlu1 %v109_v24  ;;  %123 = vmax.xlane.f32.xlu0 %v104_v23 }
  0xa5   :  { %v113_v25 = vpop.f32.mrf.mxu2  ;;  %v118_v26 = vpop.f32.mrf.mxu3 }
  0xa6   :  { %v114_v27 = vadd.f32 %v279_v20, %v113_v25  ;;  %v105_v28 = vpop.f32.mrf.mxu0  ;;  %v110_v29 = vpop.f32.mrf.mxu1  ;;  %v119_v35 = vadd.f32 %v279_v20, %v118_v26 }
  0xa7   :  { %v106_v30 = vadd.f32 %v279_v20, %v105_v28  ;;  %v111_v31 = vadd.f32 %v279_v20, %v110_v29 }
  0xa8   :  { %131 = vmax.xlane.f32.xlu2 %v114_v27 }
  0xa9   :  { %129 = vmax.xlane.f32.xlu1 %v111_v31  ;;  %125 = vmax.xlane.f32.xlu0 %v106_v30 }
  0xad   :  { %v115_v32 = vpop.f32.mrf.mxu2  ;;  %v120_v33 = vpop.f32.mrf.mxu3 }
  0xae   :  { %v116_v34 = vadd.f32 %v279_v20, %v115_v32  ;;  %v121_v36 = vadd.f32 %v279_v20, %v120_v33 }
  0xb0   :  { %133 = vmax.xlane.f32.xlu2 %v116_v34 }
  0xb1   :  { %137 = vmax.xlane.f32.xlu1 %v121_v36  ;;  %135 = vmax.xlane.f32.xlu0 %v119_v35 }
 0x114   :  { %v128_v37 = vpop.xlane.xlu1 %127  ;;  %v124_v38 = vpop.xlane.xlu0 %123 }
 0x115   :  { %v141_v39 = vsub.f32 %v109_v24, %v128_v37  ;;  %v139_v40 = vsub.f32 %v104_v23, %v124_v38 }
 0x117   :  { %v151_v41 = vmul.f32 1.442695, %v141_v39  ;;  %v147_v42 = vmul.f32 1.442695, %v139_v40 }
 0x119   :  { %280 = vpow2.f32 %v151_v41 }
 0x11a   :  { %282 = vpow2.f32 %v147_v42 }
 0x11b   :  { %v132_v43 = vpop.xlane.xlu2 %131 }
 0x11c   :  { %v383_v44 = vsub.f32 %v114_v27, %v132_v43  ;;  %v130_v45 = vpop.xlane.xlu1 %129  ;;  %v126_v46 = vpop.xlane.xlu0 %125 }
 0x11d   :  { %v385_v47 = vsub.f32 %v111_v31, %v130_v45  ;;  %v389_v51 = vsub.f32 %v106_v30, %v126_v46 }
 0x11e   :  { %v155_v48 = vmul.f32 1.442695, %v383_v44 }
 0x11f   :  { %v281_v49 = vpop.eup %280  ;;  %v153_v50 = vmul.f32 1.442695, %v385_v47  ;;  %v149_v53 = vmul.f32 1.442695, %v389_v51 }
 0x120   :  { %v283_v52 = vpop.eup %282  ;;  %284 = vpow2.f32 %v155_v48  ;;  %167 = vadd.xlane.f32.xlu1 %v281_v49 }
 0x121   :  { %286 = vpow2.f32 %v153_v50  ;;  %163 = vadd.xlane.f32.xlu2 %v283_v52 }
 0x122   :  { %288 = vpow2.f32 %v149_v53 }
 0x123   :  { %v134_v54 = vpop.xlane.xlu2 %133 }
 0x124   :  { %v392_v55 = vsub.f32 %v116_v34, %v134_v54  ;;  %v136_v56 = vpop.xlane.xlu0 %135  ;;  %v138_v57 = vpop.xlane.xlu1 %137 }
 0x125   :  { %v394_v58 = vsub.f32 %v119_v35, %v136_v56  ;;  %v146_v63 = vsub.f32 %v121_v36, %v138_v57 }
 0x126   :  { %v285_v59 = vpop.eup %284  ;;  %v157_v60 = vmul.f32 1.442695, %v392_v55 }
 0x127   :  { %v287_v61 = vpop.eup %286  ;;  %v159_v62 = vmul.f32 1.442695, %v394_v58  ;;  %171 = vadd.xlane.f32.xlu0 %v285_v59  ;;  %v161_v0 = vmul.f32 1.442695, %v146_v63 }
 0x128   :  { %290 = vpow2.f32 %v157_v60  ;;  %v289_v1 = vpop.eup %288 }
 0x129   :  { %169 = vadd.xlane.f32.xlu2 %v287_v61  ;;  %292 = vpow2.f32 %v159_v62 }
 0x12a   :  { %294 = vpow2.f32 %v161_v0 }
 0x12e   :  { %v291_v2 = vpop.eup %290 }
 0x12f   :  { %173 = vadd.xlane.f32.xlu1 %v291_v2  ;;  %165 = vadd.xlane.f32.xlu0 %v289_v1  ;;  %v293_v3 = vpop.eup %292 }
 0x130   :  { %v295_v4 = vpop.eup %294 }
 0x131   :  { %175 = vadd.xlane.f32.xlu2 %v293_v3 }
 0x137   :  { %177 = vadd.xlane.f32.xlu0 %v295_v4 }
 0x193   :  { %v168_v5 = vpop.xlane.xlu1 %167 }
 0x194   :  { %296 = vlog2.f32 %v168_v5  ;;  %v164_v6 = vpop.xlane.xlu2 %163 }
 0x195   :  { %298 = vlog2.f32 %v164_v6 }
 0x19a   :  { %v297_v7 = vpop.eup %296  ;;  %v172_v8 = vpop.xlane.xlu0 %171 }
 0x19b   :  { %v299_v9 = vpop.eup %298  ;;  %v184_v10 = vmul.f32 0.6931472, %v297_v7  ;;  %300 = vlog2.f32 %v172_v8 }
 0x19c   :  { %v180_v11 = vmul.f32 0.6931472, %v299_v9  ;;  %v170_v12 = vpop.xlane.xlu2 %169 }
 0x19d   :  { %v197_v13 = vsub.f32 %v141_v39, %v184_v10  ;;  %302 = vlog2.f32 %v170_v12 }
 0x19e   :  { %v195_v14 = vsub.f32 %v139_v40, %v180_v11 }
 0x19f   :  { %205 = vst [vmem:[%s430_s3 + $0x10] sm:$0xff] %v197_v13 }
 0x1a0   :  { %203 = vst [vmem:[%s430_s3] sm:$0xff] %v195_v14 }
 0x1a1   :  { %v301_v15 = vpop.eup %300 }
 0x1a2   :  { %v188_v16 = vmul.f32 0.6931472, %v301_v15  ;;  %v174_v17 = vpop.xlane.xlu1 %173  ;;  %v166_v18 = vpop.xlane.xlu0 %165 }
 0x1a3   :  { %v303_v19 = vpop.eup %302  ;;  %304 = vlog2.f32 %v174_v17 }
 0x1a4   :  { %v199_v20 = vsub.f32 %v383_v44, %v188_v16  ;;  %v186_v21 = vmul.f32 0.6931472, %v303_v19  ;;  %306 = vlog2.f32 %v166_v18  ;;  %v176_v22 = vpop.xlane.xlu2 %175 }
 0x1a5   :  { %308 = vlog2.f32 %v176_v22 }
 0x1a6   :  { %207 = vst [vmem:[%s430_s3 + $0x20] sm:$0xff] %v199_v20  ;;  %v198_v23 = vsub.f32 %v385_v47, %v186_v21 }
 0x1a8   :  { %206 = vst [vmem:[%s430_s3 + $0x18] sm:$0xff] %v198_v23 }
 0x1a9   :  { %v305_v24 = vpop.eup %304 }
 0x1aa   :  { %v307_v25 = vpop.eup %306  ;;  %v190_v26 = vmul.f32 0.6931472, %v305_v24  ;;  %v178_v27 = vpop.xlane.xlu0 %177 }
 0x1ab   :  { %v309_v28 = vpop.eup %308  ;;  %v182_v29 = vmul.f32 0.6931472, %v307_v25  ;;  %310 = vlog2.f32 %v178_v27 }
 0x1ac   :  { %v200_v30 = vsub.f32 %v392_v55, %v190_v26  ;;  %v192_v31 = vmul.f32 0.6931472, %v309_v28 }
 0x1ad   :  { %v196_v32 = vsub.f32 %v389_v51, %v182_v29 }
 0x1ae   :  { %208 = vst [vmem:[%s430_s3 + $0x28] sm:$0xff] %v200_v30  ;;  %v201_v33 = vsub.f32 %v394_v58, %v192_v31 }
 0x1af   :  { %204 = vst [vmem:[%s430_s3 + $0x8] sm:$0xff] %v196_v32 }
 0x1b0   :  { %209 = vst [vmem:[%s430_s3 + $0x30] sm:$0xff] %v201_v33 }
 0x1b1   :  { %v311_v34 = vpop.eup %310 }
 0x1b2   :  { %v194_v35 = vmul.f32 0.6931472, %v311_v34 }
 0x1b4   :  { %v202_v36 = vsub.f32 %v146_v63, %v194_v35 }
 0x1b6   :  { %210 = vst [vmem:[%s430_s3 + $0x38] sm:$0xff] %v202_v36 }

// kernel: network_forward.8
= control target key start
LH: loop header
LB: loop body
LE: loop exit
PB: predicated region body
PF: predicated region fallthrough
CT: control target
= control target key end

     0   :  { %12 = vsyncpa [#allocation5], 0  ;;  %s4080_s24 = smov [#allocation4]   ;;  %s4081_s26 = smov 256   ;;  %s4281_s0 = inlined_call_operand.vmem [shape: f32[8,8,512], index: 0, kind: input, shape index: {}]   ;;  %s4282_s1 = inlined_call_operand.hbm [shape: bf16[128,512], index: 1, kind: input, shape index: {}]   ;;  %s4283_s2 = inlined_call_operand.vmem [shape: f32[8,128], index: 2, kind: input, shape index: {}, may-alias: {2,3}]   ;;  %s4284_s3 = inlined_call_operand.vmem [shape: f32[8,128], index: 3, kind: input, shape index: {}, may-alias: {2,3}]   ;;  %s4285_s4 = inlined_call_operand.vmem [shape: f32[8,8,128], index: 4, kind: output, shape index: {0}]   ;;  %s4286_s5 = inlined_call_operand.vmem [shape: f32[8,128], index: 5, kind: output, shape index: {1}]   ;;  %s4287_s6 = inlined_call_operand.vmem [shape: f32[8,128], index: 6, kind: output, shape index: {2}]  }
   0x1   :  { %s19_s23 = sshll.u32 %s4282_s1, 4  ;;  %s21_s25 = sshll.u32 %s4080_s24, 4  ;;  %s20_s23 = int_to_ptr.hbm [resolvable:$true] %s19_s23  ;;  %s22_s25 = int_to_ptr.vmem [resolvable:$true] %s21_s25 }
   0x2   :  { %s4082_s27 = smov 16  }
   0x3   :  { %27 = dma.hbm_to_vmem [thread:$0]  %s20_s23, 4096, %s22_s25, [#allocation5], %s4081_s26, %s4081_s26, %s4082_s27  }
   0x4   :  { %4078 = dma.done.wait [#allocation5], 4096  }
   0x5   :  { %4079 = vsyncadd [#allocation5], 4294963200  ;;  %v2698_v0 = vld [vmem:[#allocation4 + $0xe0] sm:$0xf]  ;;  %v3697_v1 = vld [vmem:[#allocation4 + $0xec] sm:$0xf0] }
   0x6   :  { %v3695_v2 = vld [vmem:[#allocation4 + $0xe4] sm:$0xf]  ;;  %v2699_v3 = vor.u32 %v3697_v1, %v2698_v0  ;;  %v2700_v4 = vld [vmem:[#allocation4 + $0xf0] sm:$0xf0]  ;;  %v3696_v5 = vld [vmem:[#allocation4 + $0xec] sm:$0xf] }
   0x7   :  { %v2708_v6 = vld [vmem:[#allocation4 + $0xf8] sm:$0xf0]  ;;  %v2703_v7 = vor.u32 %v3695_v2, %v2700_v4  ;;  %v2682_v9 = vld [vmem:[#allocation4 + $0xc0] sm:$0xf]  ;;  %v3693_v10 = vld [vmem:[#allocation4 + $0xcc] sm:$0xf0] }
   0x8   :  { %v2711_v8 = vor.u32 %v3696_v5, %v2708_v6  ;;  %v3691_v11 = vld [vmem:[#allocation4 + $0xc4] sm:$0xf]  ;;  %243 = vmatpush.bf16.msra.mxu0 %v2699_v3  ;;  %v2683_v12 = vor.u32 %v3693_v10, %v2682_v9  ;;  %v2684_v13 = vld [vmem:[#allocation4 + $0xd0] sm:$0xf0]  ;;  %v3692_v14 = vld [vmem:[#allocation4 + $0xcc] sm:$0xf] }
   0x9   :  { %v2692_v15 = vld [vmem:[#allocation4 + $0xd8] sm:$0xf0]  ;;  %256 = vmatpush.bf16.msra.mxu1 %v2703_v7  ;;  %v2687_v16 = vor.u32 %v3691_v11, %v2684_v13  ;;  %v2706_v18 = vld [vmem:[#allocation4 + $0xe8] sm:$0xf]  ;;  %v3698_v19 = vld [vmem:[#allocation4 + $0xf4] sm:$0xf0] }
   0xa   :  { %282 = vmatpush.bf16.msra.mxu3 %v2711_v8  ;;  %v2695_v17 = vor.u32 %v3692_v14, %v2692_v15  ;;  %v2666_v20 = vld [vmem:[#allocation4 + $0xa0] sm:$0xf]  ;;  %v2707_v21 = vor.u32 %v3698_v19, %v2706_v18  ;;  %v3689_v22 = vld [vmem:[#allocation4 + $0xac] sm:$0xf0]  ;;  %v3687_v23 = vld [vmem:[#allocation4 + $0xa4] sm:$0xf] }
   0xb   :  { %v2668_v24 = vld [vmem:[#allocation4 + $0xb0] sm:$0xf0]  ;;  %v3688_v25 = vld [vmem:[#allocation4 + $0xac] sm:$0xf]  ;;  %v2676_v26 = vld [vmem:[#allocation4 + $0xb8] sm:$0xf0]  ;;  %v2667_v28 = vor.u32 %v3689_v22, %v2666_v20 }
   0xc   :  { %v2690_v27 = vld [vmem:[#allocation4 + $0xc8] sm:$0xf]  ;;  %244 = vmatpush.bf16.msra.mxu0 %v2683_v12  ;;  %269 = vmatpush.bf16.msra.mxu2 %v2707_v21  ;;  %v3694_v29 = vld [vmem:[#allocation4 + $0xd4] sm:$0xf0]  ;;  %v2650_v30 = vld [vmem:[#allocation4 + $0x80] sm:$0xf]  ;;  %v2671_v32 = vor.u32 %v3687_v23, %v2668_v24  ;;  %v2679_v33 = vor.u32 %v3688_v25, %v2676_v26 }
   0xd   :  { %v3685_v31 = vld [vmem:[#allocation4 + $0x8c] sm:$0xf0]  ;;  %257 = vmatpush.bf16.msra.mxu1 %v2687_v16  ;;  %v2691_v34 = vor.u32 %v3694_v29, %v2690_v27  ;;  %v3683_v35 = vld [vmem:[#allocation4 + $0x84] sm:$0xf]  ;;  %v2652_v36 = vld [vmem:[#allocation4 + $0x90] sm:$0xf0] }
   0xe   :  { %283 = vmatpush.bf16.msra.mxu3 %v2695_v17  ;;  %v3684_v37 = vld [vmem:[#allocation4 + $0x8c] sm:$0xf]  ;;  %v2660_v38 = vld [vmem:[#allocation4 + $0x98] sm:$0xf0]  ;;  %v2674_v39 = vld [vmem:[#allocation4 + $0xa8] sm:$0xf]  ;;  %v2651_v41 = vor.u32 %v3685_v31, %v2650_v30  ;;  %v2655_v45 = vor.u32 %v3683_v35, %v2652_v36 }
   0xf   :  { %v3690_v40 = vld [vmem:[#allocation4 + $0xb4] sm:$0xf0]  ;;  %v2634_v43 = vld [vmem:[#allocation4 + $0x60] sm:$0xf]  ;;  %v3681_v44 = vld [vmem:[#allocation4 + $0x6c] sm:$0xf0]  ;;  %v2663_v46 = vor.u32 %v3684_v37, %v2660_v38 }
  0x10   :  { %245 = vmatpush.bf16.msra.mxu0 %v2667_v28  ;;  %270 = vmatpush.bf16.msra.mxu2 %v2691_v34  ;;  %v2675_v42 = vor.u32 %v3690_v40, %v2674_v39  ;;  %v3679_v47 = vld [vmem:[#allocation4 + $0x64] sm:$0xf]  ;;  %v2658_v48 = vld [vmem:[#allocation4 + $0x88] sm:$0xf]  ;;  %v3686_v49 = vld [vmem:[#allocation4 + $0x94] sm:$0xf0]  ;;  %v2635_v53 = vor.u32 %v3681_v44, %v2634_v43 }
  0x11   :  { %258 = vmatpush.bf16.msra.mxu1 %v2671_v32  ;;  %v2636_v50 = vld [vmem:[#allocation4 + $0x70] sm:$0xf0]  ;;  %v3680_v51 = vld [vmem:[#allocation4 + $0x6c] sm:$0xf]  ;;  %v2644_v52 = vld [vmem:[#allocation4 + $0x78] sm:$0xf0]  ;;  %v2659_v54 = vor.u32 %v3686_v49, %v2658_v48 }
  0x12   :  { %284 = vmatpush.bf16.msra.mxu3 %v2679_v33  ;;  %v2618_v55 = vld [vmem:[#allocation4 + $0x40] sm:$0xf]  ;;  %v3677_v56 = vld [vmem:[#allocation4 + $0x4c] sm:$0xf0]  ;;  %v2639_v57 = vor.u32 %v3679_v47, %v2636_v50  ;;  %v2647_v58 = vor.u32 %v3680_v51, %v2644_v52  ;;  %v3675_v59 = vld [vmem:[#allocation4 + $0x44] sm:$0xf] }
  0x13   :  { %v2642_v60 = vld [vmem:[#allocation4 + $0x68] sm:$0xf]  ;;  %v3682_v61 = vld [vmem:[#allocation4 + $0x74] sm:$0xf0]  ;;  %v2620_v62 = vld [vmem:[#allocation4 + $0x50] sm:$0xf0]  ;;  %v2619_v1 = vor.u32 %v3677_v56, %v2618_v55 }
  0x14   :  { %246 = vmatpush.bf16.msra.mxu0 %v2651_v41  ;;  %271 = vmatpush.bf16.msra.mxu2 %v2675_v42  ;;  %v3676_v63 = vld [vmem:[#allocation4 + $0x4c] sm:$0xf]  ;;  %v2628_v0 = vld [vmem:[#allocation4 + $0x58] sm:$0xf0]  ;;  %v2643_v2 = vor.u32 %v3682_v61, %v2642_v60  ;;  %v2602_v3 = vld [vmem:[#allocation4 + $0x20] sm:$0xf]  ;;  %v2623_v5 = vor.u32 %v3675_v59, %v2620_v62 }
  0x15   :  { %259 = vmatpush.bf16.msra.mxu1 %v2655_v45  ;;  %v3673_v4 = vld [vmem:[#allocation4 + $0x2c] sm:$0xf0]  ;;  %v2631_v6 = vor.u32 %v3676_v63, %v2628_v0  ;;  %v3671_v7 = vld [vmem:[#allocation4 + $0x24] sm:$0xf]  ;;  %v2626_v8 = vld [vmem:[#allocation4 + $0x48] sm:$0xf] }
  0x16   :  { %285 = vmatpush.bf16.msra.mxu3 %v2663_v46  ;;  %v3678_v9 = vld [vmem:[#allocation4 + $0x54] sm:$0xf0]  ;;  %v2604_v10 = vld [vmem:[#allocation4 + $0x30] sm:$0xf0]  ;;  %v3672_v11 = vld [vmem:[#allocation4 + $0x2c] sm:$0xf]  ;;  %v2603_v13 = vor.u32 %v3673_v4, %v2602_v3 }
  0x17   :  { %v2612_v12 = vld [vmem:[#allocation4 + $0x38] sm:$0xf0]  ;;  %v2627_v14 = vor.u32 %v3678_v9, %v2626_v8  ;;  %v2586_v15 = vld [vmem:[#allocation4] sm:$0xf]  ;;  %v3669_v16 = vld [vmem:[#allocation4 + $0xc] sm:$0xf0]  ;;  %v2607_v17 = vor.u32 %v3671_v7, %v2604_v10 }
  0x18   :  { %247 = vmatpush.bf16.msra.mxu0 %v2635_v53  ;;  %272 = vmatpush.bf16.msra.mxu2 %v2659_v54  ;;  %v2615_v18 = vor.u32 %v3672_v11, %v2612_v12  ;;  %v3667_v19 = vld [vmem:[#allocation4 + $0x4] sm:$0xf]  ;;  %v2610_v20 = vld [vmem:[#allocation4 + $0x28] sm:$0xf]  ;;  %v3674_v21 = vld [vmem:[#allocation4 + $0x34] sm:$0xf0]  ;;  %v2587_v25 = vor.u32 %v3669_v16, %v2586_v15 }
  0x19   :  { %260 = vmatpush.bf16.msra.mxu1 %v2639_v57  ;;  %v2588_v22 = vld [vmem:[#allocation4 + $0x10] sm:$0xf0]  ;;  %v3668_v23 = vld [vmem:[#allocation4 + $0xc] sm:$0xf]  ;;  %v2596_v24 = vld [vmem:[#allocation4 + $0x18] sm:$0xf0]  ;;  %v2611_v27 = vor.u32 %v3674_v21, %v2610_v20 }
  0x1a   :  { %286 = vmatpush.bf16.msra.mxu3 %v2647_v58  ;;  %v40_v26 = vld [vmem:[%s4283_s2] sm:$0xff]  ;;  %v2591_v28 = vor.u32 %v3667_v19, %v2588_v22  ;;  %v2599_v29 = vor.u32 %v3668_v23, %v2596_v24  ;;  %v2594_v30 = vld [vmem:[#allocation4 + $0x8] sm:$0xf]  ;;  %v3670_v31 = vld [vmem:[#allocation4 + $0x14] sm:$0xf0] }
  0x1b   :  { %v46_v32 = vpack.c.bf16 %v40_v26, %v40_v26  ;;  %v2595_v33 = vor.u32 %v3670_v31, %v2594_v30  ;;  %v2833_v34 = vld [vmem:[#allocation4 + $0xe0] sm:$0xf]  ;;  %v3729_v35 = vld [vmem:[#allocation4 + $0xec] sm:$0xf0]  ;;  %v3727_v36 = vld [vmem:[#allocation4 + $0xe4] sm:$0xf] }
  0x1c   :  { %248 = vmatpush.bf16.msra.mxu0 %v2619_v1  ;;  %273 = vmatpush.bf16.msra.mxu2 %v2643_v2  ;;  %v2834_v37 = vor.u32 %v3729_v35, %v2833_v34  ;;  %v2835_v38 = vld [vmem:[#allocation4 + $0xf0] sm:$0xf0]  ;;  %v2841_v39 = vld [vmem:[#allocation4 + $0xe8] sm:$0xf]  ;;  %v3730_v40 = vld [vmem:[#allocation4 + $0xf4] sm:$0xf0] }
  0x1d   :  { %261 = vmatpush.bf16.msra.mxu1 %v2623_v5  ;;  %v2838_v41 = vor.u32 %v3727_v36, %v2835_v38  ;;  %v2842_v42 = vor.u32 %v3730_v40, %v2841_v39  ;;  %v3728_v43 = vld [vmem:[#allocation4 + $0xec] sm:$0xf]  ;;  %v2843_v44 = vld [vmem:[#allocation4 + $0xf8] sm:$0xf0]  ;;  %v2817_v46 = vld [vmem:[#allocation4 + $0xc0] sm:$0xf] }
  0x1e   :  { %287 = vmatpush.bf16.msra.mxu3 %v2631_v6  ;;  %v2846_v45 = vor.u32 %v3728_v43, %v2843_v44  ;;  %v3725_v47 = vld [vmem:[#allocation4 + $0xcc] sm:$0xf0]  ;;  %v3723_v48 = vld [vmem:[#allocation4 + $0xc4] sm:$0xf]  ;;  %v2819_v50 = vld [vmem:[#allocation4 + $0xd0] sm:$0xf0] }
  0x1f   :  { %v2818_v49 = vor.u32 %v3725_v47, %v2817_v46  ;;  %v2825_v51 = vld [vmem:[#allocation4 + $0xc8] sm:$0xf]  ;;  %v3726_v52 = vld [vmem:[#allocation4 + $0xd4] sm:$0xf0]  ;;  %v2822_v53 = vor.u32 %v3723_v48, %v2819_v50  ;;  %v3724_v55 = vld [vmem:[#allocation4 + $0xcc] sm:$0xf] }
  0x20   :  { %249 = vmatpush.bf16.msra.mxu0 %v2603_v13  ;;  %274 = vmatpush.bf16.msra.mxu2 %v2627_v14  ;;  %v2826_v54 = vor.u32 %v3726_v52, %v2825_v51  ;;  %v2827_v56 = vld [vmem:[#allocation4 + $0xd8] sm:$0xf0]  ;;  %v2801_v58 = vld [vmem:[#allocation4 + $0xa0] sm:$0xf]  ;;  %v3721_v59 = vld [vmem:[#allocation4 + $0xac] sm:$0xf0] }
  0x21   :  { %262 = vmatpush.bf16.msra.mxu1 %v2607_v17  ;;  %v2830_v57 = vor.u32 %v3724_v55, %v2827_v56  ;;  %v3719_v60 = vld [vmem:[#allocation4 + $0xa4] sm:$0xf]  ;;  %v2802_v61 = vor.u32 %v3721_v59, %v2801_v58  ;;  %v2803_v62 = vld [vmem:[#allocation4 + $0xb0] sm:$0xf0]  ;;  %v2809_v63 = vld [vmem:[#allocation4 + $0xa8] sm:$0xf] }
  0x22   :  { %288 = vmatpush.bf16.msra.mxu3 %v2615_v18  ;;  %v2806_v0 = vor.u32 %v3719_v60, %v2803_v62  ;;  %v3722_v1 = vld [vmem:[#allocation4 + $0xb4] sm:$0xf0]  ;;  %v3720_v2 = vld [vmem:[#allocation4 + $0xac] sm:$0xf]  ;;  %v2811_v3 = vld [vmem:[#allocation4 + $0xb8] sm:$0xf0] }
  0x23   :  { %v2810_v4 = vor.u32 %v3722_v1, %v2809_v63  ;;  %v2814_v5 = vor.u32 %v3720_v2, %v2811_v3  ;;  %v2785_v6 = vld [vmem:[#allocation4 + $0x80] sm:$0xf]  ;;  %v3717_v7 = vld [vmem:[#allocation4 + $0x8c] sm:$0xf0]  ;;  %v3715_v8 = vld [vmem:[#allocation4 + $0x84] sm:$0xf] }
  0x24   :  { %250 = vmatpush.bf16.msra.mxu0 %v2587_v25  ;;  %275 = vmatpush.bf16.msra.mxu2 %v2611_v27  ;;  %v2786_v9 = vor.u32 %v3717_v7, %v2785_v6  ;;  %v2787_v10 = vld [vmem:[#allocation4 + $0x90] sm:$0xf0]  ;;  %v2793_v11 = vld [vmem:[#allocation4 + $0x88] sm:$0xf]  ;;  %v3718_v12 = vld [vmem:[#allocation4 + $0x94] sm:$0xf0] }
  0x25   :  { %263 = vmatpush.bf16.msra.mxu1 %v2591_v28  ;;  %v2790_v13 = vor.u32 %v3715_v8, %v2787_v10  ;;  %v2794_v14 = vor.u32 %v3718_v12, %v2793_v11  ;;  %v3716_v15 = vld [vmem:[#allocation4 + $0x8c] sm:$0xf]  ;;  %v2795_v16 = vld [vmem:[#allocation4 + $0x98] sm:$0xf0]  ;;  %v79_v17 = vld [vmem:[%s4281_s0] sm:$0xff] }
  0x26   :  { %289 = vmatpush.bf16.msra.mxu3 %v2599_v29  ;;  %v2798_v18 = vor.u32 %v3716_v15, %v2795_v16  ;;  %v2769_v19 = vld [vmem:[#allocation4 + $0x60] sm:$0xf]  ;;  %v3713_v20 = vld [vmem:[#allocation4 + $0x6c] sm:$0xf0]  ;;  %v3711_v21 = vld [vmem:[#allocation4 + $0x64] sm:$0xf] }
  0x27   :  { %251 = vmatmul.bf16.vlgmr.msra.gmra.mxu0 %v46_v32  ;;  %v2770_v22 = vor.u32 %v3713_v20, %v2769_v19  ;;  %v2771_v23 = vld [vmem:[#allocation4 + $0x70] sm:$0xf0]  ;;  %v2777_v24 = vld [vmem:[#allocation4 + $0x68] sm:$0xf]  ;;  %v3714_v25 = vld [vmem:[#allocation4 + $0x74] sm:$0xf0] }
  0x28   :  { %264 = vmatmul.bf16.vlgmr.msra.gmra.mxu1 %v46_v32  ;;  %276 = vmatpush.bf16.msra.mxu2 %v2595_v33  ;;  %v80_v26 = vld [vmem:[%s4281_s0 + $0x8] sm:$0xff]  ;;  %v2774_v27 = vor.u32 %v3711_v21, %v2771_v23  ;;  %v2778_v28 = vor.u32 %v3714_v25, %v2777_v24  ;;  %v2779_v30 = vld [vmem:[#allocation4 + $0x78] sm:$0xf0]  ;;  %v2753_v35 = vld [vmem:[#allocation4 + $0x40] sm:$0xf] }
  0x29   :  { %290 = vmatmul.bf16.vlgmr.msra.gmra.mxu3 %v46_v32  ;;  %557 = vmatpush.bf16.msrb.mxu0 %v2834_v37  ;;  %v3712_v29 = vld [vmem:[#allocation4 + $0x6c] sm:$0xf]  ;;  %v3709_v36 = vld [vmem:[#allocation4 + $0x4c] sm:$0xf0]  ;;  %v3707_v37 = vld [vmem:[#allocation4 + $0x44] sm:$0xf] }
  0x2a   :  { %570 = vmatpush.bf16.msrb.mxu1 %v2838_v41  ;;  %596 = vmatpush.bf16.msrb.mxu3 %v2846_v45  ;;  %v2754_v39 = vor.u32 %v3709_v36, %v2753_v35  ;;  %v2755_v40 = vld [vmem:[#allocation4 + $0x50] sm:$0xf0]  ;;  %v2761_v41 = vld [vmem:[#allocation4 + $0x48] sm:$0xf]  ;;  %v82_v44 = vld [vmem:[%s4281_s0 + $0x18] sm:$0xff] }
  0x2b   :  { %277 = vmatmul.bf16.vlgmr.msra.gmra.mxu2 %v46_v32  ;;  %v2782_v32 = vor.u32 %v3712_v29, %v2779_v30  ;;  %v2758_v45 = vor.u32 %v3707_v37, %v2755_v40  ;;  %v3708_v47 = vld [vmem:[#allocation4 + $0x4c] sm:$0xf]  ;;  %v2763_v48 = vld [vmem:[#allocation4 + $0x58] sm:$0xf0]  ;;  %v2737_v51 = vld [vmem:[#allocation4 + $0x20] sm:$0xf] }
  0x2c   :  { %583 = vmatpush.bf16.msrb.mxu2 %v2842_v42  ;;  %v3710_v42 = vld [vmem:[#allocation4 + $0x54] sm:$0xf0]  ;;  %v2766_v50 = vor.u32 %v3708_v47, %v2763_v48  ;;  %v3705_v52 = vld [vmem:[#allocation4 + $0x2c] sm:$0xf0]  ;;  %v2739_v55 = vld [vmem:[#allocation4 + $0x30] sm:$0xf0] }
  0x2d   :  { %558 = vmatpush.bf16.msrb.mxu0 %v2818_v49  ;;  %v2762_v46 = vor.u32 %v3710_v42, %v2761_v41  ;;  %v2745_v56 = vld [vmem:[#allocation4 + $0x28] sm:$0xf]  ;;  %v3706_v58 = vld [vmem:[#allocation4 + $0x34] sm:$0xf0]  ;;  %v3704_v59 = vld [vmem:[#allocation4 + $0x2c] sm:$0xf] }
  0x2e   :  { %571 = vmatpush.bf16.msrb.mxu1 %v2822_v53  ;;  %597 = vmatpush.bf16.msrb.mxu3 %v2830_v57  ;;  %v2738_v53 = vor.u32 %v3705_v52, %v2737_v51  ;;  %v2747_v60 = vld [vmem:[#allocation4 + $0x38] sm:$0xf0]  ;;  %v2746_v62 = vor.u32 %v3706_v58, %v2745_v56  ;;  %v3701_v1 = vld [vmem:[#allocation4 + $0xc] sm:$0xf0]  ;;  %v3699_v2 = vld [vmem:[#allocation4 + $0x4] sm:$0xf] }
  0x2f   :  { %v2750_v63 = vor.u32 %v3704_v59, %v2747_v60  ;;  %v2723_v6 = vld [vmem:[#allocation4 + $0x10] sm:$0xf0]  ;;  %v2729_v7 = vld [vmem:[#allocation4 + $0x8] sm:$0xf]  ;;  %v3702_v8 = vld [vmem:[#allocation4 + $0x14] sm:$0xf0] }
  0x30   :  { %584 = vmatpush.bf16.msrb.mxu2 %v2826_v54  ;;  %v3703_v54 = vld [vmem:[#allocation4 + $0x24] sm:$0xf]  ;;  %v2726_v10 = vor.u32 %v3699_v2, %v2723_v6  ;;  %v3700_v11 = vld [vmem:[#allocation4 + $0xc] sm:$0xf]  ;;  %v2731_v12 = vld [vmem:[#allocation4 + $0x18] sm:$0xf0] }
  0x31   :  { %559 = vmatpush.bf16.msrb.mxu0 %v2802_v61  ;;  %v2742_v57 = vor.u32 %v3703_v54, %v2739_v55  ;;  %v2734_v15 = vor.u32 %v3700_v11, %v2731_v12  ;;  %v81_v21 = vld [vmem:[%s4281_s0 + $0x10] sm:$0xff]  ;;  %v2977_v6 = vld [vmem:[#allocation4 + $0xe8] sm:$0xf]  ;;  %v2979_v11 = vld [vmem:[#allocation4 + $0xf8] sm:$0xf0] }
  0x32   :  { %572 = vmatpush.bf16.msrb.mxu1 %v2806_v0  ;;  %598 = vmatpush.bf16.msrb.mxu3 %v2814_v5  ;;  %v2721_v0 = vld [vmem:[#allocation4] sm:$0xf]  ;;  %v3761_v2 = vld [vmem:[#allocation4 + $0xec] sm:$0xf0] }
  0x33   :  { %v2722_v5 = vor.u32 %v3701_v1, %v2721_v0  ;;  %v2969_v1 = vld [vmem:[#allocation4 + $0xe0] sm:$0xf] }
  0x34   :  { %585 = vmatpush.bf16.msrb.mxu2 %v2810_v4 }
  0x35   :  { %560 = vmatpush.bf16.msrb.mxu0 %v2786_v9 }
  0x36   :  { %573 = vmatpush.bf16.msrb.mxu1 %v2790_v13  ;;  %599 = vmatpush.bf16.msrb.mxu3 %v2798_v18 }
  0x38   :  { %586 = vmatpush.bf16.msrb.mxu2 %v2794_v14  ;;  %v2730_v14 = vor.u32 %v3702_v8, %v2729_v7  ;;  %v3762_v7 = vld [vmem:[#allocation4 + $0xf4] sm:$0xf0] }
  0x39   :  { %561 = vmatpush.bf16.msrb.mxu0 %v2770_v22 }
  0x3a   :  { %574 = vmatpush.bf16.msrb.mxu1 %v2774_v27  ;;  %600 = vmatpush.bf16.msrb.mxu3 %v2782_v32 }
  0x3c   :  { %587 = vmatpush.bf16.msrb.mxu2 %v2778_v28 }
  0x3d   :  { %562 = vmatpush.bf16.msrb.mxu0 %v2754_v39 }
  0x3e   :  { %575 = vmatpush.bf16.msrb.mxu1 %v2758_v45  ;;  %601 = vmatpush.bf16.msrb.mxu3 %v2766_v50 }
  0x40   :  { %588 = vmatpush.bf16.msrb.mxu2 %v2762_v46  ;;  %v42_v46 = vld [vmem:[%s4284_s3] sm:$0xff] }
  0x41   :  { %563 = vmatpush.bf16.msrb.mxu0 %v2738_v53 }
  0x42   :  { %576 = vmatpush.bf16.msrb.mxu1 %v2742_v57  ;;  %602 = vmatpush.bf16.msrb.mxu3 %v2750_v63 }
  0x44   :  { %589 = vmatpush.bf16.msrb.mxu2 %v2746_v62 }
  0x45   :  { %564 = vmatpush.bf16.msrb.mxu0 %v2722_v5  ;;  %v2971_v5 = vld [vmem:[#allocation4 + $0xf0] sm:$0xf0] }
  0x46   :  { %577 = vmatpush.bf16.msrb.mxu1 %v2726_v10  ;;  %603 = vmatpush.bf16.msrb.mxu3 %v2734_v15  ;;  %v3760_v10 = vld [vmem:[#allocation4 + $0xec] sm:$0xf]  ;;  %v3755_v15 = vld [vmem:[#allocation4 + $0xc4] sm:$0xf] }
  0x47   :  { %v2982_v12 = vor.u32 %v3760_v10, %v2979_v11  ;;  %v3742_v10 = vld [vmem:[#allocation4 + $0x54] sm:$0xf0] }
  0x48   :  { %590 = vmatpush.bf16.msrb.mxu2 %v2730_v14  ;;  %v3757_v14 = vld [vmem:[#allocation4 + $0xcc] sm:$0xf0] }
  0x4a   :  { %911 = vmatpush.bf16.msra.mxu3 %v2982_v12 }
  0xa4   :  { %v252_v31 = vpop.f32.mrf.mxu0 }
  0xa5   :  { %v253_v33 = vadd.f32 %v252_v31, %v79_v17  ;;  %v265_v34 = vpop.f32.mrf.mxu1 }
  0xa6   :  { %v266_v38 = vadd.f32 %v265_v34, %v80_v26 }
  0xa7   :  { %v2712_v43 = vmul.f32 -1.442695, %v253_v33 }
  0xa8   :  { %v2713_v49 = vmul.f32 -1.442695, %v266_v38 }
  0xa9   :  { %3926 = vpow2.f32 %v2712_v43 }
  0xaa   :  { %3928 = vpow2.f32 %v2713_v49 }
  0xac   :  { %v291_v61 = vpop.f32.mrf.mxu3  ;;  %v254_v4 = vpop.f32.mrf.mxu0 }
  0xad   :  { %v292_v3 = vadd.f32 %v291_v61, %v82_v44  ;;  %v267_v9 = vpop.f32.mrf.mxu1  ;;  %v2970_v4 = vor.u32 %v3761_v2, %v2969_v1 }
  0xae   :  { %v278_v17 = vpop.f32.mrf.mxu2  ;;  %v2978_v9 = vor.u32 %v3762_v7, %v2977_v6  ;;  %v3739_v6 = vld [vmem:[#allocation4 + $0x44] sm:$0xf] }
  0xaf   :  { %v2714_v13 = vmul.f32 -1.442695, %v292_v3  ;;  %v3927_v16 = vpop.eup %3926  ;;  %v279_v24 = vadd.f32 %v278_v17, %v81_v21  ;;  %v3759_v3 = vld [vmem:[#allocation4 + $0xe4] sm:$0xf]  ;;  %872 = vmatpush.bf16.msra.mxu0 %v2970_v4  ;;  %v2955_v17 = vld [vmem:[#allocation4 + $0xd0] sm:$0xf0] }
  0xb0   :  { %v3929_v18 = vpop.eup %3928  ;;  %v298_v19 = vadd.f32 1.0, %v3927_v16  ;;  %v2974_v8 = vor.u32 %v3759_v3, %v2971_v5  ;;  %898 = vmatpush.bf16.msra.mxu2 %v2978_v9  ;;  %v2889_v4 = vld [vmem:[#allocation4 + $0x40] sm:$0xf]  ;;  %v3741_v5 = vld [vmem:[#allocation4 + $0x4c] sm:$0xf0] }
  0xb1   :  { %3930 = vpow2.f32 %v2714_v13  ;;  %v317_v20 = vadd.f32 1.0, %v3929_v18  ;;  %v2953_v13 = vld [vmem:[#allocation4 + $0xc0] sm:$0xf]  ;;  %v2961_v18 = vld [vmem:[#allocation4 + $0xc8] sm:$0xf]  ;;  %v2890_v7 = vor.u32 %v3741_v5, %v2889_v4 }
  0xb2   :  { %3932 = vrcp.f32 %v298_v19  ;;  %v310_v33 = vand.u32 2147483648, %v298_v19  ;;  %v308_v36 = vand.u32 2147483647, %v298_v19  ;;  %vm304_vm2 = vweird.f32 %v298_v19  ;;  %885 = vmatpush.bf16.msra.mxu1 %v2974_v8  ;;  %v2891_v8 = vld [vmem:[#allocation4 + $0x50] sm:$0xf0] }
  0xb3   :  { %3934 = vrcp.f32 %v317_v20  ;;  %v329_v34 = vand.u32 2147483648, %v317_v20  ;;  %v327_v38 = vand.u32 2147483647, %v317_v20  ;;  %vm323_vm3 = vweird.f32 %v317_v20  ;;  %v2897_v9 = vld [vmem:[#allocation4 + $0x48] sm:$0xf] }
  0xb4   :  { %v293_v22 = vpop.f32.mrf.mxu3  ;;  %v311_v43 = vor.u32 1.1754944e-38, %v310_v33  ;;  %vm309_vm6 = vcmp.eq.f32.partialorder %v308_v36, 8.507059e+37  ;;  %v2954_v16 = vor.u32 %v3757_v14, %v2953_v13  ;;  %v2718_v13 = vld [vmem:[%s4281_s0 + $0x38] sm:$0xff]  ;;  %v2894_v14 = vor.u32 %v3739_v6, %v2891_v8 }
  0xb5   :  { %v330_v45 = vor.u32 1.1754944e-38, %v329_v34  ;;  %vm328_vm7 = vcmp.eq.f32.partialorder %v327_v38, 8.507059e+37  ;;  %v3756_v22 = vld [vmem:[#allocation4 + $0xcc] sm:$0xf]  ;;  %v3749_v38 = vld [vmem:[#allocation4 + $0x8c] sm:$0xf0] }
  0xb6   :  { %v280_v26 = vpop.f32.mrf.mxu2  ;;  %873 = vmatpush.bf16.msra.mxu0 %v2954_v16  ;;  %v3752_v34 = vld [vmem:[#allocation4 + $0xac] sm:$0xf] }
  0xb7   :  { %v3931_v23 = vpop.eup %3930  ;;  %v3753_v26 = vld [vmem:[#allocation4 + $0xac] sm:$0xf0]  ;;  %v3740_v16 = vld [vmem:[#allocation4 + $0x4c] sm:$0xf] }
  0xb8   :  { %v337_v25 = vadd.f32 1.0, %v3931_v23  ;;  %v3933_v27 = vpop.eup %3932  ;;  %v2963_v23 = vld [vmem:[#allocation4 + $0xd8] sm:$0xf0] }
  0xb9   :  { %v3935_v28 = vpop.eup %3934  ;;  %v300_v29 = vmul.f32 %v3933_v27, %v298_v19  ;;  %vm305_vm0 = vweird.f32 %v3933_v27  ;;  %v3758_v19 = vld [vmem:[#allocation4 + $0xd4] sm:$0xf0] }
  0xba   :  { %3936 = vrcp.f32 %v337_v25  ;;  %v319_v30 = vmul.f32 %v3935_v28, %v317_v20  ;;  %vm324_vm1 = vweird.f32 %v3935_v28  ;;  %vm306_vm4 = vmor %vm304_vm2, %vm305_vm0  ;;  %v349_v57 = vand.u32 2147483648, %v337_v25 }
  0xbb   :  { %3938 = vtanh.f32 %v279_v24  ;;  %v301_v31 = vsub.f32 1.0, %v300_v29  ;;  %vm325_vm5 = vmor %vm323_vm3, %vm324_vm1  ;;  %vm343_vm9 = vweird.f32 %v337_v25  ;;  %v347_v58 = vand.u32 2147483647, %v337_v25  ;;  %v2939_v29 = vld [vmem:[#allocation4 + $0xb0] sm:$0xf0] }
  0xbc   :  { %v320_v32 = vsub.f32 1.0, %v319_v30  ;;  %v350_v60 = vor.u32 1.1754944e-38, %v349_v57  ;;  %v2958_v20 = vor.u32 %v3755_v15, %v2955_v17  ;;  %v2962_v21 = vor.u32 %v3758_v19, %v2961_v18  ;;  %v2945_v30 = vld [vmem:[#allocation4 + $0xa8] sm:$0xf]  ;;  %v2899_v17 = vld [vmem:[#allocation4 + $0x58] sm:$0xf0] }
  0xbd   :  { %v302_v35 = vmul.f32 %v3933_v27, %v301_v31  ;;  %vm348_vm11 = vcmp.eq.f32.partialorder %v347_v58, 8.507059e+37  ;;  %v2966_v24 = vor.u32 %v3756_v22, %v2963_v23  ;;  %v3754_v31 = vld [vmem:[#allocation4 + $0xb4] sm:$0xf0]  ;;  %v2913_v57 = vld [vmem:[#allocation4 + $0x68] sm:$0xf]  ;;  %v2898_v15 = vor.u32 %v3742_v10, %v2897_v9 }
  0xbe   :  { %v321_v37 = vmul.f32 %v3935_v28, %v320_v32  ;;  %886 = vmatpush.bf16.msra.mxu1 %v2958_v20  ;;  %899 = vmatpush.bf16.msra.mxu2 %v2962_v21  ;;  %v2946_v33 = vor.u32 %v3754_v31, %v2945_v30  ;;  %v3746_v58 = vld [vmem:[#allocation4 + $0x74] sm:$0xf0]  ;;  %v2873_v18 = vld [vmem:[#allocation4 + $0x20] sm:$0xf]  ;;  %v3737_v19 = vld [vmem:[#allocation4 + $0x2c] sm:$0xf0]  ;;  %v2902_v20 = vor.u32 %v3740_v16, %v2899_v17 }
  0xbf   :  { %v303_v40 = vadd.f32 %v3933_v27, %v302_v35  ;;  %912 = vmatpush.bf16.msra.mxu3 %v2966_v24  ;;  %v2947_v35 = vld [vmem:[#allocation4 + $0xb8] sm:$0xf0]  ;;  %v2874_v21 = vor.u32 %v3737_v19, %v2873_v18  ;;  %v3735_v22 = vld [vmem:[#allocation4 + $0x24] sm:$0xf]  ;;  %v2875_v23 = vld [vmem:[#allocation4 + $0x30] sm:$0xf0] }
  0xc0   :  { %v3937_v39 = vpop.eup %3936  ;;  %v322_v44 = vadd.f32 %v3935_v28, %v321_v37  ;;  %v2950_v36 = vor.u32 %v3752_v34, %v2947_v35  ;;  %v2921_v37 = vld [vmem:[#allocation4 + $0x80] sm:$0xf]  ;;  %v2881_v24 = vld [vmem:[#allocation4 + $0x28] sm:$0xf]  ;;  %v3733_v34 = vld [vmem:[#allocation4 + $0xc] sm:$0xf0] }
  0xc1   :  { %v3939_v41 = vpop.eup %3938  ;;  %v339_v42 = vmul.f32 %v3937_v39, %v337_v25  ;;  %v307_v47 = vsel %vm306_vm4, %v3933_v27, %v303_v40  ;;  %vm344_vm8 = vweird.f32 %v3937_v39  ;;  %v2937_v25 = vld [vmem:[#allocation4 + $0xa0] sm:$0xf]  ;;  %v3751_v27 = vld [vmem:[#allocation4 + $0xa4] sm:$0xf]  ;;  %v2922_v40 = vor.u32 %v3749_v38, %v2921_v37 }
  0xc2   :  { %v312_v49 = vsel %vm309_vm6, %v311_v43, %v307_v47  ;;  %v326_v50 = vsel %vm325_vm5, %v3935_v28, %v322_v44  ;;  %vm345_vm10 = vmor %vm343_vm9, %vm344_vm8  ;;  %v2938_v28 = vor.u32 %v3753_v26, %v2937_v25  ;;  %v2942_v32 = vor.u32 %v3751_v27, %v2939_v29  ;;  %900 = vmatpush.bf16.msra.mxu2 %v2946_v33  ;;  %v3750_v43 = vld [vmem:[#allocation4 + $0x94] sm:$0xf0]  ;;  %v2931_v47 = vld [vmem:[#allocation4 + $0x98] sm:$0xf0] }
  0xc3   :  { %v340_v48 = vsub.f32 1.0, %v339_v42  ;;  %v331_v51 = vsel %vm328_vm7, %v330_v45, %v326_v50  ;;  %v354_v52 = vmul.f32 %v3939_v41, %v312_v49  ;;  %913 = vmatpush.bf16.msra.mxu3 %v2950_v36  ;;  %v2923_v41 = vld [vmem:[#allocation4 + $0x90] sm:$0xf0]  ;;  %v2929_v42 = vld [vmem:[#allocation4 + $0x88] sm:$0xf]  ;;  %v2878_v25 = vor.u32 %v3735_v22, %v2875_v23 }
  0xc4   :  { %v353_v54 = vmul.f32 %v331_v51, %v42_v46  ;;  %874 = vmatpush.bf16.msra.mxu0 %v2938_v28  ;;  %887 = vmatpush.bf16.msra.mxu1 %v2942_v32  ;;  %v2930_v45 = vor.u32 %v3750_v43, %v2929_v42  ;;  %v3748_v46 = vld [vmem:[#allocation4 + $0x8c] sm:$0xf]  ;;  %v2905_v51 = vld [vmem:[#allocation4 + $0x60] sm:$0xf]  ;;  %v3738_v26 = vld [vmem:[#allocation4 + $0x34] sm:$0xf0] }
  0xc5   :  { %v341_v53 = vmul.f32 %v3937_v39, %v340_v48  ;;  %v2715_v48 = vld [vmem:[%s4281_s0 + $0x20] sm:$0xff]  ;;  %v2716_v49 = vld [vmem:[%s4281_s0 + $0x28] sm:$0xff]  ;;  %v2934_v50 = vor.u32 %v3748_v46, %v2931_v47  ;;  %v2883_v28 = vld [vmem:[#allocation4 + $0x38] sm:$0xf0]  ;;  %v2882_v31 = vor.u32 %v3738_v26, %v2881_v24 }
  0xc6   :  { %v4139_v55 = vadd.f32 %v354_v52, %v353_v54  ;;  %901 = vmatpush.bf16.msra.mxu2 %v2930_v45  ;;  %v3745_v52 = vld [vmem:[#allocation4 + $0x6c] sm:$0xf0]  ;;  %v3736_v27 = vld [vmem:[#allocation4 + $0x2c] sm:$0xf]  ;;  %v2857_v33 = vld [vmem:[#allocation4] sm:$0xf] }
  0xc7   :  { %v342_v56 = vadd.f32 %v3937_v39, %v341_v53  ;;  %v3743_v53 = vld [vmem:[#allocation4 + $0x64] sm:$0xf]  ;;  %914 = vmatpush.bf16.msra.mxu3 %v2934_v50  ;;  %v2906_v54 = vor.u32 %v3745_v52, %v2905_v51  ;;  %v2886_v32 = vor.u32 %v3736_v27, %v2883_v28  ;;  %v3734_v42 = vld [vmem:[#allocation4 + $0x14] sm:$0xf0]  ;;  %v3732_v45 = vld [vmem:[#allocation4 + $0xc] sm:$0xf] }
  0xc8   :  { %3940 = vtanh.f32 %v4139_v55  ;;  %875 = vmatpush.bf16.msra.mxu0 %v2922_v40  ;;  %v3731_v35 = vld [vmem:[#allocation4 + $0x4] sm:$0xf]  ;;  %v2859_v40 = vld [vmem:[#allocation4 + $0x10] sm:$0xf0]  ;;  %v2867_v46 = vld [vmem:[#allocation4 + $0x18] sm:$0xf0] }
  0xc9   :  { %v346_v59 = vsel %vm345_vm10, %v3937_v39, %v342_v56  ;;  %v3747_v39 = vld [vmem:[#allocation4 + $0x84] sm:$0xf]  ;;  %v2907_v56 = vld [vmem:[#allocation4 + $0x70] sm:$0xf0]  ;;  %v2862_v43 = vor.u32 %v3731_v35, %v2859_v40 }
  0xca   :  { %v351_v62 = vsel %vm348_vm11, %v350_v60, %v346_v59  ;;  %v2926_v44 = vor.u32 %v3747_v39, %v2923_v41  ;;  %v2910_v59 = vor.u32 %v3743_v53, %v2907_v56  ;;  %v2914_v60 = vor.u32 %v3746_v58, %v2913_v57  ;;  %v2865_v41 = vld [vmem:[#allocation4 + $0x8] sm:$0xf]  ;;  %v2717_v56 = vld [vmem:[%s4281_s0 + $0x30] sm:$0xff] }
  0xcb   :  { %v2858_v39 = vor.u32 %v3733_v34, %v2857_v33  ;;  %v3793_v33 = vld [vmem:[#allocation4 + $0xec] sm:$0xf0]  ;;  %v3791_v34 = vld [vmem:[#allocation4 + $0xe4] sm:$0xf] }
  0xcc   :  { %888 = vmatpush.bf16.msra.mxu1 %v2926_v44  ;;  %876 = vmatpush.bf16.msra.mxu0 %v2906_v54  ;;  %v2866_v44 = vor.u32 %v3734_v42, %v2865_v41  ;;  %v3792_v41 = vld [vmem:[#allocation4 + $0xec] sm:$0xf]  ;;  %v3115_v42 = vld [vmem:[#allocation4 + $0xf8] sm:$0xf0] }
  0xcd   :  { %902 = vmatpush.bf16.msra.mxu2 %v2914_v60 }
  0xce   :  { %v3941_v61 = vpop.eup %3940 }
  0xcf   :  { %v357_v63 = vmul.f32 %v3941_v61, %v351_v62  ;;  %v3744_v61 = vld [vmem:[#allocation4 + $0x6c] sm:$0xf]  ;;  %v2915_v62 = vld [vmem:[#allocation4 + $0x78] sm:$0xf0] }
  0xd0   :  { %v2918_v1 = vor.u32 %v3744_v61, %v2915_v62  ;;  %889 = vmatpush.bf16.msra.mxu1 %v2910_v59  ;;  %877 = vmatpush.bf16.msra.mxu0 %v2890_v7 }
  0xd1   :  { %358 = vst [vmem:[%s4285_s4] sm:$0xff] %v357_v63  ;;  %v359_v0 = vpack.c.bf16 %v357_v63, %v357_v63  ;;  %903 = vmatpush.bf16.msra.mxu2 %v2898_v15 }
  0xd2   :  { %915 = vmatpush.bf16.msra.mxu3 %v2918_v1 }
  0xd3   :  { %565 = vmatmul.bf16.vlgmr.msrb.gmra.mxu0 %v359_v0  ;;  %578 = vmatmul.bf16.vlgmr.msrb.gmra.mxu1 %v359_v0 }
  0xd4   :  { %591 = vmatmul.bf16.vlgmr.msrb.gmra.mxu2 %v359_v0  ;;  %604 = vmatmul.bf16.vlgmr.msrb.gmra.mxu3 %v359_v0 }
  0xd5   :  { %890 = vmatpush.bf16.msra.mxu1 %v2894_v14  ;;  %878 = vmatpush.bf16.msra.mxu0 %v2874_v21 }
  0xd6   :  { %916 = vmatpush.bf16.msra.mxu3 %v2902_v20  ;;  %904 = vmatpush.bf16.msra.mxu2 %v2882_v31 }
  0xd9   :  { %891 = vmatpush.bf16.msra.mxu1 %v2878_v25  ;;  %879 = vmatpush.bf16.msra.mxu0 %v2858_v39 }
  0xda   :  { %917 = vmatpush.bf16.msra.mxu3 %v2886_v32  ;;  %905 = vmatpush.bf16.msra.mxu2 %v2866_v44  ;;  %v3105_v32 = vld [vmem:[#allocation4 + $0xe0] sm:$0xf] }
  0xdb   :  { %v3106_v35 = vor.u32 %v3793_v33, %v3105_v32  ;;  %v3089_v44 = vld [vmem:[#allocation4 + $0xc0] sm:$0xf] }
  0xdd   :  { %892 = vmatpush.bf16.msra.mxu1 %v2862_v43  ;;  %1187 = vmatpush.bf16.msrb.mxu0 %v3106_v35  ;;  %v3118_v43 = vor.u32 %v3792_v41, %v3115_v42  ;;  %v3025_v35 = vld [vmem:[#allocation4 + $0x40] sm:$0xf]  ;;  %v3774_v41 = vld [vmem:[#allocation4 + $0x54] sm:$0xf0] }
 0x150   :  { %v566_v63 = vpop.f32.mrf.mxu0  ;;  %v579_v0 = vpop.f32.mrf.mxu1 }
 0x151   :  { %v567_v2 = vadd.f32 %v2715_v48, %v566_v63  ;;  %v580_v3 = vadd.f32 %v2716_v49, %v579_v0  ;;  %v2870_v49 = vor.u32 %v3732_v45, %v2867_v46  ;;  %v3789_v45 = vld [vmem:[#allocation4 + $0xcc] sm:$0xf0]  ;;  %v3787_v46 = vld [vmem:[#allocation4 + $0xc4] sm:$0xf] }
 0x153   :  { %v2847_v11 = vmul.f32 -1.442695, %v567_v2  ;;  %v2848_v12 = vmul.f32 -1.442695, %v580_v3  ;;  %918 = vmatpush.bf16.msra.mxu3 %v2870_v49  ;;  %v3097_v49 = vld [vmem:[#allocation4 + $0xc8] sm:$0xf] }
 0x155   :  { %3942 = vpow2.f32 %v2847_v11 }
 0x156   :  { %3944 = vpow2.f32 %v2848_v12 }
 0x157   :  { %v592_v29 = vpop.f32.mrf.mxu2  ;;  %v605_v30 = vpop.f32.mrf.mxu3  ;;  %1226 = vmatpush.bf16.msrb.mxu3 %v3118_v43 }
 0x158   :  { %v606_v36 = vadd.f32 %v2718_v13, %v605_v30  ;;  %v568_v37 = vpop.f32.mrf.mxu0  ;;  %v581_v38 = vpop.f32.mrf.mxu1  ;;  %v593_v60 = vadd.f32 %v2717_v56, %v592_v29 }
 0x159   :  { %v3113_v37 = vld [vmem:[#allocation4 + $0xe8] sm:$0xf]  ;;  %v3794_v38 = vld [vmem:[#allocation4 + $0xf4] sm:$0xf0] }
 0x15a   :  { %v2849_v47 = vmul.f32 -1.442695, %v606_v36  ;;  %v3107_v36 = vld [vmem:[#allocation4 + $0xf0] sm:$0xf0]  ;;  %v3114_v40 = vor.u32 %v3794_v38, %v3113_v37  ;;  %v3771_v37 = vld [vmem:[#allocation4 + $0x44] sm:$0xf] }
 0x15b   :  { %v3943_v48 = vpop.eup %3942  ;;  %v3110_v39 = vor.u32 %v3791_v34, %v3107_v36  ;;  %v3773_v36 = vld [vmem:[#allocation4 + $0x4c] sm:$0xf0] }
 0x15c   :  { %v3945_v50 = vpop.eup %3944  ;;  %v612_v51 = vadd.f32 1.0, %v3943_v48  ;;  %3946 = vpow2.f32 %v2849_v47  ;;  %1213 = vmatpush.bf16.msrb.mxu2 %v3114_v40  ;;  %v3090_v47 = vor.u32 %v3789_v45, %v3089_v44  ;;  %v3091_v48 = vld [vmem:[#allocation4 + $0xd0] sm:$0xf0]  ;;  %v3026_v38 = vor.u32 %v3773_v36, %v3025_v35  ;;  %v3033_v40 = vld [vmem:[#allocation4 + $0x48] sm:$0xf]  ;;  %v2854_v44 = vld [vmem:[%s4281_s0 + $0x58] sm:$0xff] }
 0x15d   :  { %v631_v52 = vadd.f32 1.0, %v3945_v50  ;;  %1200 = vmatpush.bf16.msrb.mxu1 %v3110_v39  ;;  %v3790_v50 = vld [vmem:[#allocation4 + $0xd4] sm:$0xf0]  ;;  %v3027_v39 = vld [vmem:[#allocation4 + $0x50] sm:$0xf0] }
 0x15e   :  { %3948 = vrcp.f32 %v612_v51  ;;  %v624_v2 = vand.u32 2147483648, %v612_v51  ;;  %v622_v5 = vand.u32 2147483647, %v612_v51  ;;  %vm618_vm14 = vweird.f32 %v612_v51  ;;  %1188 = vmatpush.bf16.msrb.mxu0 %v3090_v47  ;;  %v3772_v47 = vld [vmem:[#allocation4 + $0x4c] sm:$0xf] }
 0x15f   :  { %3950 = vrcp.f32 %v631_v52  ;;  %v594_v53 = vpop.f32.mrf.mxu2  ;;  %v607_v54 = vpop.f32.mrf.mxu3  ;;  %v643_v3 = vand.u32 2147483648, %v631_v52  ;;  %v641_v7 = vand.u32 2147483647, %v631_v52  ;;  %vm637_vm15 = vweird.f32 %v631_v52 }
 0x160   :  { %v625_v10 = vor.u32 1.1754944e-38, %v624_v2  ;;  %vm623_vm2 = vcmp.eq.f32.partialorder %v622_v5, 8.507059e+37  ;;  %v3788_v53 = vld [vmem:[#allocation4 + $0xcc] sm:$0xf]  ;;  %v3099_v54 = vld [vmem:[#allocation4 + $0xd8] sm:$0xf0]  ;;  %v3030_v45 = vor.u32 %v3771_v37, %v3027_v39 }
 0x161   :  { %v644_v13 = vor.u32 1.1754944e-38, %v643_v3  ;;  %vm642_vm3 = vcmp.eq.f32.partialorder %v641_v7, 8.507059e+37  ;;  %v3102_v56 = vor.u32 %v3788_v53, %v3099_v54  ;;  %v3784_v2 = vld [vmem:[#allocation4 + $0xac] sm:$0xf]  ;;  %v3083_v3 = vld [vmem:[#allocation4 + $0xb8] sm:$0xf0] }
 0x162   :  { %v3947_v57 = vpop.eup %3946  ;;  %v3057_v5 = vld [vmem:[#allocation4 + $0x80] sm:$0xf]  ;;  %v3779_v7 = vld [vmem:[#allocation4 + $0x84] sm:$0xf]  ;;  %v3011_v54 = vld [vmem:[#allocation4 + $0x30] sm:$0xf0] }
 0x163   :  { %v651_v58 = vadd.f32 1.0, %v3947_v57  ;;  %v3073_v57 = vld [vmem:[#allocation4 + $0xa0] sm:$0xf]  ;;  %1227 = vmatpush.bf16.msrb.mxu3 %v3102_v56  ;;  %v3767_v53 = vld [vmem:[#allocation4 + $0x24] sm:$0xf] }
 0x164   :  { %v3949_v59 = vpop.eup %3948  ;;  %v3017_v56 = vld [vmem:[#allocation4 + $0x28] sm:$0xf] }
 0x165   :  { %v3951_v61 = vpop.eup %3950  ;;  %v614_v62 = vmul.f32 %v3949_v59, %v612_v51  ;;  %3952 = vrcp.f32 %v651_v58  ;;  %vm619_vm12 = vweird.f32 %v3949_v59  ;;  %v663_v25 = vand.u32 2147483648, %v651_v58 }
 0x166   :  { %v633_v63 = vmul.f32 %v3951_v61, %v631_v52  ;;  %3954 = vtanh.f32 %v593_v60  ;;  %vm638_vm13 = vweird.f32 %v3951_v61  ;;  %vm620_vm0 = vmor %vm618_vm14, %vm619_vm12  ;;  %vm657_vm5 = vweird.f32 %v651_v58 }
 0x167   :  { %v615_v0 = vsub.f32 1.0, %v614_v62  ;;  %vm639_vm1 = vmor %vm637_vm15, %vm638_vm13  ;;  %v661_v26 = vand.u32 2147483647, %v651_v58  ;;  %v664_v28 = vor.u32 1.1754944e-38, %v663_v25  ;;  %v3094_v51 = vor.u32 %v3787_v46, %v3091_v48  ;;  %v3081_v62 = vld [vmem:[#allocation4 + $0xa8] sm:$0xf] }
 0x168   :  { %v634_v1 = vsub.f32 1.0, %v633_v63  ;;  %v3098_v52 = vor.u32 %v3790_v50, %v3097_v49  ;;  %v3786_v63 = vld [vmem:[#allocation4 + $0xb4] sm:$0xf0]  ;;  %v3049_v25 = vld [vmem:[#allocation4 + $0x68] sm:$0xf]  ;;  %v3034_v46 = vor.u32 %v3774_v41, %v3033_v40 }
 0x169   :  { %v616_v4 = vmul.f32 %v3949_v59, %v615_v0  ;;  %vm662_vm7 = vcmp.eq.f32.partialorder %v661_v26, 8.507059e+37  ;;  %1201 = vmatpush.bf16.msrb.mxu1 %v3094_v51  ;;  %v3778_v26 = vld [vmem:[#allocation4 + $0x74] sm:$0xf0]  ;;  %v3035_v48 = vld [vmem:[#allocation4 + $0x58] sm:$0xf0] }
 0x16a   :  { %v635_v6 = vmul.f32 %v3951_v61, %v634_v1  ;;  %1214 = vmatpush.bf16.msrb.mxu2 %v3098_v52  ;;  %v3082_v1 = vor.u32 %v3786_v63, %v3081_v62  ;;  %v3009_v49 = vld [vmem:[#allocation4 + $0x20] sm:$0xf]  ;;  %v3769_v50 = vld [vmem:[#allocation4 + $0x2c] sm:$0xf0]  ;;  %v3038_v51 = vor.u32 %v3772_v47, %v3035_v48 }
 0x16b   :  { %v3953_v8 = vpop.eup %3952  ;;  %v617_v9 = vadd.f32 %v3949_v59, %v616_v4  ;;  %v3086_v4 = vor.u32 %v3784_v2, %v3083_v3  ;;  %v3010_v52 = vor.u32 %v3769_v50, %v3009_v49  ;;  %v3765_v2 = vld [vmem:[#allocation4 + $0xc] sm:$0xf0]  ;;  %v3763_v3 = vld [vmem:[#allocation4 + $0x4] sm:$0xf] }
 0x16c   :  { %v636_v11 = vadd.f32 %v3951_v61, %v635_v6  ;;  %v653_v12 = vmul.f32 %v3953_v8, %v651_v58  ;;  %v3955_v15 = vpop.eup %3954  ;;  %vm658_vm4 = vweird.f32 %v3953_v8  ;;  %v3785_v58 = vld [vmem:[#allocation4 + $0xac] sm:$0xf0] }
 0x16d   :  { %v621_v14 = vsel %vm620_vm0, %v3949_v59, %v617_v9  ;;  %vm659_vm6 = vmor %vm657_vm5, %vm658_vm4  ;;  %v3783_v59 = vld [vmem:[#allocation4 + $0xa4] sm:$0xf]  ;;  %v3074_v60 = vor.u32 %v3785_v58, %v3073_v57  ;;  %v3781_v6 = vld [vmem:[#allocation4 + $0x8c] sm:$0xf0]  ;;  %1228 = vmatpush.bf16.msrb.mxu3 %v3086_v4  ;;  %v3014_v57 = vor.u32 %v3767_v53, %v3011_v54 }
 0x16e   :  { %v626_v16 = vsel %vm623_vm2, %v625_v10, %v621_v14  ;;  %v640_v17 = vsel %vm639_vm1, %v3951_v61, %v636_v11  ;;  %v654_v18 = vsub.f32 1.0, %v653_v12  ;;  %v3075_v61 = vld [vmem:[#allocation4 + $0xb0] sm:$0xf0]  ;;  %1215 = vmatpush.bf16.msrb.mxu2 %v3082_v1  ;;  %v3065_v10 = vld [vmem:[#allocation4 + $0x88] sm:$0xf] }
 0x16f   :  { %v645_v19 = vsel %vm642_vm3, %v644_v13, %v640_v17  ;;  %v668_v20 = vmul.f32 %v3955_v15, %v626_v16  ;;  %v3078_v0 = vor.u32 %v3783_v59, %v3075_v61  ;;  %1189 = vmatpush.bf16.msrb.mxu0 %v3074_v60  ;;  %v3059_v9 = vld [vmem:[#allocation4 + $0x90] sm:$0xf0]  ;;  %v3782_v11 = vld [vmem:[#allocation4 + $0x94] sm:$0xf0]  ;;  %v3780_v14 = vld [vmem:[#allocation4 + $0x8c] sm:$0xf] }
 0x170   :  { %v667_v21 = vmul.f32 %v645_v19, %v4139_v55  ;;  %v655_v22 = vmul.f32 %v3953_v8, %v654_v18  ;;  %v3062_v12 = vor.u32 %v3779_v7, %v3059_v9  ;;  %v3066_v13 = vor.u32 %v3782_v11, %v3065_v10  ;;  %v3067_v15 = vld [vmem:[#allocation4 + $0x98] sm:$0xf0]  ;;  %v2851_v16 = vld [vmem:[%s4281_s0 + $0x40] sm:$0xff]  ;;  %v2852_v17 = vld [vmem:[%s4281_s0 + $0x48] sm:$0xff] }
 0x171   :  { %1202 = vmatpush.bf16.msrb.mxu1 %v3078_v0  ;;  %v3070_v18 = vor.u32 %v3780_v14, %v3067_v15  ;;  %v3041_v19 = vld [vmem:[#allocation4 + $0x60] sm:$0xf]  ;;  %v3770_v58 = vld [vmem:[#allocation4 + $0x34] sm:$0xf0]  ;;  %v3768_v59 = vld [vmem:[#allocation4 + $0x2c] sm:$0xf] }
 0x172   :  { %v4158_v23 = vadd.f32 %v668_v20, %v667_v21  ;;  %v656_v24 = vadd.f32 %v3953_v8, %v655_v22  ;;  %1216 = vmatpush.bf16.msrb.mxu2 %v3066_v13  ;;  %v3777_v20 = vld [vmem:[#allocation4 + $0x6c] sm:$0xf0]  ;;  %v3775_v21 = vld [vmem:[#allocation4 + $0x64] sm:$0xf]  ;;  %v3019_v60 = vld [vmem:[#allocation4 + $0x38] sm:$0xf0]  ;;  %v3018_v63 = vor.u32 %v3770_v58, %v3017_v56 }
 0x173   :  { %1229 = vmatpush.bf16.msrb.mxu3 %v3070_v18  ;;  %v3042_v22 = vor.u32 %v3777_v20, %v3041_v19  ;;  %v3022_v0 = vor.u32 %v3768_v59, %v3019_v60  ;;  %v2993_v1 = vld [vmem:[#allocation4] sm:$0xf]  ;;  %v3001_v9 = vld [vmem:[#allocation4 + $0x8] sm:$0xf]  ;;  %v3766_v10 = vld [vmem:[#allocation4 + $0x14] sm:$0xf0] }
 0x174   :  { %3956 = vtanh.f32 %v4158_v23  ;;  %v660_v27 = vsel %vm659_vm6, %v3953_v8, %v656_v24  ;;  %v3058_v8 = vor.u32 %v3781_v6, %v3057_v5  ;;  %v3043_v24 = vld [vmem:[#allocation4 + $0x70] sm:$0xf0]  ;;  %v2994_v7 = vor.u32 %v3765_v2, %v2993_v1  ;;  %v3764_v13 = vld [vmem:[#allocation4 + $0xc] sm:$0xf]  ;;  %v3003_v14 = vld [vmem:[#allocation4 + $0x18] sm:$0xf0] }
 0x175   :  { %v665_v30 = vsel %vm662_vm7, %v664_v28, %v660_v27  ;;  %1203 = vmatpush.bf16.msrb.mxu1 %v3062_v12  ;;  %v3046_v27 = vor.u32 %v3775_v21, %v3043_v24  ;;  %v3050_v28 = vor.u32 %v3778_v26, %v3049_v25  ;;  %v3002_v12 = vor.u32 %v3766_v10, %v3001_v9  ;;  %v2853_v24 = vld [vmem:[%s4281_s0 + $0x50] sm:$0xff]  ;;  %v3823_v2 = vld [vmem:[#allocation4 + $0xe4] sm:$0xf]  ;;  %v3824_v9 = vld [vmem:[#allocation4 + $0xec] sm:$0xf] }
 0x176   :  { %1190 = vmatpush.bf16.msrb.mxu0 %v3058_v8  ;;  %v2995_v8 = vld [vmem:[#allocation4 + $0x10] sm:$0xf0]  ;;  %v3825_v1 = vld [vmem:[#allocation4 + $0xec] sm:$0xf0]  ;;  %v3251_v10 = vld [vmem:[#allocation4 + $0xf8] sm:$0xf0] }
 0x177   :  { %1217 = vmatpush.bf16.msrb.mxu2 %v3050_v28  ;;  %v2998_v11 = vor.u32 %v3763_v3, %v2995_v8 }
 0x179   :  { %1204 = vmatpush.bf16.msrb.mxu1 %v3046_v27 }
 0x17a   :  { %v3957_v29 = vpop.eup %3956  ;;  %1191 = vmatpush.bf16.msrb.mxu0 %v3042_v22 }
 0x17b   :  { %v671_v31 = vmul.f32 %v3957_v29, %v665_v30  ;;  %v3776_v29 = vld [vmem:[#allocation4 + $0x6c] sm:$0xf]  ;;  %v3051_v30 = vld [vmem:[#allocation4 + $0x78] sm:$0xf0]  ;;  %1218 = vmatpush.bf16.msrb.mxu2 %v3034_v46 }
 0x17c   :  { %v3054_v32 = vor.u32 %v3776_v29, %v3051_v30 }
 0x17d   :  { %2850 = vst [vmem:[%s4285_s4 + $0x8] sm:$0xff] %v671_v31  ;;  %v674_v55 = vpack.c.bf16 %v671_v31, %v671_v31  ;;  %1205 = vmatpush.bf16.msrb.mxu1 %v3030_v45 }
 0x17e   :  { %1230 = vmatpush.bf16.msrb.mxu3 %v3054_v32  ;;  %1192 = vmatpush.bf16.msrb.mxu0 %v3026_v38 }
 0x17f   :  { %880 = vmatmul.bf16.vlgmr.msra.gmra.mxu0 %v674_v55  ;;  %893 = vmatmul.bf16.vlgmr.msra.gmra.mxu1 %v674_v55 }
 0x180   :  { %906 = vmatmul.bf16.vlgmr.msra.gmra.mxu2 %v674_v55  ;;  %919 = vmatmul.bf16.vlgmr.msra.gmra.mxu3 %v674_v55 }
 0x181   :  { %1206 = vmatpush.bf16.msrb.mxu1 %v3014_v57  ;;  %1219 = vmatpush.bf16.msrb.mxu2 %v3018_v63 }
 0x182   :  { %1231 = vmatpush.bf16.msrb.mxu3 %v3038_v51  ;;  %1193 = vmatpush.bf16.msrb.mxu0 %v3010_v52 }
 0x185   :  { %1207 = vmatpush.bf16.msrb.mxu1 %v2998_v11  ;;  %1220 = vmatpush.bf16.msrb.mxu2 %v3002_v12  ;;  %v3254_v11 = vor.u32 %v3824_v9, %v3251_v10  ;;  %v3225_v12 = vld [vmem:[#allocation4 + $0xc0] sm:$0xf]  ;;  %v3806_v9 = vld [vmem:[#allocation4 + $0x54] sm:$0xf0] }
 0x186   :  { %1232 = vmatpush.bf16.msrb.mxu3 %v3022_v0  ;;  %1194 = vmatpush.bf16.msrb.mxu0 %v2994_v7  ;;  %v3241_v0 = vld [vmem:[#allocation4 + $0xe0] sm:$0xf] }
 0x187   :  { %v3242_v3 = vor.u32 %v3825_v1, %v3241_v0 }
 0x18a   :  { %1502 = vmatpush.bf16.msra.mxu0 %v3242_v3  ;;  %v3161_v3 = vld [vmem:[#allocation4 + $0x40] sm:$0xf] }
 0x1fc   :  { %v881_v31 = vpop.f32.mrf.mxu0  ;;  %v894_v55 = vpop.f32.mrf.mxu1 }
 0x1fd   :  { %v882_v33 = vadd.f32 %v2851_v16, %v881_v31  ;;  %v895_v34 = vadd.f32 %v2852_v17, %v894_v55  ;;  %v3006_v17 = vor.u32 %v3764_v13, %v3003_v14  ;;  %v3821_v13 = vld [vmem:[#allocation4 + $0xcc] sm:$0xf0]  ;;  %v3819_v14 = vld [vmem:[#allocation4 + $0xc4] sm:$0xf] }
 0x1ff   :  { %v2983_v42 = vmul.f32 -1.442695, %v882_v33  ;;  %v2984_v43 = vmul.f32 -1.442695, %v895_v34  ;;  %1233 = vmatpush.bf16.msrb.mxu3 %v3006_v17  ;;  %v3233_v17 = vld [vmem:[#allocation4 + $0xc8] sm:$0xf] }
 0x201   :  { %3958 = vpow2.f32 %v2983_v42 }
 0x202   :  { %3960 = vpow2.f32 %v2984_v43 }
 0x203   :  { %v907_v61 = vpop.f32.mrf.mxu2  ;;  %v920_v62 = vpop.f32.mrf.mxu3  ;;  %1541 = vmatpush.bf16.msra.mxu3 %v3254_v11 }
 0x204   :  { %v921_v4 = vadd.f32 %v2854_v44, %v920_v62  ;;  %v883_v5 = vpop.f32.mrf.mxu0  ;;  %v896_v6 = vpop.f32.mrf.mxu1  ;;  %v908_v28 = vadd.f32 %v2853_v24, %v907_v61 }
 0x205   :  { %v3249_v5 = vld [vmem:[#allocation4 + $0xe8] sm:$0xf]  ;;  %v3826_v6 = vld [vmem:[#allocation4 + $0xf4] sm:$0xf0] }
 0x206   :  { %v2985_v15 = vmul.f32 -1.442695, %v921_v4  ;;  %v3243_v4 = vld [vmem:[#allocation4 + $0xf0] sm:$0xf0]  ;;  %v3250_v8 = vor.u32 %v3826_v6, %v3249_v5  ;;  %v3803_v5 = vld [vmem:[#allocation4 + $0x44] sm:$0xf] }
 0x207   :  { %v3959_v16 = vpop.eup %3958  ;;  %v3246_v7 = vor.u32 %v3823_v2, %v3243_v4  ;;  %v3805_v4 = vld [vmem:[#allocation4 + $0x4c] sm:$0xf0] }
 0x208   :  { %v3961_v18 = vpop.eup %3960  ;;  %v927_v19 = vadd.f32 1.0, %v3959_v16  ;;  %3962 = vpow2.f32 %v2985_v15  ;;  %1528 = vmatpush.bf16.msra.mxu2 %v3250_v8  ;;  %v3226_v15 = vor.u32 %v3821_v13, %v3225_v12  ;;  %v3227_v16 = vld [vmem:[#allocation4 + $0xd0] sm:$0xf0]  ;;  %v3162_v6 = vor.u32 %v3805_v4, %v3161_v3  ;;  %v3169_v8 = vld [vmem:[#allocation4 + $0x48] sm:$0xf]  ;;  %v2990_v12 = vld [vmem:[%s4281_s0 + $0x78] sm:$0xff] }
 0x209   :  { %v946_v20 = vadd.f32 1.0, %v3961_v18  ;;  %1515 = vmatpush.bf16.msra.mxu1 %v3246_v7  ;;  %v3822_v18 = vld [vmem:[#allocation4 + $0xd4] sm:$0xf0]  ;;  %v3163_v7 = vld [vmem:[#allocation4 + $0x50] sm:$0xf0] }
 0x20a   :  { %3964 = vrcp.f32 %v927_v19  ;;  %v939_v33 = vand.u32 2147483648, %v927_v19  ;;  %v937_v36 = vand.u32 2147483647, %v927_v19  ;;  %vm933_vm10 = vweird.f32 %v927_v19  ;;  %1503 = vmatpush.bf16.msra.mxu0 %v3226_v15  ;;  %v3804_v15 = vld [vmem:[#allocation4 + $0x4c] sm:$0xf] }
 0x20b   :  { %3966 = vrcp.f32 %v946_v20  ;;  %v909_v21 = vpop.f32.mrf.mxu2  ;;  %v922_v22 = vpop.f32.mrf.mxu3  ;;  %v958_v34 = vand.u32 2147483648, %v946_v20  ;;  %v956_v38 = vand.u32 2147483647, %v946_v20  ;;  %vm952_vm11 = vweird.f32 %v946_v20 }
 0x20c   :  { %v940_v41 = vor.u32 1.1754944e-38, %v939_v33  ;;  %vm938_vm14 = vcmp.eq.f32.partialorder %v937_v36, 8.507059e+37  ;;  %v3820_v21 = vld [vmem:[#allocation4 + $0xcc] sm:$0xf]  ;;  %v3235_v22 = vld [vmem:[#allocation4 + $0xd8] sm:$0xf0]  ;;  %v3166_v13 = vor.u32 %v3803_v5, %v3163_v7 }
 0x20d   :  { %v959_v44 = vor.u32 1.1754944e-38, %v958_v34  ;;  %vm957_vm15 = vcmp.eq.f32.partialorder %v956_v38, 8.507059e+37  ;;  %v3238_v24 = vor.u32 %v3820_v21, %v3235_v22  ;;  %v3816_v33 = vld [vmem:[#allocation4 + $0xac] sm:$0xf]  ;;  %v3219_v34 = vld [vmem:[#allocation4 + $0xb8] sm:$0xf0] }
 0x20e   :  { %v3963_v25 = vpop.eup %3962  ;;  %v3193_v36 = vld [vmem:[#allocation4 + $0x80] sm:$0xf]  ;;  %v3811_v38 = vld [vmem:[#allocation4 + $0x84] sm:$0xf]  ;;  %v3147_v22 = vld [vmem:[#allocation4 + $0x30] sm:$0xf0] }
 0x20f   :  { %v966_v26 = vadd.f32 1.0, %v3963_v25  ;;  %v3209_v25 = vld [vmem:[#allocation4 + $0xa0] sm:$0xf]  ;;  %1542 = vmatpush.bf16.msra.mxu3 %v3238_v24  ;;  %v3799_v21 = vld [vmem:[#allocation4 + $0x24] sm:$0xf] }
 0x210   :  { %v3965_v27 = vpop.eup %3964  ;;  %v3153_v24 = vld [vmem:[#allocation4 + $0x28] sm:$0xf] }
 0x211   :  { %v3967_v29 = vpop.eup %3966  ;;  %v929_v30 = vmul.f32 %v3965_v27, %v927_v19  ;;  %3968 = vrcp.f32 %v966_v26  ;;  %vm934_vm8 = vweird.f32 %v3965_v27  ;;  %v978_v57 = vand.u32 2147483648, %v966_v26 }
 0x212   :  { %v948_v31 = vmul.f32 %v3967_v29, %v946_v20  ;;  %3970 = vtanh.f32 %v908_v28  ;;  %vm953_vm9 = vweird.f32 %v3967_v29  ;;  %vm935_vm12 = vmor %vm933_vm10, %vm934_vm8  ;;  %vm972_vm1 = vweird.f32 %v966_v26 }
 0x213   :  { %v930_v55 = vsub.f32 1.0, %v929_v30  ;;  %vm954_vm13 = vmor %vm952_vm11, %vm953_vm9  ;;  %v976_v58 = vand.u32 2147483647, %v966_v26  ;;  %v979_v60 = vor.u32 1.1754944e-38, %v978_v57  ;;  %v3230_v19 = vor.u32 %v3819_v14, %v3227_v16  ;;  %v3217_v30 = vld [vmem:[#allocation4 + $0xa8] sm:$0xf] }
 0x214   :  { %v949_v32 = vsub.f32 1.0, %v948_v31  ;;  %v3234_v20 = vor.u32 %v3822_v18, %v3233_v17  ;;  %v3818_v31 = vld [vmem:[#allocation4 + $0xb4] sm:$0xf0]  ;;  %v3185_v57 = vld [vmem:[#allocation4 + $0x68] sm:$0xf]  ;;  %v3170_v14 = vor.u32 %v3806_v9, %v3169_v8 }
 0x215   :  { %v931_v35 = vmul.f32 %v3965_v27, %v930_v55  ;;  %vm977_vm3 = vcmp.eq.f32.partialorder %v976_v58, 8.507059e+37  ;;  %1516 = vmatpush.bf16.msra.mxu1 %v3230_v19  ;;  %v3810_v58 = vld [vmem:[#allocation4 + $0x74] sm:$0xf0]  ;;  %v3171_v16 = vld [vmem:[#allocation4 + $0x58] sm:$0xf0] }
 0x216   :  { %v950_v37 = vmul.f32 %v3967_v29, %v949_v32  ;;  %1529 = vmatpush.bf16.msra.mxu2 %v3234_v20  ;;  %v3218_v32 = vor.u32 %v3818_v31, %v3217_v30  ;;  %v3145_v17 = vld [vmem:[#allocation4 + $0x20] sm:$0xf]  ;;  %v3801_v18 = vld [vmem:[#allocation4 + $0x2c] sm:$0xf0]  ;;  %v3174_v19 = vor.u32 %v3804_v15, %v3171_v16 }
 0x217   :  { %v3969_v39 = vpop.eup %3968  ;;  %v932_v40 = vadd.f32 %v3965_v27, %v931_v35  ;;  %v3222_v35 = vor.u32 %v3816_v33, %v3219_v34  ;;  %v3146_v20 = vor.u32 %v3801_v18, %v3145_v17  ;;  %v3797_v33 = vld [vmem:[#allocation4 + $0xc] sm:$0xf0]  ;;  %v3795_v34 = vld [vmem:[#allocation4 + $0x4] sm:$0xf] }
 0x218   :  { %v951_v42 = vadd.f32 %v3967_v29, %v950_v37  ;;  %v968_v43 = vmul.f32 %v3969_v39, %v966_v26  ;;  %v3971_v46 = vpop.eup %3970  ;;  %vm973_vm0 = vweird.f32 %v3969_v39  ;;  %v3817_v26 = vld [vmem:[#allocation4 + $0xac] sm:$0xf0] }
 0x219   :  { %v936_v45 = vsel %vm935_vm12, %v3965_v27, %v932_v40  ;;  %vm974_vm2 = vmor %vm972_vm1, %vm973_vm0  ;;  %v3815_v27 = vld [vmem:[#allocation4 + $0xa4] sm:$0xf]  ;;  %v3210_v28 = vor.u32 %v3817_v26, %v3209_v25  ;;  %v3813_v37 = vld [vmem:[#allocation4 + $0x8c] sm:$0xf0]  ;;  %1543 = vmatpush.bf16.msra.mxu3 %v3222_v35  ;;  %v3150_v25 = vor.u32 %v3799_v21, %v3147_v22 }
 0x21a   :  { %v941_v47 = vsel %vm938_vm14, %v940_v41, %v936_v45  ;;  %v955_v48 = vsel %vm954_vm13, %v3967_v29, %v951_v42  ;;  %v969_v49 = vsub.f32 1.0, %v968_v43  ;;  %v3211_v29 = vld [vmem:[#allocation4 + $0xb0] sm:$0xf0]  ;;  %1530 = vmatpush.bf16.msra.mxu2 %v3218_v32  ;;  %v3201_v41 = vld [vmem:[#allocation4 + $0x88] sm:$0xf] }
 0x21b   :  { %v960_v50 = vsel %vm957_vm15, %v959_v44, %v955_v48  ;;  %v983_v51 = vmul.f32 %v3971_v46, %v941_v47  ;;  %v3214_v55 = vor.u32 %v3815_v27, %v3211_v29  ;;  %1504 = vmatpush.bf16.msra.mxu0 %v3210_v28  ;;  %v3195_v40 = vld [vmem:[#allocation4 + $0x90] sm:$0xf0]  ;;  %v3814_v42 = vld [vmem:[#allocation4 + $0x94] sm:$0xf0]  ;;  %v3812_v45 = vld [vmem:[#allocation4 + $0x8c] sm:$0xf] }
 0x21c   :  { %v982_v52 = vmul.f32 %v960_v50, %v4158_v23  ;;  %v970_v53 = vmul.f32 %v3969_v39, %v969_v49  ;;  %v3198_v43 = vor.u32 %v3811_v38, %v3195_v40  ;;  %v3202_v44 = vor.u32 %v3814_v42, %v3201_v41  ;;  %v3203_v46 = vld [vmem:[#allocation4 + $0x98] sm:$0xf0]  ;;  %v2987_v47 = vld [vmem:[%s4281_s0 + $0x60] sm:$0xff]  ;;  %v2988_v48 = vld [vmem:[%s4281_s0 + $0x68] sm:$0xff] }
 0x21d   :  { %1517 = vmatpush.bf16.msra.mxu1 %v3214_v55  ;;  %v3206_v49 = vor.u32 %v3812_v45, %v3203_v46  ;;  %v3177_v50 = vld [vmem:[#allocation4 + $0x60] sm:$0xf]  ;;  %v3802_v26 = vld [vmem:[#allocation4 + $0x34] sm:$0xf0]  ;;  %v3800_v27 = vld [vmem:[#allocation4 + $0x2c] sm:$0xf] }
 0x21e   :  { %v4177_v54 = vadd.f32 %v983_v51, %v982_v52  ;;  %v971_v56 = vadd.f32 %v3969_v39, %v970_v53  ;;  %1531 = vmatpush.bf16.msra.mxu2 %v3202_v44  ;;  %v3809_v51 = vld [vmem:[#allocation4 + $0x6c] sm:$0xf0]  ;;  %v3807_v52 = vld [vmem:[#allocation4 + $0x64] sm:$0xf]  ;;  %v3155_v28 = vld [vmem:[#allocation4 + $0x38] sm:$0xf0]  ;;  %v3154_v31 = vor.u32 %v3802_v26, %v3153_v24 }
 0x21f   :  { %1544 = vmatpush.bf16.msra.mxu3 %v3206_v49  ;;  %v3178_v53 = vor.u32 %v3809_v51, %v3177_v50  ;;  %v3158_v55 = vor.u32 %v3800_v27, %v3155_v28  ;;  %v3129_v32 = vld [vmem:[#allocation4] sm:$0xf]  ;;  %v3137_v40 = vld [vmem:[#allocation4 + $0x8] sm:$0xf]  ;;  %v3798_v41 = vld [vmem:[#allocation4 + $0x14] sm:$0xf0] }
 0x220   :  { %3972 = vtanh.f32 %v4177_v54  ;;  %v975_v59 = vsel %vm974_vm2, %v3969_v39, %v971_v56  ;;  %v3194_v39 = vor.u32 %v3813_v37, %v3193_v36  ;;  %v3179_v56 = vld [vmem:[#allocation4 + $0x70] sm:$0xf0]  ;;  %v3130_v38 = vor.u32 %v3797_v33, %v3129_v32  ;;  %v3796_v44 = vld [vmem:[#allocation4 + $0xc] sm:$0xf]  ;;  %v3139_v45 = vld [vmem:[#allocation4 + $0x18] sm:$0xf0] }
 0x221   :  { %v980_v62 = vsel %vm977_vm3, %v979_v60, %v975_v59  ;;  %1518 = vmatpush.bf16.msra.mxu1 %v3198_v43  ;;  %v3182_v59 = vor.u32 %v3807_v52, %v3179_v56  ;;  %v3186_v60 = vor.u32 %v3810_v58, %v3185_v57  ;;  %v3138_v43 = vor.u32 %v3798_v41, %v3137_v40  ;;  %v2989_v56 = vld [vmem:[%s4281_s0 + $0x70] sm:$0xff]  ;;  %v3855_v33 = vld [vmem:[#allocation4 + $0xe4] sm:$0xf]  ;;  %v3856_v40 = vld [vmem:[#allocation4 + $0xec] sm:$0xf] }
 0x222   :  { %1505 = vmatpush.bf16.msra.mxu0 %v3194_v39  ;;  %v3131_v39 = vld [vmem:[#allocation4 + $0x10] sm:$0xf0]  ;;  %v3857_v32 = vld [vmem:[#allocation4 + $0xec] sm:$0xf0]  ;;  %v3387_v41 = vld [vmem:[#allocation4 + $0xf8] sm:$0xf0] }
 0x223   :  { %1532 = vmatpush.bf16.msra.mxu2 %v3186_v60  ;;  %v3134_v42 = vor.u32 %v3795_v34, %v3131_v39 }
 0x225   :  { %1519 = vmatpush.bf16.msra.mxu1 %v3182_v59 }
 0x226   :  { %v3973_v61 = vpop.eup %3972  ;;  %1506 = vmatpush.bf16.msra.mxu0 %v3178_v53 }
 0x227   :  { %v986_v63 = vmul.f32 %v3973_v61, %v980_v62  ;;  %v3808_v61 = vld [vmem:[#allocation4 + $0x6c] sm:$0xf]  ;;  %v3187_v62 = vld [vmem:[#allocation4 + $0x78] sm:$0xf0]  ;;  %1533 = vmatpush.bf16.msra.mxu2 %v3170_v14 }
 0x228   :  { %v3190_v0 = vor.u32 %v3808_v61, %v3187_v62 }
 0x229   :  { %2986 = vst [vmem:[%s4285_s4 + $0x10] sm:$0xff] %v986_v63  ;;  %v989_v23 = vpack.c.bf16 %v986_v63, %v986_v63  ;;  %1520 = vmatpush.bf16.msra.mxu1 %v3166_v13 }
 0x22a   :  { %1545 = vmatpush.bf16.msra.mxu3 %v3190_v0  ;;  %1507 = vmatpush.bf16.msra.mxu0 %v3162_v6 }
 0x22b   :  { %1195 = vmatmul.bf16.vlgmr.msrb.gmra.mxu0 %v989_v23  ;;  %1208 = vmatmul.bf16.vlgmr.msrb.gmra.mxu1 %v989_v23 }
 0x22c   :  { %1221 = vmatmul.bf16.vlgmr.msrb.gmra.mxu2 %v989_v23  ;;  %1234 = vmatmul.bf16.vlgmr.msrb.gmra.mxu3 %v989_v23 }
 0x22d   :  { %1521 = vmatpush.bf16.msra.mxu1 %v3150_v25  ;;  %1534 = vmatpush.bf16.msra.mxu2 %v3154_v31 }
 0x22e   :  { %1546 = vmatpush.bf16.msra.mxu3 %v3174_v19  ;;  %1508 = vmatpush.bf16.msra.mxu0 %v3146_v20 }
 0x231   :  { %1522 = vmatpush.bf16.msra.mxu1 %v3134_v42  ;;  %1535 = vmatpush.bf16.msra.mxu2 %v3138_v43  ;;  %v3390_v42 = vor.u32 %v3856_v40, %v3387_v41  ;;  %v3361_v43 = vld [vmem:[#allocation4 + $0xc0] sm:$0xf]  ;;  %v3838_v40 = vld [vmem:[#allocation4 + $0x54] sm:$0xf0] }
 0x232   :  { %1547 = vmatpush.bf16.msra.mxu3 %v3158_v55  ;;  %1509 = vmatpush.bf16.msra.mxu0 %v3130_v38  ;;  %v3377_v55 = vld [vmem:[#allocation4 + $0xe0] sm:$0xf] }
 0x233   :  { %v3378_v34 = vor.u32 %v3857_v32, %v3377_v55 }
 0x236   :  { %1817 = vmatpush.bf16.msrb.mxu0 %v3378_v34  ;;  %v3297_v34 = vld [vmem:[#allocation4 + $0x40] sm:$0xf] }
 0x2a8   :  { %v1196_v63 = vpop.f32.mrf.mxu0  ;;  %v1209_v23 = vpop.f32.mrf.mxu1 }
 0x2a9   :  { %v1197_v1 = vadd.f32 %v2987_v47, %v1196_v63  ;;  %v1210_v2 = vadd.f32 %v2988_v48, %v1209_v23  ;;  %v3142_v48 = vor.u32 %v3796_v44, %v3139_v45  ;;  %v3853_v44 = vld [vmem:[#allocation4 + $0xcc] sm:$0xf0]  ;;  %v3851_v45 = vld [vmem:[#allocation4 + $0xc4] sm:$0xf] }
 0x2ab   :  { %v3119_v10 = vmul.f32 -1.442695, %v1197_v1  ;;  %v3120_v11 = vmul.f32 -1.442695, %v1210_v2  ;;  %1548 = vmatpush.bf16.msra.mxu3 %v3142_v48  ;;  %v3369_v48 = vld [vmem:[#allocation4 + $0xc8] sm:$0xf] }
 0x2ad   :  { %3974 = vpow2.f32 %v3119_v10 }
 0x2ae   :  { %3976 = vpow2.f32 %v3120_v11 }
 0x2af   :  { %v1222_v29 = vpop.f32.mrf.mxu2  ;;  %v1235_v30 = vpop.f32.mrf.mxu3  ;;  %1856 = vmatpush.bf16.msrb.mxu3 %v3390_v42 }
 0x2b0   :  { %v1236_v35 = vadd.f32 %v2990_v12, %v1235_v30  ;;  %v1198_v36 = vpop.f32.mrf.mxu0  ;;  %v1211_v37 = vpop.f32.mrf.mxu1  ;;  %v1223_v60 = vadd.f32 %v2989_v56, %v1222_v29 }
 0x2b1   :  { %v3385_v36 = vld [vmem:[#allocation4 + $0xe8] sm:$0xf]  ;;  %v3858_v37 = vld [vmem:[#allocation4 + $0xf4] sm:$0xf0] }
 0x2b2   :  { %v3121_v46 = vmul.f32 -1.442695, %v1236_v35  ;;  %v3379_v35 = vld [vmem:[#allocation4 + $0xf0] sm:$0xf0]  ;;  %v3386_v39 = vor.u32 %v3858_v37, %v3385_v36  ;;  %v3835_v36 = vld [vmem:[#allocation4 + $0x44] sm:$0xf] }
 0x2b3   :  { %v3975_v47 = vpop.eup %3974  ;;  %v3382_v38 = vor.u32 %v3855_v33, %v3379_v35  ;;  %v3837_v35 = vld [vmem:[#allocation4 + $0x4c] sm:$0xf0] }
 0x2b4   :  { %v3977_v49 = vpop.eup %3976  ;;  %v1242_v50 = vadd.f32 1.0, %v3975_v47  ;;  %3978 = vpow2.f32 %v3121_v46  ;;  %1843 = vmatpush.bf16.msrb.mxu2 %v3386_v39  ;;  %v3362_v46 = vor.u32 %v3853_v44, %v3361_v43  ;;  %v3363_v47 = vld [vmem:[#allocation4 + $0xd0] sm:$0xf0]  ;;  %v3298_v37 = vor.u32 %v3837_v35, %v3297_v34  ;;  %v3305_v39 = vld [vmem:[#allocation4 + $0x48] sm:$0xf]  ;;  %v3126_v43 = vld [vmem:[%s4281_s0 + $0x98] sm:$0xff] }
 0x2b5   :  { %v1261_v51 = vadd.f32 1.0, %v3977_v49  ;;  %1830 = vmatpush.bf16.msrb.mxu1 %v3382_v38  ;;  %v3854_v49 = vld [vmem:[#allocation4 + $0xd4] sm:$0xf0]  ;;  %v3299_v38 = vld [vmem:[#allocation4 + $0x50] sm:$0xf0] }
 0x2b6   :  { %3980 = vrcp.f32 %v1242_v50  ;;  %v1254_v1 = vand.u32 2147483648, %v1242_v50  ;;  %v1252_v4 = vand.u32 2147483647, %v1242_v50  ;;  %vm1248_vm6 = vweird.f32 %v1242_v50  ;;  %1818 = vmatpush.bf16.msrb.mxu0 %v3362_v46  ;;  %v3836_v46 = vld [vmem:[#allocation4 + $0x4c] sm:$0xf] }
 0x2b7   :  { %3982 = vrcp.f32 %v1261_v51  ;;  %v1224_v52 = vpop.f32.mrf.mxu2  ;;  %v1237_v53 = vpop.f32.mrf.mxu3  ;;  %v1273_v2 = vand.u32 2147483648, %v1261_v51  ;;  %v1271_v6 = vand.u32 2147483647, %v1261_v51  ;;  %vm1267_vm7 = vweird.f32 %v1261_v51 }
 0x2b8   :  { %v1255_v9 = vor.u32 1.1754944e-38, %v1254_v1  ;;  %vm1253_vm10 = vcmp.eq.f32.partialorder %v1252_v4, 8.507059e+37  ;;  %v3852_v52 = vld [vmem:[#allocation4 + $0xcc] sm:$0xf]  ;;  %v3371_v53 = vld [vmem:[#allocation4 + $0xd8] sm:$0xf0]  ;;  %v3302_v44 = vor.u32 %v3835_v36, %v3299_v38 }
 0x2b9   :  { %v1274_v12 = vor.u32 1.1754944e-38, %v1273_v2  ;;  %vm1272_vm11 = vcmp.eq.f32.partialorder %v1271_v6, 8.507059e+37  ;;  %v3374_v56 = vor.u32 %v3852_v52, %v3371_v53  ;;  %v3848_v1 = vld [vmem:[#allocation4 + $0xac] sm:$0xf]  ;;  %v3355_v2 = vld [vmem:[#allocation4 + $0xb8] sm:$0xf0] }
 0x2ba   :  { %v3979_v57 = vpop.eup %3978  ;;  %v3329_v4 = vld [vmem:[#allocation4 + $0x80] sm:$0xf]  ;;  %v3843_v6 = vld [vmem:[#allocation4 + $0x84] sm:$0xf]  ;;  %v3283_v53 = vld [vmem:[#allocation4 + $0x30] sm:$0xf0] }
 0x2bb   :  { %v1281_v58 = vadd.f32 1.0, %v3979_v57  ;;  %v3345_v57 = vld [vmem:[#allocation4 + $0xa0] sm:$0xf]  ;;  %1857 = vmatpush.bf16.msrb.mxu3 %v3374_v56  ;;  %v3831_v52 = vld [vmem:[#allocation4 + $0x24] sm:$0xf] }
 0x2bc   :  { %v3981_v59 = vpop.eup %3980  ;;  %v3289_v56 = vld [vmem:[#allocation4 + $0x28] sm:$0xf] }
 0x2bd   :  { %v3983_v61 = vpop.eup %3982  ;;  %v1244_v62 = vmul.f32 %v3981_v59, %v1242_v50  ;;  %3984 = vrcp.f32 %v1281_v58  ;;  %vm1249_vm4 = vweird.f32 %v3981_v59  ;;  %v1293_v25 = vand.u32 2147483648, %v1281_v58 }
 0x2be   :  { %v1263_v63 = vmul.f32 %v3983_v61, %v1261_v51  ;;  %3986 = vtanh.f32 %v1223_v60  ;;  %vm1268_vm5 = vweird.f32 %v3983_v61  ;;  %vm1250_vm8 = vmor %vm1248_vm6, %vm1249_vm4  ;;  %vm1287_vm13 = vweird.f32 %v1281_v58 }
 0x2bf   :  { %v1245_v23 = vsub.f32 1.0, %v1244_v62  ;;  %vm1269_vm9 = vmor %vm1267_vm7, %vm1268_vm5  ;;  %v1291_v26 = vand.u32 2147483647, %v1281_v58  ;;  %v1294_v28 = vor.u32 1.1754944e-38, %v1293_v25  ;;  %v3366_v50 = vor.u32 %v3851_v45, %v3363_v47  ;;  %v3353_v62 = vld [vmem:[#allocation4 + $0xa8] sm:$0xf] }
 0x2c0   :  { %v1264_v0 = vsub.f32 1.0, %v1263_v63  ;;  %v3370_v51 = vor.u32 %v3854_v49, %v3369_v48  ;;  %v3850_v63 = vld [vmem:[#allocation4 + $0xb4] sm:$0xf0]  ;;  %v3321_v25 = vld [vmem:[#allocation4 + $0x68] sm:$0xf]  ;;  %v3306_v45 = vor.u32 %v3838_v40, %v3305_v39 }
 0x2c1   :  { %v1246_v3 = vmul.f32 %v3981_v59, %v1245_v23  ;;  %vm1292_vm15 = vcmp.eq.f32.partialorder %v1291_v26, 8.507059e+37  ;;  %1831 = vmatpush.bf16.msrb.mxu1 %v3366_v50  ;;  %v3842_v26 = vld [vmem:[#allocation4 + $0x74] sm:$0xf0]  ;;  %v3307_v47 = vld [vmem:[#allocation4 + $0x58] sm:$0xf0] }
 0x2c2   :  { %v1265_v5 = vmul.f32 %v3983_v61, %v1264_v0  ;;  %1844 = vmatpush.bf16.msrb.mxu2 %v3370_v51  ;;  %v3354_v0 = vor.u32 %v3850_v63, %v3353_v62  ;;  %v3281_v48 = vld [vmem:[#allocation4 + $0x20] sm:$0xf]  ;;  %v3833_v49 = vld [vmem:[#allocation4 + $0x2c] sm:$0xf0]  ;;  %v3310_v50 = vor.u32 %v3836_v46, %v3307_v47 }
 0x2c3   :  { %v3985_v7 = vpop.eup %3984  ;;  %v1247_v8 = vadd.f32 %v3981_v59, %v1246_v3  ;;  %v3358_v3 = vor.u32 %v3848_v1, %v3355_v2  ;;  %v3282_v51 = vor.u32 %v3833_v49, %v3281_v48  ;;  %v3829_v1 = vld [vmem:[#allocation4 + $0xc] sm:$0xf0]  ;;  %v3827_v2 = vld [vmem:[#allocation4 + $0x4] sm:$0xf] }
 0x2c4   :  { %v1266_v10 = vadd.f32 %v3983_v61, %v1265_v5  ;;  %v1283_v11 = vmul.f32 %v3985_v7, %v1281_v58  ;;  %v3987_v14 = vpop.eup %3986  ;;  %vm1288_vm12 = vweird.f32 %v3985_v7  ;;  %v3849_v58 = vld [vmem:[#allocation4 + $0xac] sm:$0xf0] }
 0x2c5   :  { %v1251_v13 = vsel %vm1250_vm8, %v3981_v59, %v1247_v8  ;;  %vm1289_vm14 = vmor %vm1287_vm13, %vm1288_vm12  ;;  %v3847_v59 = vld [vmem:[#allocation4 + $0xa4] sm:$0xf]  ;;  %v3346_v60 = vor.u32 %v3849_v58, %v3345_v57  ;;  %v3845_v5 = vld [vmem:[#allocation4 + $0x8c] sm:$0xf0]  ;;  %1858 = vmatpush.bf16.msrb.mxu3 %v3358_v3  ;;  %v3286_v57 = vor.u32 %v3831_v52, %v3283_v53 }
 0x2c6   :  { %v1256_v15 = vsel %vm1253_vm10, %v1255_v9, %v1251_v13  ;;  %v1270_v16 = vsel %vm1269_vm9, %v3983_v61, %v1266_v10  ;;  %v1284_v17 = vsub.f32 1.0, %v1283_v11  ;;  %v3347_v61 = vld [vmem:[#allocation4 + $0xb0] sm:$0xf0]  ;;  %1845 = vmatpush.bf16.msrb.mxu2 %v3354_v0  ;;  %v3337_v9 = vld [vmem:[#allocation4 + $0x88] sm:$0xf] }
 0x2c7   :  { %v1275_v18 = vsel %vm1272_vm11, %v1274_v12, %v1270_v16  ;;  %v1298_v19 = vmul.f32 %v3987_v14, %v1256_v15  ;;  %v3350_v23 = vor.u32 %v3847_v59, %v3347_v61  ;;  %1819 = vmatpush.bf16.msrb.mxu0 %v3346_v60  ;;  %v3331_v8 = vld [vmem:[#allocation4 + $0x90] sm:$0xf0]  ;;  %v3846_v10 = vld [vmem:[#allocation4 + $0x94] sm:$0xf0]  ;;  %v3844_v13 = vld [vmem:[#allocation4 + $0x8c] sm:$0xf] }
 0x2c8   :  { %v1297_v20 = vmul.f32 %v1275_v18, %v4177_v54  ;;  %v1285_v21 = vmul.f32 %v3985_v7, %v1284_v17  ;;  %v3334_v11 = vor.u32 %v3843_v6, %v3331_v8  ;;  %v3338_v12 = vor.u32 %v3846_v10, %v3337_v9  ;;  %v3339_v14 = vld [vmem:[#allocation4 + $0x98] sm:$0xf0]  ;;  %v3123_v15 = vld [vmem:[%s4281_s0 + $0x80] sm:$0xff]  ;;  %v3124_v16 = vld [vmem:[%s4281_s0 + $0x88] sm:$0xff] }
 0x2c9   :  { %1832 = vmatpush.bf16.msrb.mxu1 %v3350_v23  ;;  %v3342_v17 = vor.u32 %v3844_v13, %v3339_v14  ;;  %v3313_v18 = vld [vmem:[#allocation4 + $0x60] sm:$0xf]  ;;  %v3834_v58 = vld [vmem:[#allocation4 + $0x34] sm:$0xf0]  ;;  %v3832_v59 = vld [vmem:[#allocation4 + $0x2c] sm:$0xf] }
 0x2ca   :  { %v4196_v22 = vadd.f32 %v1298_v19, %v1297_v20  ;;  %v1286_v24 = vadd.f32 %v3985_v7, %v1285_v21  ;;  %1846 = vmatpush.bf16.msrb.mxu2 %v3338_v12  ;;  %v3841_v19 = vld [vmem:[#allocation4 + $0x6c] sm:$0xf0]  ;;  %v3839_v20 = vld [vmem:[#allocation4 + $0x64] sm:$0xf]  ;;  %v3291_v60 = vld [vmem:[#allocation4 + $0x38] sm:$0xf0]  ;;  %v3290_v63 = vor.u32 %v3834_v58, %v3289_v56 }
 0x2cb   :  { %1859 = vmatpush.bf16.msrb.mxu3 %v3342_v17  ;;  %v3314_v21 = vor.u32 %v3841_v19, %v3313_v18  ;;  %v3294_v23 = vor.u32 %v3832_v59, %v3291_v60  ;;  %v3265_v0 = vld [vmem:[#allocation4] sm:$0xf]  ;;  %v3273_v8 = vld [vmem:[#allocation4 + $0x8] sm:$0xf]  ;;  %v3830_v9 = vld [vmem:[#allocation4 + $0x14] sm:$0xf0] }
 0x2cc   :  { %3988 = vtanh.f32 %v4196_v22  ;;  %v1290_v27 = vsel %vm1289_vm14, %v3985_v7, %v1286_v24  ;;  %v3330_v7 = vor.u32 %v3845_v5, %v3329_v4  ;;  %v3315_v24 = vld [vmem:[#allocation4 + $0x70] sm:$0xf0]  ;;  %v3266_v6 = vor.u32 %v3829_v1, %v3265_v0  ;;  %v3828_v12 = vld [vmem:[#allocation4 + $0xc] sm:$0xf]  ;;  %v3275_v13 = vld [vmem:[#allocation4 + $0x18] sm:$0xf0] }
 0x2cd   :  { %v1295_v30 = vsel %vm1292_vm15, %v1294_v28, %v1290_v27  ;;  %1833 = vmatpush.bf16.msrb.mxu1 %v3334_v11  ;;  %v3318_v27 = vor.u32 %v3839_v20, %v3315_v24  ;;  %v3322_v28 = vor.u32 %v3842_v26, %v3321_v25  ;;  %v3274_v11 = vor.u32 %v3830_v9, %v3273_v8  ;;  %v3125_v24 = vld [vmem:[%s4281_s0 + $0x90] sm:$0xff]  ;;  %v3887_v1 = vld [vmem:[#allocation4 + $0xe4] sm:$0xf]  ;;  %v3888_v8 = vld [vmem:[#allocation4 + $0xec] sm:$0xf] }
 0x2ce   :  { %1820 = vmatpush.bf16.msrb.mxu0 %v3330_v7  ;;  %v3267_v7 = vld [vmem:[#allocation4 + $0x10] sm:$0xf0]  ;;  %v3889_v0 = vld [vmem:[#allocation4 + $0xec] sm:$0xf0]  ;;  %v3523_v9 = vld [vmem:[#allocation4 + $0xf8] sm:$0xf0] }
 0x2cf   :  { %1847 = vmatpush.bf16.msrb.mxu2 %v3322_v28  ;;  %v3270_v10 = vor.u32 %v3827_v2, %v3267_v7 }
 0x2d1   :  { %1834 = vmatpush.bf16.msrb.mxu1 %v3318_v27 }
 0x2d2   :  { %v3989_v29 = vpop.eup %3988  ;;  %1821 = vmatpush.bf16.msrb.mxu0 %v3314_v21 }
 0x2d3   :  { %v1301_v31 = vmul.f32 %v3989_v29, %v1295_v30  ;;  %v3840_v29 = vld [vmem:[#allocation4 + $0x6c] sm:$0xf]  ;;  %v3323_v30 = vld [vmem:[#allocation4 + $0x78] sm:$0xf0]  ;;  %1848 = vmatpush.bf16.msrb.mxu2 %v3306_v45 }
 0x2d4   :  { %v3326_v55 = vor.u32 %v3840_v29, %v3323_v30 }
 0x2d5   :  { %3122 = vst [vmem:[%s4285_s4 + $0x18] sm:$0xff] %v1301_v31  ;;  %v1304_v54 = vpack.c.bf16 %v1301_v31, %v1301_v31  ;;  %1835 = vmatpush.bf16.msrb.mxu1 %v3302_v44 }
 0x2d6   :  { %1860 = vmatpush.bf16.msrb.mxu3 %v3326_v55  ;;  %1822 = vmatpush.bf16.msrb.mxu0 %v3298_v37 }
 0x2d7   :  { %1510 = vmatmul.bf16.vlgmr.msra.gmra.mxu0 %v1304_v54  ;;  %1523 = vmatmul.bf16.vlgmr.msra.gmra.mxu1 %v1304_v54 }
 0x2d8   :  { %1536 = vmatmul.bf16.vlgmr.msra.gmra.mxu2 %v1304_v54  ;;  %1549 = vmatmul.bf16.vlgmr.msra.gmra.mxu3 %v1304_v54 }
 0x2d9   :  { %1836 = vmatpush.bf16.msrb.mxu1 %v3286_v57  ;;  %1849 = vmatpush.bf16.msrb.mxu2 %v3290_v63 }
 0x2da   :  { %1861 = vmatpush.bf16.msrb.mxu3 %v3310_v50  ;;  %1823 = vmatpush.bf16.msrb.mxu0 %v3282_v51 }
 0x2dd   :  { %1837 = vmatpush.bf16.msrb.mxu1 %v3270_v10  ;;  %1850 = vmatpush.bf16.msrb.mxu2 %v3274_v11  ;;  %v3526_v10 = vor.u32 %v3888_v8, %v3523_v9  ;;  %v3497_v11 = vld [vmem:[#allocation4 + $0xc0] sm:$0xf]  ;;  %v3870_v8 = vld [vmem:[#allocation4 + $0x54] sm:$0xf0] }
 0x2de   :  { %1862 = vmatpush.bf16.msrb.mxu3 %v3294_v23  ;;  %1824 = vmatpush.bf16.msrb.mxu0 %v3266_v6  ;;  %v3513_v23 = vld [vmem:[#allocation4 + $0xe0] sm:$0xf] }
 0x2df   :  { %v3514_v2 = vor.u32 %v3889_v0, %v3513_v23 }
 0x2e2   :  { %2132 = vmatpush.bf16.msra.mxu0 %v3514_v2  ;;  %v3433_v2 = vld [vmem:[#allocation4 + $0x40] sm:$0xf] }
 0x354   :  { %v1511_v31 = vpop.f32.mrf.mxu0  ;;  %v1524_v54 = vpop.f32.mrf.mxu1 }
 0x355   :  { %v1512_v32 = vadd.f32 %v3123_v15, %v1511_v31  ;;  %v1525_v33 = vadd.f32 %v3124_v16, %v1524_v54  ;;  %v3278_v16 = vor.u32 %v3828_v12, %v3275_v13  ;;  %v3885_v12 = vld [vmem:[#allocation4 + $0xcc] sm:$0xf0]  ;;  %v3883_v13 = vld [vmem:[#allocation4 + $0xc4] sm:$0xf] }
 0x357   :  { %v3255_v41 = vmul.f32 -1.442695, %v1512_v32  ;;  %v3256_v42 = vmul.f32 -1.442695, %v1525_v33  ;;  %1863 = vmatpush.bf16.msrb.mxu3 %v3278_v16  ;;  %v3505_v16 = vld [vmem:[#allocation4 + $0xc8] sm:$0xf] }
 0x359   :  { %3990 = vpow2.f32 %v3255_v41 }
 0x35a   :  { %3992 = vpow2.f32 %v3256_v42 }
 0x35b   :  { %v1537_v61 = vpop.f32.mrf.mxu2  ;;  %v1550_v62 = vpop.f32.mrf.mxu3  ;;  %2171 = vmatpush.bf16.msra.mxu3 %v3526_v10 }
 0x35c   :  { %v1551_v3 = vadd.f32 %v3126_v43, %v1550_v62  ;;  %v1513_v4 = vpop.f32.mrf.mxu0  ;;  %v1526_v5 = vpop.f32.mrf.mxu1  ;;  %v1538_v28 = vadd.f32 %v3125_v24, %v1537_v61 }
 0x35d   :  { %v3521_v4 = vld [vmem:[#allocation4 + $0xe8] sm:$0xf]  ;;  %v3890_v5 = vld [vmem:[#allocation4 + $0xf4] sm:$0xf0] }
 0x35e   :  { %v3257_v14 = vmul.f32 -1.442695, %v1551_v3  ;;  %v3515_v3 = vld [vmem:[#allocation4 + $0xf0] sm:$0xf0]  ;;  %v3522_v7 = vor.u32 %v3890_v5, %v3521_v4  ;;  %v3867_v4 = vld [vmem:[#allocation4 + $0x44] sm:$0xf] }
 0x35f   :  { %v3991_v15 = vpop.eup %3990  ;;  %v3518_v6 = vor.u32 %v3887_v1, %v3515_v3  ;;  %v3869_v3 = vld [vmem:[#allocation4 + $0x4c] sm:$0xf0] }
 0x360   :  { %v3993_v17 = vpop.eup %3992  ;;  %v1557_v18 = vadd.f32 1.0, %v3991_v15  ;;  %3994 = vpow2.f32 %v3257_v14  ;;  %2158 = vmatpush.bf16.msra.mxu2 %v3522_v7  ;;  %v3498_v14 = vor.u32 %v3885_v12, %v3497_v11  ;;  %v3499_v15 = vld [vmem:[#allocation4 + $0xd0] sm:$0xf0]  ;;  %v3434_v5 = vor.u32 %v3869_v3, %v3433_v2  ;;  %v3441_v7 = vld [vmem:[#allocation4 + $0x48] sm:$0xf]  ;;  %v3262_v11 = vld [vmem:[%s4281_s0 + $0xb8] sm:$0xff] }
 0x361   :  { %v1576_v19 = vadd.f32 1.0, %v3993_v17  ;;  %2145 = vmatpush.bf16.msra.mxu1 %v3518_v6  ;;  %v3886_v17 = vld [vmem:[#allocation4 + $0xd4] sm:$0xf0]  ;;  %v3435_v6 = vld [vmem:[#allocation4 + $0x50] sm:$0xf0] }
 0x362   :  { %3996 = vrcp.f32 %v1557_v18  ;;  %v1569_v32 = vand.u32 2147483648, %v1557_v18  ;;  %v1567_v35 = vand.u32 2147483647, %v1557_v18  ;;  %vm1563_vm2 = vweird.f32 %v1557_v18  ;;  %2133 = vmatpush.bf16.msra.mxu0 %v3498_v14  ;;  %v3868_v14 = vld [vmem:[#allocation4 + $0x4c] sm:$0xf] }
 0x363   :  { %3998 = vrcp.f32 %v1576_v19  ;;  %v1539_v20 = vpop.f32.mrf.mxu2  ;;  %v1552_v21 = vpop.f32.mrf.mxu3  ;;  %v1588_v33 = vand.u32 2147483648, %v1576_v19  ;;  %v1586_v37 = vand.u32 2147483647, %v1576_v19  ;;  %vm1582_vm3 = vweird.f32 %v1576_v19 }
 0x364   :  { %v1570_v40 = vor.u32 1.1754944e-38, %v1569_v32  ;;  %vm1568_vm6 = vcmp.eq.f32.partialorder %v1567_v35, 8.507059e+37  ;;  %v3884_v20 = vld [vmem:[#allocation4 + $0xcc] sm:$0xf]  ;;  %v3507_v21 = vld [vmem:[#allocation4 + $0xd8] sm:$0xf0]  ;;  %v3438_v12 = vor.u32 %v3867_v4, %v3435_v6 }
 0x365   :  { %v1589_v43 = vor.u32 1.1754944e-38, %v1588_v33  ;;  %vm1587_vm7 = vcmp.eq.f32.partialorder %v1586_v37, 8.507059e+37  ;;  %v3510_v24 = vor.u32 %v3884_v20, %v3507_v21  ;;  %v3880_v32 = vld [vmem:[#allocation4 + $0xac] sm:$0xf]  ;;  %v3491_v33 = vld [vmem:[#allocation4 + $0xb8] sm:$0xf0] }
 0x366   :  { %v3995_v25 = vpop.eup %3994  ;;  %v3465_v35 = vld [vmem:[#allocation4 + $0x80] sm:$0xf]  ;;  %v3875_v37 = vld [vmem:[#allocation4 + $0x84] sm:$0xf]  ;;  %v3419_v21 = vld [vmem:[#allocation4 + $0x30] sm:$0xf0] }
 0x367   :  { %v1596_v26 = vadd.f32 1.0, %v3995_v25  ;;  %v3481_v25 = vld [vmem:[#allocation4 + $0xa0] sm:$0xf]  ;;  %2172 = vmatpush.bf16.msra.mxu3 %v3510_v24  ;;  %v3863_v20 = vld [vmem:[#allocation4 + $0x24] sm:$0xf] }
 0x368   :  { %v3997_v27 = vpop.eup %3996  ;;  %v3425_v24 = vld [vmem:[#allocation4 + $0x28] sm:$0xf] }
 0x369   :  { %v3999_v29 = vpop.eup %3998  ;;  %v1559_v30 = vmul.f32 %v3997_v27, %v1557_v18  ;;  %4000 = vrcp.f32 %v1596_v26  ;;  %vm1564_vm0 = vweird.f32 %v3997_v27  ;;  %v1608_v57 = vand.u32 2147483648, %v1596_v26 }
 0x36a   :  { %v1578_v31 = vmul.f32 %v3999_v29, %v1576_v19  ;;  %4002 = vtanh.f32 %v1538_v28  ;;  %vm1583_vm1 = vweird.f32 %v3999_v29  ;;  %vm1565_vm4 = vmor %vm1563_vm2, %vm1564_vm0  ;;  %vm1602_vm9 = vweird.f32 %v1596_v26 }
 0x36b   :  { %v1560_v54 = vsub.f32 1.0, %v1559_v30  ;;  %vm1584_vm5 = vmor %vm1582_vm3, %vm1583_vm1  ;;  %v1606_v58 = vand.u32 2147483647, %v1596_v26  ;;  %v1609_v60 = vor.u32 1.1754944e-38, %v1608_v57  ;;  %v3502_v18 = vor.u32 %v3883_v13, %v3499_v15  ;;  %v3489_v30 = vld [vmem:[#allocation4 + $0xa8] sm:$0xf] }
 0x36c   :  { %v1579_v55 = vsub.f32 1.0, %v1578_v31  ;;  %v3506_v19 = vor.u32 %v3886_v17, %v3505_v16  ;;  %v3882_v31 = vld [vmem:[#allocation4 + $0xb4] sm:$0xf0]  ;;  %v3457_v57 = vld [vmem:[#allocation4 + $0x68] sm:$0xf]  ;;  %v3442_v13 = vor.u32 %v3870_v8, %v3441_v7 }
 0x36d   :  { %v1561_v34 = vmul.f32 %v3997_v27, %v1560_v54  ;;  %vm1607_vm11 = vcmp.eq.f32.partialorder %v1606_v58, 8.507059e+37  ;;  %2146 = vmatpush.bf16.msra.mxu1 %v3502_v18  ;;  %v3874_v58 = vld [vmem:[#allocation4 + $0x74] sm:$0xf0]  ;;  %v3443_v15 = vld [vmem:[#allocation4 + $0x58] sm:$0xf0] }
 0x36e   :  { %v1580_v36 = vmul.f32 %v3999_v29, %v1579_v55  ;;  %2159 = vmatpush.bf16.msra.mxu2 %v3506_v19  ;;  %v3490_v55 = vor.u32 %v3882_v31, %v3489_v30  ;;  %v3417_v16 = vld [vmem:[#allocation4 + $0x20] sm:$0xf]  ;;  %v3865_v17 = vld [vmem:[#allocation4 + $0x2c] sm:$0xf0]  ;;  %v3446_v18 = vor.u32 %v3868_v14, %v3443_v15 }
 0x36f   :  { %v4001_v38 = vpop.eup %4000  ;;  %v1562_v39 = vadd.f32 %v3997_v27, %v1561_v34  ;;  %v3494_v34 = vor.u32 %v3880_v32, %v3491_v33  ;;  %v3418_v19 = vor.u32 %v3865_v17, %v3417_v16  ;;  %v3861_v32 = vld [vmem:[#allocation4 + $0xc] sm:$0xf0]  ;;  %v3859_v33 = vld [vmem:[#allocation4 + $0x4] sm:$0xf] }
 0x370   :  { %v1581_v41 = vadd.f32 %v3999_v29, %v1580_v36  ;;  %v1598_v42 = vmul.f32 %v4001_v38, %v1596_v26  ;;  %v4003_v45 = vpop.eup %4002  ;;  %vm1603_vm8 = vweird.f32 %v4001_v38  ;;  %v3881_v26 = vld [vmem:[#allocation4 + $0xac] sm:$0xf0] }
 0x371   :  { %v1566_v44 = vsel %vm1565_vm4, %v3997_v27, %v1562_v39  ;;  %vm1604_vm10 = vmor %vm1602_vm9, %vm1603_vm8  ;;  %v3879_v27 = vld [vmem:[#allocation4 + $0xa4] sm:$0xf]  ;;  %v3482_v28 = vor.u32 %v3881_v26, %v3481_v25  ;;  %v3877_v36 = vld [vmem:[#allocation4 + $0x8c] sm:$0xf0]  ;;  %2173 = vmatpush.bf16.msra.mxu3 %v3494_v34  ;;  %v3422_v25 = vor.u32 %v3863_v20, %v3419_v21 }
 0x372   :  { %v1571_v46 = vsel %vm1568_vm6, %v1570_v40, %v1566_v44  ;;  %v1585_v47 = vsel %vm1584_vm5, %v3999_v29, %v1581_v41  ;;  %v1599_v48 = vsub.f32 1.0, %v1598_v42  ;;  %v3483_v29 = vld [vmem:[#allocation4 + $0xb0] sm:$0xf0]  ;;  %2160 = vmatpush.bf16.msra.mxu2 %v3490_v55  ;;  %v3473_v40 = vld [vmem:[#allocation4 + $0x88] sm:$0xf] }
 0x373   :  { %v1590_v49 = vsel %vm1587_vm7, %v1589_v43, %v1585_v47  ;;  %v1613_v50 = vmul.f32 %v4003_v45, %v1571_v46  ;;  %v3486_v54 = vor.u32 %v3879_v27, %v3483_v29  ;;  %2134 = vmatpush.bf16.msra.mxu0 %v3482_v28  ;;  %v3467_v39 = vld [vmem:[#allocation4 + $0x90] sm:$0xf0]  ;;  %v3878_v41 = vld [vmem:[#allocation4 + $0x94] sm:$0xf0]  ;;  %v3876_v44 = vld [vmem:[#allocation4 + $0x8c] sm:$0xf] }
 0x374   :  { %v1612_v51 = vmul.f32 %v1590_v49, %v4196_v22  ;;  %v1600_v52 = vmul.f32 %v4001_v38, %v1599_v48  ;;  %v3470_v42 = vor.u32 %v3875_v37, %v3467_v39  ;;  %v3474_v43 = vor.u32 %v3878_v41, %v3473_v40  ;;  %v3475_v45 = vld [vmem:[#allocation4 + $0x98] sm:$0xf0]  ;;  %v3259_v46 = vld [vmem:[%s4281_s0 + $0xa0] sm:$0xff]  ;;  %v3260_v47 = vld [vmem:[%s4281_s0 + $0xa8] sm:$0xff] }
 0x375   :  { %2147 = vmatpush.bf16.msra.mxu1 %v3486_v54  ;;  %v3478_v48 = vor.u32 %v3876_v44, %v3475_v45  ;;  %v3449_v49 = vld [vmem:[#allocation4 + $0x60] sm:$0xf]  ;;  %v3866_v26 = vld [vmem:[#allocation4 + $0x34] sm:$0xf0]  ;;  %v3864_v27 = vld [vmem:[#allocation4 + $0x2c] sm:$0xf] }
 0x376   :  { %v4215_v53 = vadd.f32 %v1613_v50, %v1612_v51  ;;  %v1601_v56 = vadd.f32 %v4001_v38, %v1600_v52  ;;  %2161 = vmatpush.bf16.msra.mxu2 %v3474_v43  ;;  %v3873_v50 = vld [vmem:[#allocation4 + $0x6c] sm:$0xf0]  ;;  %v3871_v51 = vld [vmem:[#allocation4 + $0x64] sm:$0xf]  ;;  %v3427_v28 = vld [vmem:[#allocation4 + $0x38] sm:$0xf0]  ;;  %v3426_v31 = vor.u32 %v3866_v26, %v3425_v24 }
 0x377   :  { %2174 = vmatpush.bf16.msra.mxu3 %v3478_v48  ;;  %v3450_v52 = vor.u32 %v3873_v50, %v3449_v49  ;;  %v3430_v54 = vor.u32 %v3864_v27, %v3427_v28  ;;  %v3401_v55 = vld [vmem:[#allocation4] sm:$0xf]  ;;  %v3409_v39 = vld [vmem:[#allocation4 + $0x8] sm:$0xf]  ;;  %v3862_v40 = vld [vmem:[#allocation4 + $0x14] sm:$0xf0] }
 0x378   :  { %4004 = vtanh.f32 %v4215_v53  ;;  %v1605_v59 = vsel %vm1604_vm10, %v4001_v38, %v1601_v56  ;;  %v3466_v38 = vor.u32 %v3877_v36, %v3465_v35  ;;  %v3451_v56 = vld [vmem:[#allocation4 + $0x70] sm:$0xf0]  ;;  %v3402_v37 = vor.u32 %v3861_v32, %v3401_v55  ;;  %v3860_v43 = vld [vmem:[#allocation4 + $0xc] sm:$0xf]  ;;  %v3411_v44 = vld [vmem:[#allocation4 + $0x18] sm:$0xf0] }
 0x379   :  { %v1610_v62 = vsel %vm1607_vm11, %v1609_v60, %v1605_v59  ;;  %2148 = vmatpush.bf16.msra.mxu1 %v3470_v42  ;;  %v3454_v59 = vor.u32 %v3871_v51, %v3451_v56  ;;  %v3458_v60 = vor.u32 %v3874_v58, %v3457_v57  ;;  %v3410_v42 = vor.u32 %v3862_v40, %v3409_v39  ;;  %v3261_v56 = vld [vmem:[%s4281_s0 + $0xb0] sm:$0xff]  ;;  %v3919_v32 = vld [vmem:[#allocation4 + $0xe4] sm:$0xf]  ;;  %v3920_v39 = vld [vmem:[#allocation4 + $0xec] sm:$0xf] }
 0x37a   :  { %2135 = vmatpush.bf16.msra.mxu0 %v3466_v38  ;;  %v3403_v38 = vld [vmem:[#allocation4 + $0x10] sm:$0xf0]  ;;  %v3921_v55 = vld [vmem:[#allocation4 + $0xec] sm:$0xf0]  ;;  %v3659_v40 = vld [vmem:[#allocation4 + $0xf8] sm:$0xf0] }
 0x37b   :  { %2162 = vmatpush.bf16.msra.mxu2 %v3458_v60  ;;  %v3406_v41 = vor.u32 %v3859_v33, %v3403_v38 }
 0x37d   :  { %2149 = vmatpush.bf16.msra.mxu1 %v3454_v59 }
 0x37e   :  { %v4005_v61 = vpop.eup %4004  ;;  %2136 = vmatpush.bf16.msra.mxu0 %v3450_v52 }
 0x37f   :  { %v1616_v63 = vmul.f32 %v4005_v61, %v1610_v62  ;;  %v3872_v61 = vld [vmem:[#allocation4 + $0x6c] sm:$0xf]  ;;  %v3459_v62 = vld [vmem:[#allocation4 + $0x78] sm:$0xf0]  ;;  %2163 = vmatpush.bf16.msra.mxu2 %v3442_v13 }
 0x380   :  { %v3462_v23 = vor.u32 %v3872_v61, %v3459_v62 }
 0x381   :  { %3258 = vst [vmem:[%s4285_s4 + $0x20] sm:$0xff] %v1616_v63  ;;  %v1619_v22 = vpack.c.bf16 %v1616_v63, %v1616_v63  ;;  %2150 = vmatpush.bf16.msra.mxu1 %v3438_v12 }
 0x382   :  { %2175 = vmatpush.bf16.msra.mxu3 %v3462_v23  ;;  %2137 = vmatpush.bf16.msra.mxu0 %v3434_v5 }
 0x383   :  { %1825 = vmatmul.bf16.vlgmr.msrb.gmra.mxu0 %v1619_v22  ;;  %1838 = vmatmul.bf16.vlgmr.msrb.gmra.mxu1 %v1619_v22 }
 0x384   :  { %1851 = vmatmul.bf16.vlgmr.msrb.gmra.mxu2 %v1619_v22  ;;  %1864 = vmatmul.bf16.vlgmr.msrb.gmra.mxu3 %v1619_v22 }
 0x385   :  { %2151 = vmatpush.bf16.msra.mxu1 %v3422_v25  ;;  %2164 = vmatpush.bf16.msra.mxu2 %v3426_v31 }
 0x386   :  { %2176 = vmatpush.bf16.msra.mxu3 %v3446_v18  ;;  %2138 = vmatpush.bf16.msra.mxu0 %v3418_v19 }
 0x389   :  { %2152 = vmatpush.bf16.msra.mxu1 %v3406_v41  ;;  %2165 = vmatpush.bf16.msra.mxu2 %v3410_v42  ;;  %v3662_v41 = vor.u32 %v3920_v39, %v3659_v40  ;;  %v3633_v42 = vld [vmem:[#allocation4 + $0xc0] sm:$0xf]  ;;  %v3902_v39 = vld [vmem:[#allocation4 + $0x54] sm:$0xf0] }
 0x38a   :  { %2177 = vmatpush.bf16.msra.mxu3 %v3430_v54  ;;  %2139 = vmatpush.bf16.msra.mxu0 %v3402_v37  ;;  %v3649_v54 = vld [vmem:[#allocation4 + $0xe0] sm:$0xf] }
 0x38b   :  { %v3650_v33 = vor.u32 %v3921_v55, %v3649_v54 }
 0x38e   :  { %2447 = vmatpush.bf16.msrb.mxu0 %v3650_v33  ;;  %v3569_v33 = vld [vmem:[#allocation4 + $0x40] sm:$0xf] }
 0x400   :  { %v1826_v63 = vpop.f32.mrf.mxu0  ;;  %v1839_v22 = vpop.f32.mrf.mxu1 }
 0x401   :  { %v1827_v0 = vadd.f32 %v3259_v46, %v1826_v63  ;;  %v1840_v1 = vadd.f32 %v3260_v47, %v1839_v22  ;;  %v3414_v47 = vor.u32 %v3860_v43, %v3411_v44  ;;  %v3917_v43 = vld [vmem:[#allocation4 + $0xcc] sm:$0xf0]  ;;  %v3915_v44 = vld [vmem:[#allocation4 + $0xc4] sm:$0xf] }
 0x403   :  { %v3391_v9 = vmul.f32 -1.442695, %v1827_v0  ;;  %v3392_v10 = vmul.f32 -1.442695, %v1840_v1  ;;  %2178 = vmatpush.bf16.msra.mxu3 %v3414_v47  ;;  %v3641_v47 = vld [vmem:[#allocation4 + $0xc8] sm:$0xf] }
 0x405   :  { %4006 = vpow2.f32 %v3391_v9 }
 0x406   :  { %4008 = vpow2.f32 %v3392_v10 }
 0x407   :  { %v1852_v29 = vpop.f32.mrf.mxu2  ;;  %v1865_v30 = vpop.f32.mrf.mxu3  ;;  %2486 = vmatpush.bf16.msrb.mxu3 %v3662_v41 }
 0x408   :  { %v1866_v34 = vadd.f32 %v3262_v11, %v1865_v30  ;;  %v1828_v35 = vpop.f32.mrf.mxu0  ;;  %v1841_v36 = vpop.f32.mrf.mxu1  ;;  %v1853_v60 = vadd.f32 %v3261_v56, %v1852_v29 }
 0x409   :  { %v3657_v35 = vld [vmem:[#allocation4 + $0xe8] sm:$0xf]  ;;  %v3922_v36 = vld [vmem:[#allocation4 + $0xf4] sm:$0xf0] }
 0x40a   :  { %v3393_v45 = vmul.f32 -1.442695, %v1866_v34  ;;  %v3651_v34 = vld [vmem:[#allocation4 + $0xf0] sm:$0xf0]  ;;  %v3658_v38 = vor.u32 %v3922_v36, %v3657_v35  ;;  %v3899_v35 = vld [vmem:[#allocation4 + $0x44] sm:$0xf] }
 0x40b   :  { %v4007_v46 = vpop.eup %4006  ;;  %v3654_v37 = vor.u32 %v3919_v32, %v3651_v34  ;;  %v3901_v34 = vld [vmem:[#allocation4 + $0x4c] sm:$0xf0] }
 0x40c   :  { %v4009_v48 = vpop.eup %4008  ;;  %v1872_v49 = vadd.f32 1.0, %v4007_v46  ;;  %4010 = vpow2.f32 %v3393_v45  ;;  %2473 = vmatpush.bf16.msrb.mxu2 %v3658_v38  ;;  %v3634_v45 = vor.u32 %v3917_v43, %v3633_v42  ;;  %v3635_v46 = vld [vmem:[#allocation4 + $0xd0] sm:$0xf0]  ;;  %v3570_v36 = vor.u32 %v3901_v34, %v3569_v33  ;;  %v3577_v38 = vld [vmem:[#allocation4 + $0x48] sm:$0xf]  ;;  %v3398_v42 = vld [vmem:[%s4281_s0 + $0xd8] sm:$0xff] }
 0x40d   :  { %v1891_v50 = vadd.f32 1.0, %v4009_v48  ;;  %2460 = vmatpush.bf16.msrb.mxu1 %v3654_v37  ;;  %v3918_v48 = vld [vmem:[#allocation4 + $0xd4] sm:$0xf0]  ;;  %v3571_v37 = vld [vmem:[#allocation4 + $0x50] sm:$0xf0] }
 0x40e   :  { %4012 = vrcp.f32 %v1872_v49  ;;  %v1884_v0 = vand.u32 2147483648, %v1872_v49  ;;  %v1882_v3 = vand.u32 2147483647, %v1872_v49  ;;  %vm1878_vm14 = vweird.f32 %v1872_v49  ;;  %2448 = vmatpush.bf16.msrb.mxu0 %v3634_v45  ;;  %v3900_v45 = vld [vmem:[#allocation4 + $0x4c] sm:$0xf] }
 0x40f   :  { %4014 = vrcp.f32 %v1891_v50  ;;  %v1854_v51 = vpop.f32.mrf.mxu2  ;;  %v1867_v52 = vpop.f32.mrf.mxu3  ;;  %v1903_v1 = vand.u32 2147483648, %v1891_v50  ;;  %v1901_v5 = vand.u32 2147483647, %v1891_v50  ;;  %vm1897_vm15 = vweird.f32 %v1891_v50 }
 0x410   :  { %v1885_v8 = vor.u32 1.1754944e-38, %v1884_v0  ;;  %vm1883_vm2 = vcmp.eq.f32.partialorder %v1882_v3, 8.507059e+37  ;;  %v3916_v51 = vld [vmem:[#allocation4 + $0xcc] sm:$0xf]  ;;  %v3643_v52 = vld [vmem:[#allocation4 + $0xd8] sm:$0xf0]  ;;  %v3574_v43 = vor.u32 %v3899_v35, %v3571_v37 }
 0x411   :  { %v1904_v11 = vor.u32 1.1754944e-38, %v1903_v1  ;;  %vm1902_vm3 = vcmp.eq.f32.partialorder %v1901_v5, 8.507059e+37  ;;  %v3646_v56 = vor.u32 %v3916_v51, %v3643_v52  ;;  %v3912_v0 = vld [vmem:[#allocation4 + $0xac] sm:$0xf]  ;;  %v3627_v1 = vld [vmem:[#allocation4 + $0xb8] sm:$0xf0] }
 0x412   :  { %v4011_v57 = vpop.eup %4010  ;;  %v3601_v3 = vld [vmem:[#allocation4 + $0x80] sm:$0xf]  ;;  %v3907_v5 = vld [vmem:[#allocation4 + $0x84] sm:$0xf]  ;;  %v3555_v52 = vld [vmem:[#allocation4 + $0x30] sm:$0xf0] }
 0x413   :  { %v1911_v58 = vadd.f32 1.0, %v4011_v57  ;;  %v3617_v57 = vld [vmem:[#allocation4 + $0xa0] sm:$0xf]  ;;  %2487 = vmatpush.bf16.msrb.mxu3 %v3646_v56  ;;  %v3895_v51 = vld [vmem:[#allocation4 + $0x24] sm:$0xf] }
 0x414   :  { %v4013_v59 = vpop.eup %4012  ;;  %v3561_v56 = vld [vmem:[#allocation4 + $0x28] sm:$0xf] }
 0x415   :  { %v4015_v61 = vpop.eup %4014  ;;  %v1874_v62 = vmul.f32 %v4013_v59, %v1872_v49  ;;  %4016 = vrcp.f32 %v1911_v58  ;;  %vm1879_vm12 = vweird.f32 %v4013_v59  ;;  %v1923_v25 = vand.u32 2147483648, %v1911_v58 }
 0x416   :  { %v1893_v63 = vmul.f32 %v4015_v61, %v1891_v50  ;;  %4018 = vtanh.f32 %v1853_v60  ;;  %vm1898_vm13 = vweird.f32 %v4015_v61  ;;  %vm1880_vm0 = vmor %vm1878_vm14, %vm1879_vm12  ;;  %vm1917_vm5 = vweird.f32 %v1911_v58 }
 0x417   :  { %v1875_v22 = vsub.f32 1.0, %v1874_v62  ;;  %vm1899_vm1 = vmor %vm1897_vm15, %vm1898_vm13  ;;  %v1921_v26 = vand.u32 2147483647, %v1911_v58  ;;  %v1924_v28 = vor.u32 1.1754944e-38, %v1923_v25  ;;  %v3638_v49 = vor.u32 %v3915_v44, %v3635_v46  ;;  %v3625_v62 = vld [vmem:[#allocation4 + $0xa8] sm:$0xf] }
 0x418   :  { %v1894_v23 = vsub.f32 1.0, %v1893_v63  ;;  %v3642_v50 = vor.u32 %v3918_v48, %v3641_v47  ;;  %v3914_v63 = vld [vmem:[#allocation4 + $0xb4] sm:$0xf0]  ;;  %v3593_v25 = vld [vmem:[#allocation4 + $0x68] sm:$0xf]  ;;  %v3578_v44 = vor.u32 %v3902_v39, %v3577_v38 }
 0x419   :  { %v1876_v2 = vmul.f32 %v4013_v59, %v1875_v22  ;;  %vm1922_vm7 = vcmp.eq.f32.partialorder %v1921_v26, 8.507059e+37  ;;  %2461 = vmatpush.bf16.msrb.mxu1 %v3638_v49  ;;  %v3906_v26 = vld [vmem:[#allocation4 + $0x74] sm:$0xf0]  ;;  %v3579_v46 = vld [vmem:[#allocation4 + $0x58] sm:$0xf0] }
 0x41a   :  { %v1895_v4 = vmul.f32 %v4015_v61, %v1894_v23  ;;  %2474 = vmatpush.bf16.msrb.mxu2 %v3642_v50  ;;  %v3626_v23 = vor.u32 %v3914_v63, %v3625_v62  ;;  %v3553_v47 = vld [vmem:[#allocation4 + $0x20] sm:$0xf]  ;;  %v3897_v48 = vld [vmem:[#allocation4 + $0x2c] sm:$0xf0]  ;;  %v3582_v49 = vor.u32 %v3900_v45, %v3579_v46 }
 0x41b   :  { %v4017_v6 = vpop.eup %4016  ;;  %v1877_v7 = vadd.f32 %v4013_v59, %v1876_v2  ;;  %v3630_v2 = vor.u32 %v3912_v0, %v3627_v1  ;;  %v3554_v50 = vor.u32 %v3897_v48, %v3553_v47  ;;  %v3893_v0 = vld [vmem:[#allocation4 + $0xc] sm:$0xf0]  ;;  %v3891_v1 = vld [vmem:[#allocation4 + $0x4] sm:$0xf] }
 0x41c   :  { %v1896_v9 = vadd.f32 %v4015_v61, %v1895_v4  ;;  %v1913_v10 = vmul.f32 %v4017_v6, %v1911_v58  ;;  %v4019_v13 = vpop.eup %4018  ;;  %vm1918_vm4 = vweird.f32 %v4017_v6  ;;  %v3913_v58 = vld [vmem:[#allocation4 + $0xac] sm:$0xf0] }
 0x41d   :  { %v1881_v12 = vsel %vm1880_vm0, %v4013_v59, %v1877_v7  ;;  %vm1919_vm6 = vmor %vm1917_vm5, %vm1918_vm4  ;;  %v3911_v59 = vld [vmem:[#allocation4 + $0xa4] sm:$0xf]  ;;  %v3618_v60 = vor.u32 %v3913_v58, %v3617_v57  ;;  %v3909_v4 = vld [vmem:[#allocation4 + $0x8c] sm:$0xf0]  ;;  %2488 = vmatpush.bf16.msrb.mxu3 %v3630_v2  ;;  %v3558_v57 = vor.u32 %v3895_v51, %v3555_v52 }
 0x41e   :  { %v1886_v14 = vsel %vm1883_vm2, %v1885_v8, %v1881_v12  ;;  %v1900_v15 = vsel %vm1899_vm1, %v4015_v61, %v1896_v9  ;;  %v1914_v16 = vsub.f32 1.0, %v1913_v10  ;;  %v3619_v61 = vld [vmem:[#allocation4 + $0xb0] sm:$0xf0]  ;;  %2475 = vmatpush.bf16.msrb.mxu2 %v3626_v23  ;;  %v3609_v8 = vld [vmem:[#allocation4 + $0x88] sm:$0xf] }
 0x41f   :  { %v1905_v17 = vsel %vm1902_vm3, %v1904_v11, %v1900_v15  ;;  %v1928_v18 = vmul.f32 %v4019_v13, %v1886_v14  ;;  %v3622_v22 = vor.u32 %v3911_v59, %v3619_v61  ;;  %2449 = vmatpush.bf16.msrb.mxu0 %v3618_v60  ;;  %v3603_v7 = vld [vmem:[#allocation4 + $0x90] sm:$0xf0]  ;;  %v3910_v9 = vld [vmem:[#allocation4 + $0x94] sm:$0xf0]  ;;  %v3908_v12 = vld [vmem:[#allocation4 + $0x8c] sm:$0xf] }
 0x420   :  { %v1927_v19 = vmul.f32 %v1905_v17, %v4215_v53  ;;  %v1915_v20 = vmul.f32 %v4017_v6, %v1914_v16  ;;  %v3606_v10 = vor.u32 %v3907_v5, %v3603_v7  ;;  %v3610_v11 = vor.u32 %v3910_v9, %v3609_v8  ;;  %v3611_v13 = vld [vmem:[#allocation4 + $0x98] sm:$0xf0]  ;;  %v3395_v14 = vld [vmem:[%s4281_s0 + $0xc0] sm:$0xff]  ;;  %v3396_v15 = vld [vmem:[%s4281_s0 + $0xc8] sm:$0xff] }
 0x421   :  { %2462 = vmatpush.bf16.msrb.mxu1 %v3622_v22  ;;  %v3614_v16 = vor.u32 %v3908_v12, %v3611_v13  ;;  %v3585_v17 = vld [vmem:[#allocation4 + $0x60] sm:$0xf]  ;;  %v3898_v58 = vld [vmem:[#allocation4 + $0x34] sm:$0xf0]  ;;  %v3896_v59 = vld [vmem:[#allocation4 + $0x2c] sm:$0xf] }
 0x422   :  { %v4234_v21 = vadd.f32 %v1928_v18, %v1927_v19  ;;  %v1916_v24 = vadd.f32 %v4017_v6, %v1915_v20  ;;  %2476 = vmatpush.bf16.msrb.mxu2 %v3610_v11  ;;  %v3905_v18 = vld [vmem:[#allocation4 + $0x6c] sm:$0xf0]  ;;  %v3903_v19 = vld [vmem:[#allocation4 + $0x64] sm:$0xf]  ;;  %v3563_v60 = vld [vmem:[#allocation4 + $0x38] sm:$0xf0]  ;;  %v3562_v63 = vor.u32 %v3898_v58, %v3561_v56 }
 0x423   :  { %2489 = vmatpush.bf16.msrb.mxu3 %v3614_v16  ;;  %v3586_v20 = vor.u32 %v3905_v18, %v3585_v17  ;;  %v3566_v22 = vor.u32 %v3896_v59, %v3563_v60  ;;  %v3537_v23 = vld [vmem:[#allocation4] sm:$0xf]  ;;  %v3545_v7 = vld [vmem:[#allocation4 + $0x8] sm:$0xf]  ;;  %v3894_v8 = vld [vmem:[#allocation4 + $0x14] sm:$0xf0] }
 0x424   :  { %4020 = vtanh.f32 %v4234_v21  ;;  %v1920_v27 = vsel %vm1919_vm6, %v4017_v6, %v1916_v24  ;;  %v3602_v6 = vor.u32 %v3909_v4, %v3601_v3  ;;  %v3587_v24 = vld [vmem:[#allocation4 + $0x70] sm:$0xf0]  ;;  %v3538_v5 = vor.u32 %v3893_v0, %v3537_v23  ;;  %v3892_v11 = vld [vmem:[#allocation4 + $0xc] sm:$0xf]  ;;  %v3547_v12 = vld [vmem:[#allocation4 + $0x18] sm:$0xf0] }
 0x425   :  { %v1925_v30 = vsel %vm1922_vm7, %v1924_v28, %v1920_v27  ;;  %2463 = vmatpush.bf16.msrb.mxu1 %v3606_v10  ;;  %v3590_v27 = vor.u32 %v3903_v19, %v3587_v24  ;;  %v3594_v28 = vor.u32 %v3906_v26, %v3593_v25  ;;  %v3546_v10 = vor.u32 %v3894_v8, %v3545_v7  ;;  %v3397_v24 = vld [vmem:[%s4281_s0 + $0xd0] sm:$0xff]  ;;  %v3532_v23 = vld [vmem:[%s4281_s0 + $0xe8] sm:$0xff] }
 0x426   :  { %2450 = vmatpush.bf16.msrb.mxu0 %v3602_v6  ;;  %v3539_v6 = vld [vmem:[#allocation4 + $0x10] sm:$0xf0] }
 0x427   :  { %2477 = vmatpush.bf16.msrb.mxu2 %v3594_v28  ;;  %v3542_v9 = vor.u32 %v3891_v1, %v3539_v6  ;;  %v3534_v6 = vld [vmem:[%s4281_s0 + $0xf8] sm:$0xff] }
 0x429   :  { %2464 = vmatpush.bf16.msrb.mxu1 %v3590_v27 }
 0x42a   :  { %v4021_v29 = vpop.eup %4020  ;;  %2451 = vmatpush.bf16.msrb.mxu0 %v3586_v20 }
 0x42b   :  { %v1931_v31 = vmul.f32 %v4021_v29, %v1925_v30  ;;  %v3904_v29 = vld [vmem:[#allocation4 + $0x6c] sm:$0xf]  ;;  %v3595_v30 = vld [vmem:[#allocation4 + $0x78] sm:$0xf0]  ;;  %2478 = vmatpush.bf16.msrb.mxu2 %v3578_v44 }
 0x42c   :  { %v3598_v54 = vor.u32 %v3904_v29, %v3595_v30 }
 0x42d   :  { %3394 = vst [vmem:[%s4285_s4 + $0x28] sm:$0xff] %v1931_v31  ;;  %v1934_v53 = vpack.c.bf16 %v1931_v31, %v1931_v31  ;;  %2465 = vmatpush.bf16.msrb.mxu1 %v3574_v43 }
 0x42e   :  { %2490 = vmatpush.bf16.msrb.mxu3 %v3598_v54  ;;  %2452 = vmatpush.bf16.msrb.mxu0 %v3570_v36 }
 0x42f   :  { %2140 = vmatmul.bf16.vlgmr.msra.gmra.mxu0 %v1934_v53  ;;  %2153 = vmatmul.bf16.vlgmr.msra.gmra.mxu1 %v1934_v53 }
 0x430   :  { %2166 = vmatmul.bf16.vlgmr.msra.gmra.mxu2 %v1934_v53  ;;  %2179 = vmatmul.bf16.vlgmr.msra.gmra.mxu3 %v1934_v53 }
 0x431   :  { %2466 = vmatpush.bf16.msrb.mxu1 %v3558_v57  ;;  %2479 = vmatpush.bf16.msrb.mxu2 %v3562_v63 }
 0x432   :  { %2491 = vmatpush.bf16.msrb.mxu3 %v3582_v49  ;;  %2453 = vmatpush.bf16.msrb.mxu0 %v3554_v50 }
 0x435   :  { %2467 = vmatpush.bf16.msrb.mxu1 %v3542_v9  ;;  %2480 = vmatpush.bf16.msrb.mxu2 %v3546_v10 }
 0x436   :  { %2492 = vmatpush.bf16.msrb.mxu3 %v3566_v22  ;;  %2454 = vmatpush.bf16.msrb.mxu0 %v3538_v5  ;;  %v3531_v22 = vld [vmem:[%s4281_s0 + $0xe0] sm:$0xff] }
 0x4ac   :  { %v2141_v31 = vpop.f32.mrf.mxu0  ;;  %v2154_v53 = vpop.f32.mrf.mxu1 }
 0x4ad   :  { %v2142_v55 = vadd.f32 %v3395_v14, %v2141_v31  ;;  %v2155_v32 = vadd.f32 %v3396_v15, %v2154_v53  ;;  %v3550_v15 = vor.u32 %v3892_v11, %v3547_v12 }
 0x4af   :  { %v3527_v40 = vmul.f32 -1.442695, %v2142_v55  ;;  %v3528_v41 = vmul.f32 -1.442695, %v2155_v32  ;;  %2493 = vmatpush.bf16.msrb.mxu3 %v3550_v15 }
 0x4b1   :  { %4022 = vpow2.f32 %v3527_v40 }
 0x4b2   :  { %4024 = vpow2.f32 %v3528_v41 }
 0x4b3   :  { %v2167_v61 = vpop.f32.mrf.mxu2  ;;  %v2180_v62 = vpop.f32.mrf.mxu3 }
 0x4b4   :  { %v2181_v2 = vadd.f32 %v3398_v42, %v2180_v62  ;;  %v2143_v3 = vpop.f32.mrf.mxu0  ;;  %v2156_v4 = vpop.f32.mrf.mxu1  ;;  %v2168_v28 = vadd.f32 %v3397_v24, %v2167_v61 }
 0x4b6   :  { %v3529_v13 = vmul.f32 -1.442695, %v2181_v2 }
 0x4b7   :  { %v4023_v14 = vpop.eup %4022 }
 0x4b8   :  { %v4025_v16 = vpop.eup %4024  ;;  %v2187_v17 = vadd.f32 1.0, %v4023_v14  ;;  %4026 = vpow2.f32 %v3529_v13 }
 0x4b9   :  { %v2206_v18 = vadd.f32 1.0, %v4025_v16 }
 0x4ba   :  { %4028 = vrcp.f32 %v2187_v17  ;;  %v2199_v55 = vand.u32 2147483648, %v2187_v17  ;;  %v2197_v34 = vand.u32 2147483647, %v2187_v17  ;;  %vm2193_vm10 = vweird.f32 %v2187_v17 }
 0x4bb   :  { %4030 = vrcp.f32 %v2206_v18  ;;  %v2169_v19 = vpop.f32.mrf.mxu2  ;;  %v2182_v20 = vpop.f32.mrf.mxu3  ;;  %v2218_v32 = vand.u32 2147483648, %v2206_v18  ;;  %v2216_v36 = vand.u32 2147483647, %v2206_v18  ;;  %vm2212_vm11 = vweird.f32 %v2206_v18 }
 0x4bc   :  { %v2200_v39 = vor.u32 1.1754944e-38, %v2199_v55  ;;  %vm2198_vm14 = vcmp.eq.f32.partialorder %v2197_v34, 8.507059e+37  ;;  %v3533_v19 = vld [vmem:[%s4281_s0 + $0xf0] sm:$0xff] }
 0x4bd   :  { %v2219_v42 = vor.u32 1.1754944e-38, %v2218_v32  ;;  %vm2217_vm15 = vcmp.eq.f32.partialorder %v2216_v36, 8.507059e+37 }
 0x4be   :  { %v4027_v25 = vpop.eup %4026 }
 0x4bf   :  { %v2226_v26 = vadd.f32 1.0, %v4027_v25 }
 0x4c0   :  { %v4029_v27 = vpop.eup %4028 }
 0x4c1   :  { %v4031_v29 = vpop.eup %4030  ;;  %v2189_v30 = vmul.f32 %v4029_v27, %v2187_v17  ;;  %4032 = vrcp.f32 %v2226_v26  ;;  %vm2194_vm8 = vweird.f32 %v4029_v27  ;;  %v2238_v57 = vand.u32 2147483648, %v2226_v26 }
 0x4c2   :  { %v2208_v31 = vmul.f32 %v4031_v29, %v2206_v18  ;;  %4034 = vtanh.f32 %v2168_v28  ;;  %vm2213_vm9 = vweird.f32 %v4031_v29  ;;  %vm2195_vm12 = vmor %vm2193_vm10, %vm2194_vm8  ;;  %vm2232_vm1 = vweird.f32 %v2226_v26 }
 0x4c3   :  { %v2190_v53 = vsub.f32 1.0, %v2189_v30  ;;  %vm2214_vm13 = vmor %vm2212_vm11, %vm2213_vm9  ;;  %v2236_v58 = vand.u32 2147483647, %v2226_v26  ;;  %v2239_v60 = vor.u32 1.1754944e-38, %v2238_v57 }
 0x4c4   :  { %v2209_v54 = vsub.f32 1.0, %v2208_v31 }
 0x4c5   :  { %v2191_v33 = vmul.f32 %v4029_v27, %v2190_v53  ;;  %vm2237_vm3 = vcmp.eq.f32.partialorder %v2236_v58, 8.507059e+37 }
 0x4c6   :  { %v2210_v35 = vmul.f32 %v4031_v29, %v2209_v54 }
 0x4c7   :  { %v4033_v37 = vpop.eup %4032  ;;  %v2192_v38 = vadd.f32 %v4029_v27, %v2191_v33 }
 0x4c8   :  { %v2211_v40 = vadd.f32 %v4031_v29, %v2210_v35  ;;  %v2228_v41 = vmul.f32 %v4033_v37, %v2226_v26  ;;  %v4035_v44 = vpop.eup %4034  ;;  %vm2233_vm0 = vweird.f32 %v4033_v37 }
 0x4c9   :  { %v2196_v43 = vsel %vm2195_vm12, %v4029_v27, %v2192_v38  ;;  %vm2234_vm2 = vmor %vm2232_vm1, %vm2233_vm0 }
 0x4ca   :  { %v2201_v45 = vsel %vm2198_vm14, %v2200_v39, %v2196_v43  ;;  %v2215_v46 = vsel %vm2214_vm13, %v4031_v29, %v2211_v40  ;;  %v2229_v47 = vsub.f32 1.0, %v2228_v41 }
 0x4cb   :  { %v2220_v48 = vsel %vm2217_vm15, %v2219_v42, %v2215_v46  ;;  %v2243_v49 = vmul.f32 %v4035_v44, %v2201_v45 }
 0x4cc   :  { %v2242_v50 = vmul.f32 %v2220_v48, %v4234_v21  ;;  %v2230_v51 = vmul.f32 %v4033_v37, %v2229_v47 }
 0x4ce   :  { %v4253_v52 = vadd.f32 %v2243_v49, %v2242_v50  ;;  %v2231_v56 = vadd.f32 %v4033_v37, %v2230_v51 }
 0x4d0   :  { %4036 = vtanh.f32 %v4253_v52  ;;  %v2235_v59 = vsel %vm2234_vm2, %v4033_v37, %v2231_v56 }
 0x4d1   :  { %v2240_v62 = vsel %vm2237_vm3, %v2239_v60, %v2235_v59 }
 0x4d6   :  { %v4037_v61 = vpop.eup %4036 }
 0x4d7   :  { %v2246_v63 = vmul.f32 %v4037_v61, %v2240_v62 }
 0x4d9   :  { %3530 = vst [vmem:[%s4285_s4 + $0x30] sm:$0xff] %v2246_v63  ;;  %v2249_v21 = vpack.c.bf16 %v2246_v63, %v2246_v63 }
 0x4db   :  { %2455 = vmatmul.bf16.vlgmr.msrb.gmra.mxu0 %v2249_v21  ;;  %2468 = vmatmul.bf16.vlgmr.msrb.gmra.mxu1 %v2249_v21 }
 0x4dc   :  { %2481 = vmatmul.bf16.vlgmr.msrb.gmra.mxu2 %v2249_v21  ;;  %2494 = vmatmul.bf16.vlgmr.msrb.gmra.mxu3 %v2249_v21 }
 0x558   :  { %v2456_v0 = vpop.f32.mrf.mxu0  ;;  %v2469_v1 = vpop.f32.mrf.mxu1 }
 0x559   :  { %v2457_v2 = vadd.f32 %v3531_v22, %v2456_v0  ;;  %v2470_v3 = vadd.f32 %v3532_v23, %v2469_v1 }
 0x55b   :  { %v3663_v4 = vmul.f32 -1.442695, %v2457_v2  ;;  %v3664_v5 = vmul.f32 -1.442695, %v2470_v3 }
 0x55d   :  { %4038 = vpow2.f32 %v3663_v4 }
 0x55e   :  { %4040 = vpow2.f32 %v3664_v5 }
 0x55f   :  { %v2482_v7 = vpop.f32.mrf.mxu2  ;;  %v2495_v8 = vpop.f32.mrf.mxu3 }
 0x560   :  { %v2496_v9 = vadd.f32 %v3534_v6, %v2495_v8  ;;  %v2458_v10 = vpop.f32.mrf.mxu0  ;;  %v2471_v11 = vpop.f32.mrf.mxu1  ;;  %v2483_v26 = vadd.f32 %v3533_v19, %v2482_v7 }
 0x562   :  { %v3665_v12 = vmul.f32 -1.442695, %v2496_v9 }
 0x563   :  { %v4039_v13 = vpop.eup %4038 }
 0x564   :  { %v4041_v14 = vpop.eup %4040  ;;  %v2502_v15 = vadd.f32 1.0, %v4039_v13  ;;  %4042 = vpow2.f32 %v3665_v12 }
 0x565   :  { %v2521_v16 = vadd.f32 1.0, %v4041_v14 }
 0x566   :  { %4044 = vrcp.f32 %v2502_v15  ;;  %v2514_v53 = vand.u32 2147483648, %v2502_v15  ;;  %v2512_v32 = vand.u32 2147483647, %v2502_v15  ;;  %vm2508_vm6 = vweird.f32 %v2502_v15 }
 0x567   :  { %4046 = vrcp.f32 %v2521_v16  ;;  %v2484_v17 = vpop.f32.mrf.mxu2  ;;  %v2497_v18 = vpop.f32.mrf.mxu3  ;;  %v2533_v54 = vand.u32 2147483648, %v2521_v16  ;;  %v2531_v34 = vand.u32 2147483647, %v2521_v16  ;;  %vm2527_vm7 = vweird.f32 %v2521_v16 }
 0x568   :  { %v2515_v37 = vor.u32 1.1754944e-38, %v2514_v53  ;;  %vm2513_vm10 = vcmp.eq.f32.partialorder %v2512_v32, 8.507059e+37 }
 0x569   :  { %v2534_v40 = vor.u32 1.1754944e-38, %v2533_v54  ;;  %vm2532_vm11 = vcmp.eq.f32.partialorder %v2531_v34, 8.507059e+37 }
 0x56a   :  { %v4043_v20 = vpop.eup %4042 }
 0x56b   :  { %v2541_v24 = vadd.f32 1.0, %v4043_v20 }
 0x56c   :  { %v4045_v25 = vpop.eup %4044 }
 0x56d   :  { %v4047_v27 = vpop.eup %4046  ;;  %v2504_v28 = vmul.f32 %v4045_v25, %v2502_v15  ;;  %4048 = vrcp.f32 %v2541_v24  ;;  %vm2509_vm4 = vweird.f32 %v4045_v25  ;;  %v2553_v56 = vand.u32 2147483648, %v2541_v24 }
 0x56e   :  { %v2523_v29 = vmul.f32 %v4047_v27, %v2521_v16  ;;  %4050 = vtanh.f32 %v2483_v26  ;;  %vm2528_vm5 = vweird.f32 %v4047_v27  ;;  %vm2510_vm8 = vmor %vm2508_vm6, %vm2509_vm4  ;;  %vm2547_vm13 = vweird.f32 %v2541_v24 }
 0x56f   :  { %v2505_v30 = vsub.f32 1.0, %v2504_v28  ;;  %vm2529_vm9 = vmor %vm2527_vm7, %vm2528_vm5  ;;  %v2551_v57 = vand.u32 2147483647, %v2541_v24  ;;  %v2554_v59 = vor.u32 1.1754944e-38, %v2553_v56 }
 0x570   :  { %v2524_v31 = vsub.f32 1.0, %v2523_v29 }
 0x571   :  { %v2506_v55 = vmul.f32 %v4045_v25, %v2505_v30  ;;  %vm2552_vm15 = vcmp.eq.f32.partialorder %v2551_v57, 8.507059e+37 }
 0x572   :  { %v2525_v33 = vmul.f32 %v4047_v27, %v2524_v31 }
 0x573   :  { %v4049_v35 = vpop.eup %4048  ;;  %v2507_v36 = vadd.f32 %v4045_v25, %v2506_v55 }
 0x574   :  { %v2526_v38 = vadd.f32 %v4047_v27, %v2525_v33  ;;  %v2543_v39 = vmul.f32 %v4049_v35, %v2541_v24  ;;  %v4051_v42 = vpop.eup %4050  ;;  %vm2548_vm12 = vweird.f32 %v4049_v35 }
 0x575   :  { %v2511_v41 = vsel %vm2510_vm8, %v4045_v25, %v2507_v36  ;;  %vm2549_vm14 = vmor %vm2547_vm13, %vm2548_vm12 }
 0x576   :  { %v2516_v43 = vsel %vm2513_vm10, %v2515_v37, %v2511_v41  ;;  %v2530_v44 = vsel %vm2529_vm9, %v4047_v27, %v2526_v38  ;;  %v2544_v45 = vsub.f32 1.0, %v2543_v39 }
 0x577   :  { %v2535_v46 = vsel %vm2532_vm11, %v2534_v40, %v2530_v44  ;;  %v2558_v47 = vmul.f32 %v4051_v42, %v2516_v43 }
 0x578   :  { %v2557_v48 = vmul.f32 %v2535_v46, %v4253_v52  ;;  %v2545_v49 = vmul.f32 %v4049_v35, %v2544_v45 }
 0x57a   :  { %v2559_v50 = vadd.f32 %v2558_v47, %v2557_v48  ;;  %v2546_v51 = vadd.f32 %v4049_v35, %v2545_v49 }
 0x57c   :  { %4052 = vtanh.f32 %v2559_v50  ;;  %2570 = vst [vmem:[%s4287_s6] sm:$0xff] %v2559_v50  ;;  %v2550_v58 = vsel %vm2549_vm14, %v4049_v35, %v2546_v51 }
 0x57d   :  { %v2555_v61 = vsel %vm2552_vm15, %v2554_v59, %v2550_v58 }
 0x582   :  { %v4053_v60 = vpop.eup %4052 }
 0x583   :  { %v2561_v62 = vmul.f32 %v4053_v60, %v2555_v61 }
 0x585   :  { %3666 = vst [vmem:[%s4285_s4 + $0x38] sm:$0xff] %v2561_v62 }
 0x586   :  { %2569 = vst [vmem:[%s4286_s5] sm:$0xff] %v2561_v62 }
 0x587   :  { %2583 = vsyncpa [#allocation5], 1 }

</bundles_post_ra>
